<compile_context>
chip_gen: v5e
topology: v5e:2x2
jax: 0.10.0
libtpu: 0.0.40
codegen_flags: <defaults>
</compile_context>

<pallas_src>
import jax
import jax.numpy as jnp
from jax import lax
from jax.experimental import pallas as pl
from jax.experimental.pallas import tpu as pltpu

EPS = 1e-5

CONFIG = dict(
    numberOfFeaturesToExtract=2,
    incremMultiplier=2,
    numberOfConvLayers=2,
    kernelSizeOfConvLayers=3,
    strideOfConvLayers=1,
    kernelSizeOfPoolingLayers=2,
    strideOfPoolingLayers=2,
    numberOfFullyConnectedLayers=2,
    fcDecreaseFactor=2,
    negative_slope=0.01,
)


# ----------------------------------------------------------------------------
# Parameter construction (mirrors the PyTorch constructor)
# ----------------------------------------------------------------------------
def build_params(input_shape, cfg, key):
    N, C_in, H, W = input_shape
    features_to_extract = C_in * cfg["numberOfFeaturesToExtract"]
    kc, sc = cfg["kernelSizeOfConvLayers"], cfg["strideOfConvLayers"]
    kp, sp = cfg["kernelSizeOfPoolingLayers"], cfg["strideOfPoolingLayers"]

    conv_params = []
    c_prev, h, w = C_in, H, W
    for layer in range(cfg["numberOfConvLayers"]):
        c_out = features_to_extract if layer == 0 else c_prev * cfg["incremMultiplier"]
        key, k1, k2 = jax.random.split(key, 3)
        W_conv = jax.random.normal(k1, (c_out, c_prev, kc, kc), jnp.float32) * 0.1
        b_conv = jax.random.normal(k2, (c_out,), jnp.float32) * 0.1
        gamma = jnp.ones((c_out,), jnp.float32)
        beta = jnp.zeros((c_out,), jnp.float32)
        conv_params.append(dict(W=W_conv, b=b_conv, gamma=gamma, beta=beta))
        h = (h - kc) // sc + 1
        w = (w - kc) // sc + 1
        h = (h - kp) // sp + 1
        w = (w - kp) // sp + 1
        c_prev = c_out

    num_features = c_prev * h * w  # CalculateInputSize_OfFirstFullyConnectedLayer
    fc_params = []
    n_fc = cfg["numberOfFullyConnectedLayers"]
    in_f = num_features
    for layer in range(n_fc):
        if n_fc == 1 or layer == n_fc - 1:
            out_f = features_to_extract
        else:
            out_f = int(in_f / cfg["fcDecreaseFactor"])
        key, k1, k2 = jax.random.split(key, 3)
        W_fc = jax.random.normal(k1, (in_f, out_f), jnp.float32) * 0.1
        b_fc = jax.random.normal(k2, (out_f,), jnp.float32) * 0.1
        fc_params.append(dict(W=W_fc, b=b_fc))
        in_f = out_f
    return conv_params, fc_params


# ----------------------------------------------------------------------------
# One-time host-side re-layout of weights into MXU-friendly operands
# ----------------------------------------------------------------------------
def prepare_network(input_shape, conv_params, fc_params, cfg):
    N, C, H, W = input_shape
    kc, sc = cfg["kernelSizeOfConvLayers"], cfg["strideOfConvLayers"]
    kp, sp = cfg["kernelSizeOfPoolingLayers"], cfg["strideOfPoolingLayers"]

    operands = []
    conv_plan = []
    c_in, h, w = C, H, W
    for p in conv_params:
        c_out = p["W"].shape[0]
        OH = (h - kc) // sc + 1
        OW = (w - kc) // sc + 1
        PH = (OH - kp) // sp + 1
        PW = (OW - kp) // sp + 1

        # Block-diagonal conv weights: one (OW*c_in, OW*c_out) matrix per (dh, dw).
        eye_ow = jnp.eye(OW, dtype=jnp.float32)
        wbd = jnp.stack(
            [jnp.kron(eye_ow, p["W"][:, :, dh, dw].T.astype(jnp.float32))
             for dh in range(kc) for dw in range(kc)], axis=0)          # (kc*kc, OW*ci, OW*co)
        bias_full = jnp.tile(p["b"], OW).reshape(1, OW * c_out)          # (1, OW*co)
        gamma = p["gamma"].reshape(1, c_out)
        beta = p["beta"].reshape(1, c_out)

        # Channel selector (sum over ow) and its transpose (broadcast back over ow).
        sel = jnp.tile(jnp.eye(c_out, dtype=jnp.float32), (OW, 1))       # (OW*co, co)
        sel_t = sel.T                                                    # (co, OW*co)

        # Max-pool selection matrices (one per pooling tap).
        oh_idx = jnp.arange(OH)[None, :]
        ph_idx = jnp.arange(PH)[:, None]
        pool_h = jnp.stack(
            [(oh_idx == sp * ph_idx + t).astype(jnp.float32) for t in range(kp)],
            axis=0)                                                      # (kp, PH, OH)
        ow_idx = jnp.arange(OW)[:, None]
        pw_idx = jnp.arange(PW)[None, :]
        eye_c = jnp.eye(c_out, dtype=jnp.float32)
        pool_w = jnp.stack(
            [jnp.kron((ow_idx == sp * pw_idx + t).astype(jnp.float32), eye_c)
             for t in range(kp)], axis=0)                                # (kp, OW*co, PW*co)

        operands += [wbd, bias_full, gamma, beta, sel, sel_t, pool_h, pool_w]
        conv_plan.append(dict(c_in=c_in, c_out=c_out, H=h, W=w, OH=OH, OW=OW,
                              PH=PH, PW=PW, kc=kc, kp=kp))
        c_in, h, w = c_out, PH, PW

    # FC weights: permute the first FC's rows from PyTorch flatten order (c, h, w)
    # to the kernel's (h, w, c) activation layout; later FCs are plain (in, out).
    c_last, h_last, w_last = c_in, h, w
    first = True
    for p in fc_params:
        Wf = p["W"].astype(jnp.float32)
        out_f = Wf.shape[1]
        if first:
            Wk = (Wf.reshape(c_last, h_last, w_last, out_f)
                    .transpose(1, 2, 0, 3)
                    .reshape(h_last, w_last * c_last, out_f))            # (PHl, PWl*Cl, out)
            first = False
        else:
            Wk = Wf
        operands += [Wk, p["b"].reshape(1, out_f)]

    out_dim = fc_params[-1]["W"].shape[1]
    scratch_shapes = [pltpu.VMEM((N * cp["PH"], cp["PW"] * cp["c_out"]), jnp.float32)
                      for cp in conv_plan]
    return conv_plan, operands, out_dim, scratch_shapes


# ----------------------------------------------------------------------------
# The single fused kernel (whole network per invocation)
# ----------------------------------------------------------------------------
def _build_kernel(N, conv_plan, n_fc, neg_slope):
    n_conv = len(conv_plan)
    n_in = 1 + 8 * n_conv + 2 * n_fc

    def lrelu(v):
        return jnp.where(v > 0, v, neg_slope * v)

    def kernel(*refs):
        x_ref = refs[0]
        out_ref = refs[n_in]
        act_refs = refs[n_in + 1:]          # one VMEM scratch per conv-block output

        idx = 1
        for li, cp in enumerate(conv_plan):
            (wbd_ref, bfull_ref, gamma_ref, beta_ref,
             sel_ref, selt_ref, ph_ref, pw_ref) = refs[idx: idx + 8]
            idx += 8
            c_in = cp["c_in"]
            H, OH, OW = cp["H"], cp["OH"], cp["OW"]
            PH = cp["PH"]
            kc, kp = cp["kc"], cp["kp"]
            in_ref = x_ref if li == 0 else act_refs[li - 1]

            # ---- conv (+bias): kc*kc shifted matmuls vs block-diagonal weights ----
            ys = []
            for n in range(N):
                acc = None
                for dh in range(kc):
                    for dw in range(kc):
                        blk = in_ref[pl.ds(n * H + dh, OH),
                                     pl.ds(dw * c_in, OW * c_in)]
                        t = jnp.dot(blk, wbd_ref[dh * kc + dw],
                                    preferred_element_type=jnp.float32)
                        acc = t if acc is None else acc + t
                ys.append(acc + bfull_ref[...])

            # ---- BatchNorm: training-mode batch stats, single pass (sum, sumsq) ----
            colsum = None
            colsumsq = None
            for y in ys:
                s = jnp.sum(y, axis=0, keepdims=True)
                q = jnp.sum(y * y, axis=0, keepdims=True)
                colsum = s if colsum is None else colsum + s
                colsumsq = q if colsumsq is None else colsumsq + q
            inv_cnt = 1.0 / float(N * OH * OW)
            mean = jnp.dot(colsum, sel_ref[...],
                           preferred_element_type=jnp.float32) * inv_cnt      # (1, co)
            ex2 = jnp.dot(colsumsq, sel_ref[...],
                          preferred_element_type=jnp.float32) * inv_cnt
            var = ex2 - mean * mean                                            # biased var
            scale_c = gamma_ref[...] * lax.rsqrt(var + EPS)
            shift_c = beta_ref[...] - mean * scale_c
            scale_full = jnp.dot(scale_c, selt_ref[...],
                                 preferred_element_type=jnp.float32)           # (1, OW*co)
            shift_full = jnp.dot(shift_c, selt_ref[...],
                                 preferred_element_type=jnp.float32)

            # ---- normalize + LeakyReLU + max-pool (selection matmuls + max) ----
            for n in range(N):
                z = lrelu(ys[n] * scale_full + shift_full)                     # (OH, OW*co)
                pooled_h = None
                for t in range(kp):
                    cand = jnp.dot(ph_ref[t], z, preferred_element_type=jnp.float32)
                    pooled_h = cand if pooled_h is None else jnp.maximum(pooled_h, cand)
                pooled = None
                for t in range(kp):
                    cand = jnp.dot(pooled_h, pw_ref[t],
                                   preferred_element_type=jnp.float32)
                    pooled = cand if pooled is None else jnp.maximum(pooled, cand)
                act_refs[li][pl.ds(n * PH, PH), :] = pooled                    # (PH, PW*co)

        # ---- fully-connected head (flatten handled by the (h, w*c) layout) ----
        fc_refs = refs[idx: idx + 2 * n_fc]
        last = conv_plan[-1]
        ph_last = last["PH"]
        d_ref = act_refs[n_conv - 1]
        for n in range(N):
            w3_ref, b_ref = fc_refs[0], fc_refs[1]
            v = None
            for hh in range(ph_last):
                row = d_ref[pl.ds(n * ph_last + hh, 1), :]                     # (1, PW*C)
                t = jnp.dot(row, w3_ref[hh], preferred_element_type=jnp.float32)
                v = t if v is None else v + t
            v = lrelu(v + b_ref[...])
            for f in range(1, n_fc):
                wf_ref, bf_ref = fc_refs[2 * f], fc_refs[2 * f + 1]
                v = lrelu(jnp.dot(v, wf_ref[...],
                                  preferred_element_type=jnp.float32) + bf_ref[...])
            out_ref[pl.ds(n, 1), :] = v

    return kernel


def forward_pallas(x, conv_params, fc_params, cfg):
    N, C, H, W = x.shape
    conv_plan, operands, out_dim, scratch_shapes = prepare_network(
        x.shape, conv_params, fc_params, cfg)
    # Layout plumbing (once): NCHW -> (N*H, W*C), channels minor so they sit on lanes.
    x2d = jnp.transpose(x, (0, 2, 3, 1)).reshape(N * H, W * C)
    kernel = _build_kernel(N, conv_plan, len(fc_params), cfg["negative_slope"])
    n_in = 1 + len(operands)
    return pl.pallas_call(
        kernel,
        out_shape=jax.ShapeDtypeStruct((N, out_dim), jnp.float32),
        in_specs=[pl.BlockSpec(memory_space=pltpu.MemorySpace.VMEM)] * n_in,
        out_specs=pl.BlockSpec(memory_space=pltpu.MemorySpace.VMEM),
        scratch_shapes=scratch_shapes,
    )(x2d, *operands)


# ----------------------------------------------------------------------------
# Pure-JAX reference (for sanity checking the Pallas path)
# ----------------------------------------------------------------------------
def forward_reference(x, conv_params, fc_params, cfg):
    neg = cfg["negative_slope"]
    kc, sc = cfg["kernelSizeOfConvLayers"], cfg["strideOfConvLayers"]
    kp, sp = cfg["kernelSizeOfPoolingLayers"], cfg["strideOfPoolingLayers"]

    def lrelu(v):
        return jnp.where(v > 0, v, neg * v)

    for p in conv_params:
        y = lax.conv_general_dilated(
            x, p["W"], window_strides=(sc, sc), padding="VALID",
            dimension_numbers=("NCHW", "OIHW", "NCHW"))
        y = y + p["b"].reshape(1, -1, 1, 1)
        mean = jnp.mean(y, axis=(0, 2, 3), keepdims=True)
        var = jnp.mean((y - mean) ** 2, axis=(0, 2, 3), keepdims=True)
        y = (y - mean) * lax.rsqrt(var + EPS)
        y = y * p["gamma"].reshape(1, -1, 1, 1) + p["beta"].reshape(1, -1, 1, 1)
        y = lrelu(y)
        x = lax.reduce_window(y, -jnp.inf, lax.max,
                              (1, 1, kp, kp), (1, 1, sp, sp), "VALID")
    x = x.reshape(x.shape[0], -1)
    for p in fc_params:
        x = lrelu(x @ p["W"] + p["b"])
    return x


# ----------------------------------------------------------------------------
if __name__ == "__main__":
    input_shape = (2, 4, 16, 16)  # NCHW, 4-D -> TWO_D_CONV branch
    key = jax.random.PRNGKey(0)
    key, kx = jax.random.split(key)
    x = jax.random.normal(kx, input_shape, jnp.float32)

    conv_params, fc_params = build_params(input_shape, CONFIG, key)

    out = forward_pallas(x, conv_params, fc_params, CONFIG)
    out = jax.block_until_ready(out)

    ref = forward_reference(x, conv_params, fc_params, CONFIG)
    ref = jax.block_until_ready(ref)

    assert out.shape == (2, 8), out.shape
    max_err = float(jnp.max(jnp.abs(out - ref)))
    assert jnp.allclose(out, ref, atol=1e-3, rtol=1e-3), f"max abs err = {max_err}"

    print("KERNEL_OK")
</pallas_src>

<mosaic_0001>
module attributes {stable_mosaic.version = 11 : i64} {
  func.func @kernel(%arg0: memref<32x64xf32, #tpu.memory_space<vmem>>, %arg1: memref<9x56x112xf32, #tpu.memory_space<vmem>>, %arg2: memref<1x112xf32, #tpu.memory_space<vmem>>, %arg3: memref<1x8xf32, #tpu.memory_space<vmem>>, %arg4: memref<1x8xf32, #tpu.memory_space<vmem>>, %arg5: memref<112x8xf32, #tpu.memory_space<vmem>>, %arg6: memref<8x112xf32, #tpu.memory_space<vmem>>, %arg7: memref<2x7x14xf32, #tpu.memory_space<vmem>>, %arg8: memref<2x112x56xf32, #tpu.memory_space<vmem>>, %arg9: memref<9x40x80xf32, #tpu.memory_space<vmem>>, %arg10: memref<1x80xf32, #tpu.memory_space<vmem>>, %arg11: memref<1x16xf32, #tpu.memory_space<vmem>>, %arg12: memref<1x16xf32, #tpu.memory_space<vmem>>, %arg13: memref<80x16xf32, #tpu.memory_space<vmem>>, %arg14: memref<16x80xf32, #tpu.memory_space<vmem>>, %arg15: memref<2x2x5xf32, #tpu.memory_space<vmem>>, %arg16: memref<2x80x32xf32, #tpu.memory_space<vmem>>, %arg17: memref<2x32x32xf32, #tpu.memory_space<vmem>>, %arg18: memref<1x32xf32, #tpu.memory_space<vmem>>, %arg19: memref<32x8xf32, #tpu.memory_space<vmem>>, %arg20: memref<1x8xf32, #tpu.memory_space<vmem>>, %arg21: memref<2x8xf32, #tpu.memory_space<vmem>>, %arg22: memref<14x56xf32, #tpu.memory_space<vmem>>, %arg23: memref<4x32xf32, #tpu.memory_space<vmem>>) attributes {dimension_semantics = [], scalar_prefetch = 0 : i64, scratch_operands = 2 : i64, tpu.core_type = #tpu.core_type<tc>} {
    %c0 = arith.constant 0 : index
    %c0_0 = arith.constant 0 : index
    %0 = vector.load %arg0[%c0, %c0_0] : memref<32x64xf32, #tpu.memory_space<vmem>>, vector<14x56xf32>
    %c0_1 = arith.constant 0 : index
    %c0_2 = arith.constant 0 : index
    %c0_3 = arith.constant 0 : index
    %1 = vector.load %arg1[%c0_1, %c0_2, %c0_3] : memref<9x56x112xf32, #tpu.memory_space<vmem>>, vector<1x56x112xf32>
    %2 = vector.shape_cast %1 : vector<1x56x112xf32> to vector<56x112xf32>
    %cst = arith.constant dense<0.000000e+00> : vector<14x112xf32>
    %3 = tpu.matmul %0, %2, %cst {dimension_numbers = #tpu.dot_dimension_numbers<[1], [0], [0], [1], [0, 0, 1, 1], [], []>} : vector<14x56xf32>, vector<56x112xf32>, vector<14x112xf32> -> vector<14x112xf32>
    %c0_4 = arith.constant 0 : index
    %c4 = arith.constant 4 : index
    %4 = vector.load %arg0[%c0_4, %c4] : memref<32x64xf32, #tpu.memory_space<vmem>>, vector<14x56xf32>
    %c1 = arith.constant 1 : index
    %c0_5 = arith.constant 0 : index
    %c0_6 = arith.constant 0 : index
    %5 = vector.load %arg1[%c1, %c0_5, %c0_6] : memref<9x56x112xf32, #tpu.memory_space<vmem>>, vector<1x56x112xf32>
    %6 = vector.shape_cast %5 : vector<1x56x112xf32> to vector<56x112xf32>
    %cst_7 = arith.constant dense<0.000000e+00> : vector<14x112xf32>
    %7 = tpu.matmul %4, %6, %cst_7 {dimension_numbers = #tpu.dot_dimension_numbers<[1], [0], [0], [1], [0, 0, 1, 1], [], []>} : vector<14x56xf32>, vector<56x112xf32>, vector<14x112xf32> -> vector<14x112xf32>
    %8 = arith.addf %3, %7 : vector<14x112xf32>
    %c0_8 = arith.constant 0 : index
    %c8 = arith.constant 8 : index
    %9 = vector.load %arg0[%c0_8, %c8] : memref<32x64xf32, #tpu.memory_space<vmem>>, vector<14x56xf32>
    %c2 = arith.constant 2 : index
    %c0_9 = arith.constant 0 : index
    %c0_10 = arith.constant 0 : index
    %10 = vector.load %arg1[%c2, %c0_9, %c0_10] : memref<9x56x112xf32, #tpu.memory_space<vmem>>, vector<1x56x112xf32>
    %11 = vector.shape_cast %10 : vector<1x56x112xf32> to vector<56x112xf32>
    %cst_11 = arith.constant dense<0.000000e+00> : vector<14x112xf32>
    %12 = tpu.matmul %9, %11, %cst_11 {dimension_numbers = #tpu.dot_dimension_numbers<[1], [0], [0], [1], [0, 0, 1, 1], [], []>} : vector<14x56xf32>, vector<56x112xf32>, vector<14x112xf32> -> vector<14x112xf32>
    %13 = arith.addf %8, %12 : vector<14x112xf32>
    %c1_12 = arith.constant 1 : index
    %c0_13 = arith.constant 0 : index
    %14 = vector.load %arg0[%c1_12, %c0_13] : memref<32x64xf32, #tpu.memory_space<vmem>>, vector<14x56xf32>
    %c3 = arith.constant 3 : index
    %c0_14 = arith.constant 0 : index
    %c0_15 = arith.constant 0 : index
    %15 = vector.load %arg1[%c3, %c0_14, %c0_15] : memref<9x56x112xf32, #tpu.memory_space<vmem>>, vector<1x56x112xf32>
    %16 = vector.shape_cast %15 : vector<1x56x112xf32> to vector<56x112xf32>
    %cst_16 = arith.constant dense<0.000000e+00> : vector<14x112xf32>
    %17 = tpu.matmul %14, %16, %cst_16 {dimension_numbers = #tpu.dot_dimension_numbers<[1], [0], [0], [1], [0, 0, 1, 1], [], []>} : vector<14x56xf32>, vector<56x112xf32>, vector<14x112xf32> -> vector<14x112xf32>
    %18 = arith.addf %13, %17 : vector<14x112xf32>
    %c1_17 = arith.constant 1 : index
    %c4_18 = arith.constant 4 : index
    %19 = vector.load %arg0[%c1_17, %c4_18] : memref<32x64xf32, #tpu.memory_space<vmem>>, vector<14x56xf32>
    %c4_19 = arith.constant 4 : index
    %c0_20 = arith.constant 0 : index
    %c0_21 = arith.constant 0 : index
    %20 = vector.load %arg1[%c4_19, %c0_20, %c0_21] : memref<9x56x112xf32, #tpu.memory_space<vmem>>, vector<1x56x112xf32>
    %21 = vector.shape_cast %20 : vector<1x56x112xf32> to vector<56x112xf32>
    %cst_22 = arith.constant dense<0.000000e+00> : vector<14x112xf32>
    %22 = tpu.matmul %19, %21, %cst_22 {dimension_numbers = #tpu.dot_dimension_numbers<[1], [0], [0], [1], [0, 0, 1, 1], [], []>} : vector<14x56xf32>, vector<56x112xf32>, vector<14x112xf32> -> vector<14x112xf32>
    %23 = arith.addf %18, %22 : vector<14x112xf32>
    %c1_23 = arith.constant 1 : index
    %c8_24 = arith.constant 8 : index
    %24 = vector.load %arg0[%c1_23, %c8_24] : memref<32x64xf32, #tpu.memory_space<vmem>>, vector<14x56xf32>
    %c5 = arith.constant 5 : index
    %c0_25 = arith.constant 0 : index
    %c0_26 = arith.constant 0 : index
    %25 = vector.load %arg1[%c5, %c0_25, %c0_26] : memref<9x56x112xf32, #tpu.memory_space<vmem>>, vector<1x56x112xf32>
    %26 = vector.shape_cast %25 : vector<1x56x112xf32> to vector<56x112xf32>
    %cst_27 = arith.constant dense<0.000000e+00> : vector<14x112xf32>
    %27 = tpu.matmul %24, %26, %cst_27 {dimension_numbers = #tpu.dot_dimension_numbers<[1], [0], [0], [1], [0, 0, 1, 1], [], []>} : vector<14x56xf32>, vector<56x112xf32>, vector<14x112xf32> -> vector<14x112xf32>
    %28 = arith.addf %23, %27 : vector<14x112xf32>
    %c2_28 = arith.constant 2 : index
    %c0_29 = arith.constant 0 : index
    %29 = vector.load %arg0[%c2_28, %c0_29] : memref<32x64xf32, #tpu.memory_space<vmem>>, vector<14x56xf32>
    %c6 = arith.constant 6 : index
    %c0_30 = arith.constant 0 : index
    %c0_31 = arith.constant 0 : index
    %30 = vector.load %arg1[%c6, %c0_30, %c0_31] : memref<9x56x112xf32, #tpu.memory_space<vmem>>, vector<1x56x112xf32>
    %31 = vector.shape_cast %30 : vector<1x56x112xf32> to vector<56x112xf32>
    %cst_32 = arith.constant dense<0.000000e+00> : vector<14x112xf32>
    %32 = tpu.matmul %29, %31, %cst_32 {dimension_numbers = #tpu.dot_dimension_numbers<[1], [0], [0], [1], [0, 0, 1, 1], [], []>} : vector<14x56xf32>, vector<56x112xf32>, vector<14x112xf32> -> vector<14x112xf32>
    %33 = arith.addf %28, %32 : vector<14x112xf32>
    %c2_33 = arith.constant 2 : index
    %c4_34 = arith.constant 4 : index
    %34 = vector.load %arg0[%c2_33, %c4_34] : memref<32x64xf32, #tpu.memory_space<vmem>>, vector<14x56xf32>
    %c7 = arith.constant 7 : index
    %c0_35 = arith.constant 0 : index
    %c0_36 = arith.constant 0 : index
    %35 = vector.load %arg1[%c7, %c0_35, %c0_36] : memref<9x56x112xf32, #tpu.memory_space<vmem>>, vector<1x56x112xf32>
    %36 = vector.shape_cast %35 : vector<1x56x112xf32> to vector<56x112xf32>
    %cst_37 = arith.constant dense<0.000000e+00> : vector<14x112xf32>
    %37 = tpu.matmul %34, %36, %cst_37 {dimension_numbers = #tpu.dot_dimension_numbers<[1], [0], [0], [1], [0, 0, 1, 1], [], []>} : vector<14x56xf32>, vector<56x112xf32>, vector<14x112xf32> -> vector<14x112xf32>
    %38 = arith.addf %33, %37 : vector<14x112xf32>
    %c2_38 = arith.constant 2 : index
    %c8_39 = arith.constant 8 : index
    %39 = vector.load %arg0[%c2_38, %c8_39] : memref<32x64xf32, #tpu.memory_space<vmem>>, vector<14x56xf32>
    %c8_40 = arith.constant 8 : index
    %c0_41 = arith.constant 0 : index
    %c0_42 = arith.constant 0 : index
    %40 = vector.load %arg1[%c8_40, %c0_41, %c0_42] : memref<9x56x112xf32, #tpu.memory_space<vmem>>, vector<1x56x112xf32>
    %41 = vector.shape_cast %40 : vector<1x56x112xf32> to vector<56x112xf32>
    %cst_43 = arith.constant dense<0.000000e+00> : vector<14x112xf32>
    %42 = tpu.matmul %39, %41, %cst_43 {dimension_numbers = #tpu.dot_dimension_numbers<[1], [0], [0], [1], [0, 0, 1, 1], [], []>} : vector<14x56xf32>, vector<56x112xf32>, vector<14x112xf32> -> vector<14x112xf32>
    %43 = arith.addf %38, %42 : vector<14x112xf32>
    %c0_44 = arith.constant 0 : index
    %c0_45 = arith.constant 0 : index
    %44 = vector.load %arg2[%c0_44, %c0_45] : memref<1x112xf32, #tpu.memory_space<vmem>>, vector<1x112xf32>
    %45 = vector.broadcast %44 : vector<1x112xf32> to vector<14x112xf32>
    %46 = arith.addf %43, %45 : vector<14x112xf32>
    %c16 = arith.constant 16 : index
    %c0_46 = arith.constant 0 : index
    %47 = vector.load %arg0[%c16, %c0_46] : memref<32x64xf32, #tpu.memory_space<vmem>>, vector<14x56xf32>
    %c0_47 = arith.constant 0 : index
    %c0_48 = arith.constant 0 : index
    %c0_49 = arith.constant 0 : index
    %48 = vector.load %arg1[%c0_47, %c0_48, %c0_49] : memref<9x56x112xf32, #tpu.memory_space<vmem>>, vector<1x56x112xf32>
    %49 = vector.shape_cast %48 : vector<1x56x112xf32> to vector<56x112xf32>
    %cst_50 = arith.constant dense<0.000000e+00> : vector<14x112xf32>
    %50 = tpu.matmul %47, %49, %cst_50 {dimension_numbers = #tpu.dot_dimension_numbers<[1], [0], [0], [1], [0, 0, 1, 1], [], []>} : vector<14x56xf32>, vector<56x112xf32>, vector<14x112xf32> -> vector<14x112xf32>
    %c16_51 = arith.constant 16 : index
    %c4_52 = arith.constant 4 : index
    %51 = vector.load %arg0[%c16_51, %c4_52] : memref<32x64xf32, #tpu.memory_space<vmem>>, vector<14x56xf32>
    %c1_53 = arith.constant 1 : index
    %c0_54 = arith.constant 0 : index
    %c0_55 = arith.constant 0 : index
    %52 = vector.load %arg1[%c1_53, %c0_54, %c0_55] : memref<9x56x112xf32, #tpu.memory_space<vmem>>, vector<1x56x112xf32>
    %53 = vector.shape_cast %52 : vector<1x56x112xf32> to vector<56x112xf32>
    %cst_56 = arith.constant dense<0.000000e+00> : vector<14x112xf32>
    %54 = tpu.matmul %51, %53, %cst_56 {dimension_numbers = #tpu.dot_dimension_numbers<[1], [0], [0], [1], [0, 0, 1, 1], [], []>} : vector<14x56xf32>, vector<56x112xf32>, vector<14x112xf32> -> vector<14x112xf32>
    %55 = arith.addf %50, %54 : vector<14x112xf32>
    %c16_57 = arith.constant 16 : index
    %c8_58 = arith.constant 8 : index
    %56 = vector.load %arg0[%c16_57, %c8_58] : memref<32x64xf32, #tpu.memory_space<vmem>>, vector<14x56xf32>
    %c2_59 = arith.constant 2 : index
    %c0_60 = arith.constant 0 : index
    %c0_61 = arith.constant 0 : index
    %57 = vector.load %arg1[%c2_59, %c0_60, %c0_61] : memref<9x56x112xf32, #tpu.memory_space<vmem>>, vector<1x56x112xf32>
    %58 = vector.shape_cast %57 : vector<1x56x112xf32> to vector<56x112xf32>
    %cst_62 = arith.constant dense<0.000000e+00> : vector<14x112xf32>
    %59 = tpu.matmul %56, %58, %cst_62 {dimension_numbers = #tpu.dot_dimension_numbers<[1], [0], [0], [1], [0, 0, 1, 1], [], []>} : vector<14x56xf32>, vector<56x112xf32>, vector<14x112xf32> -> vector<14x112xf32>
    %60 = arith.addf %55, %59 : vector<14x112xf32>
    %c17 = arith.constant 17 : index
    %c0_63 = arith.constant 0 : index
    %61 = vector.load %arg0[%c17, %c0_63] : memref<32x64xf32, #tpu.memory_space<vmem>>, vector<14x56xf32>
    %c3_64 = arith.constant 3 : index
    %c0_65 = arith.constant 0 : index
    %c0_66 = arith.constant 0 : index
    %62 = vector.load %arg1[%c3_64, %c0_65, %c0_66] : memref<9x56x112xf32, #tpu.memory_space<vmem>>, vector<1x56x112xf32>
    %63 = vector.shape_cast %62 : vector<1x56x112xf32> to vector<56x112xf32>
    %cst_67 = arith.constant dense<0.000000e+00> : vector<14x112xf32>
    %64 = tpu.matmul %61, %63, %cst_67 {dimension_numbers = #tpu.dot_dimension_numbers<[1], [0], [0], [1], [0, 0, 1, 1], [], []>} : vector<14x56xf32>, vector<56x112xf32>, vector<14x112xf32> -> vector<14x112xf32>
    %65 = arith.addf %60, %64 : vector<14x112xf32>
    %c17_68 = arith.constant 17 : index
    %c4_69 = arith.constant 4 : index
    %66 = vector.load %arg0[%c17_68, %c4_69] : memref<32x64xf32, #tpu.memory_space<vmem>>, vector<14x56xf32>
    %c4_70 = arith.constant 4 : index
    %c0_71 = arith.constant 0 : index
    %c0_72 = arith.constant 0 : index
    %67 = vector.load %arg1[%c4_70, %c0_71, %c0_72] : memref<9x56x112xf32, #tpu.memory_space<vmem>>, vector<1x56x112xf32>
    %68 = vector.shape_cast %67 : vector<1x56x112xf32> to vector<56x112xf32>
    %cst_73 = arith.constant dense<0.000000e+00> : vector<14x112xf32>
    %69 = tpu.matmul %66, %68, %cst_73 {dimension_numbers = #tpu.dot_dimension_numbers<[1], [0], [0], [1], [0, 0, 1, 1], [], []>} : vector<14x56xf32>, vector<56x112xf32>, vector<14x112xf32> -> vector<14x112xf32>
    %70 = arith.addf %65, %69 : vector<14x112xf32>
    %c17_74 = arith.constant 17 : index
    %c8_75 = arith.constant 8 : index
    %71 = vector.load %arg0[%c17_74, %c8_75] : memref<32x64xf32, #tpu.memory_space<vmem>>, vector<14x56xf32>
    %c5_76 = arith.constant 5 : index
    %c0_77 = arith.constant 0 : index
    %c0_78 = arith.constant 0 : index
    %72 = vector.load %arg1[%c5_76, %c0_77, %c0_78] : memref<9x56x112xf32, #tpu.memory_space<vmem>>, vector<1x56x112xf32>
    %73 = vector.shape_cast %72 : vector<1x56x112xf32> to vector<56x112xf32>
    %cst_79 = arith.constant dense<0.000000e+00> : vector<14x112xf32>
    %74 = tpu.matmul %71, %73, %cst_79 {dimension_numbers = #tpu.dot_dimension_numbers<[1], [0], [0], [1], [0, 0, 1, 1], [], []>} : vector<14x56xf32>, vector<56x112xf32>, vector<14x112xf32> -> vector<14x112xf32>
    %75 = arith.addf %70, %74 : vector<14x112xf32>
    %c18 = arith.constant 18 : index
    %c0_80 = arith.constant 0 : index
    %76 = vector.load %arg0[%c18, %c0_80] : memref<32x64xf32, #tpu.memory_space<vmem>>, vector<14x56xf32>
    %c6_81 = arith.constant 6 : index
    %c0_82 = arith.constant 0 : index
    %c0_83 = arith.constant 0 : index
    %77 = vector.load %arg1[%c6_81, %c0_82, %c0_83] : memref<9x56x112xf32, #tpu.memory_space<vmem>>, vector<1x56x112xf32>
    %78 = vector.shape_cast %77 : vector<1x56x112xf32> to vector<56x112xf32>
    %cst_84 = arith.constant dense<0.000000e+00> : vector<14x112xf32>
    %79 = tpu.matmul %76, %78, %cst_84 {dimension_numbers = #tpu.dot_dimension_numbers<[1], [0], [0], [1], [0, 0, 1, 1], [], []>} : vector<14x56xf32>, vector<56x112xf32>, vector<14x112xf32> -> vector<14x112xf32>
    %80 = arith.addf %75, %79 : vector<14x112xf32>
    %c18_85 = arith.constant 18 : index
    %c4_86 = arith.constant 4 : index
    %81 = vector.load %arg0[%c18_85, %c4_86] : memref<32x64xf32, #tpu.memory_space<vmem>>, vector<14x56xf32>
    %c7_87 = arith.constant 7 : index
    %c0_88 = arith.constant 0 : index
    %c0_89 = arith.constant 0 : index
    %82 = vector.load %arg1[%c7_87, %c0_88, %c0_89] : memref<9x56x112xf32, #tpu.memory_space<vmem>>, vector<1x56x112xf32>
    %83 = vector.shape_cast %82 : vector<1x56x112xf32> to vector<56x112xf32>
    %cst_90 = arith.constant dense<0.000000e+00> : vector<14x112xf32>
    %84 = tpu.matmul %81, %83, %cst_90 {dimension_numbers = #tpu.dot_dimension_numbers<[1], [0], [0], [1], [0, 0, 1, 1], [], []>} : vector<14x56xf32>, vector<56x112xf32>, vector<14x112xf32> -> vector<14x112xf32>
    %85 = arith.addf %80, %84 : vector<14x112xf32>
    %c18_91 = arith.constant 18 : index
    %c8_92 = arith.constant 8 : index
    %86 = vector.load %arg0[%c18_91, %c8_92] : memref<32x64xf32, #tpu.memory_space<vmem>>, vector<14x56xf32>
    %c8_93 = arith.constant 8 : index
    %c0_94 = arith.constant 0 : index
    %c0_95 = arith.constant 0 : index
    %87 = vector.load %arg1[%c8_93, %c0_94, %c0_95] : memref<9x56x112xf32, #tpu.memory_space<vmem>>, vector<1x56x112xf32>
    %88 = vector.shape_cast %87 : vector<1x56x112xf32> to vector<56x112xf32>
    %cst_96 = arith.constant dense<0.000000e+00> : vector<14x112xf32>
    %89 = tpu.matmul %86, %88, %cst_96 {dimension_numbers = #tpu.dot_dimension_numbers<[1], [0], [0], [1], [0, 0, 1, 1], [], []>} : vector<14x56xf32>, vector<56x112xf32>, vector<14x112xf32> -> vector<14x112xf32>
    %90 = arith.addf %85, %89 : vector<14x112xf32>
    %c0_97 = arith.constant 0 : index
    %c0_98 = arith.constant 0 : index
    %91 = vector.load %arg2[%c0_97, %c0_98] : memref<1x112xf32, #tpu.memory_space<vmem>>, vector<1x112xf32>
    %92 = vector.broadcast %91 : vector<1x112xf32> to vector<14x112xf32>
    %93 = arith.addf %90, %92 : vector<14x112xf32>
    %cst_99 = arith.constant dense<0.000000e+00> : vector<112xf32>
    %94 = vector.multi_reduction <add>, %46, %cst_99 [0] : vector<14x112xf32> to vector<112xf32>
    %95 = vector.shape_cast %94 : vector<112xf32> to vector<1x112xf32>
    %96 = arith.mulf %46, %46 : vector<14x112xf32>
    %cst_100 = arith.constant dense<0.000000e+00> : vector<112xf32>
    %97 = vector.multi_reduction <add>, %96, %cst_100 [0] : vector<14x112xf32> to vector<112xf32>
    %98 = vector.shape_cast %97 : vector<112xf32> to vector<1x112xf32>
    %cst_101 = arith.constant dense<0.000000e+00> : vector<112xf32>
    %99 = vector.multi_reduction <add>, %93, %cst_101 [0] : vector<14x112xf32> to vector<112xf32>
    %100 = vector.shape_cast %99 : vector<112xf32> to vector<1x112xf32>
    %101 = arith.mulf %93, %93 : vector<14x112xf32>
    %cst_102 = arith.constant dense<0.000000e+00> : vector<112xf32>
    %102 = vector.multi_reduction <add>, %101, %cst_102 [0] : vector<14x112xf32> to vector<112xf32>
    %103 = vector.shape_cast %102 : vector<112xf32> to vector<1x112xf32>
    %104 = arith.addf %95, %100 : vector<1x112xf32>
    %105 = arith.addf %98, %103 : vector<1x112xf32>
    %c0_103 = arith.constant 0 : index
    %c0_104 = arith.constant 0 : index
    %106 = vector.load %arg5[%c0_103, %c0_104] : memref<112x8xf32, #tpu.memory_space<vmem>>, vector<112x8xf32>
    %cst_105 = arith.constant dense<0.000000e+00> : vector<1x8xf32>
    %107 = tpu.matmul %104, %106, %cst_105 {dimension_numbers = #tpu.dot_dimension_numbers<[1], [0], [0], [1], [0, 0, 1, 1], [], []>} : vector<1x112xf32>, vector<112x8xf32>, vector<1x8xf32> -> vector<1x8xf32>
    %cst_106 = arith.constant 0.00255102036 : f32
    %108 = vector.broadcast %cst_106 : f32 to vector<1x8xf32>
    %109 = arith.mulf %107, %108 : vector<1x8xf32>
    %c0_107 = arith.constant 0 : index
    %c0_108 = arith.constant 0 : index
    %110 = vector.load %arg5[%c0_107, %c0_108] : memref<112x8xf32, #tpu.memory_space<vmem>>, vector<112x8xf32>
    %cst_109 = arith.constant dense<0.000000e+00> : vector<1x8xf32>
    %111 = tpu.matmul %105, %110, %cst_109 {dimension_numbers = #tpu.dot_dimension_numbers<[1], [0], [0], [1], [0, 0, 1, 1], [], []>} : vector<1x112xf32>, vector<112x8xf32>, vector<1x8xf32> -> vector<1x8xf32>
    %cst_110 = arith.constant 0.00255102036 : f32
    %112 = vector.broadcast %cst_110 : f32 to vector<1x8xf32>
    %113 = arith.mulf %111, %112 : vector<1x8xf32>
    %114 = arith.mulf %109, %109 : vector<1x8xf32>
    %115 = arith.subf %113, %114 : vector<1x8xf32>
    %c0_111 = arith.constant 0 : index
    %c0_112 = arith.constant 0 : index
    %116 = vector.load %arg3[%c0_111, %c0_112] : memref<1x8xf32, #tpu.memory_space<vmem>>, vector<1x8xf32>
    %cst_113 = arith.constant 9.99999974E-6 : f32
    %117 = vector.broadcast %cst_113 : f32 to vector<1x8xf32>
    %118 = arith.addf %115, %117 : vector<1x8xf32>
    %119 = math.rsqrt %118 : vector<1x8xf32>
    %120 = arith.mulf %116, %119 : vector<1x8xf32>
    %c0_114 = arith.constant 0 : index
    %c0_115 = arith.constant 0 : index
    %121 = vector.load %arg4[%c0_114, %c0_115] : memref<1x8xf32, #tpu.memory_space<vmem>>, vector<1x8xf32>
    %122 = arith.mulf %109, %120 : vector<1x8xf32>
    %123 = arith.subf %121, %122 : vector<1x8xf32>
    %c0_116 = arith.constant 0 : index
    %c0_117 = arith.constant 0 : index
    %124 = vector.load %arg6[%c0_116, %c0_117] : memref<8x112xf32, #tpu.memory_space<vmem>>, vector<8x112xf32>
    %cst_118 = arith.constant dense<0.000000e+00> : vector<1x112xf32>
    %125 = tpu.matmul %120, %124, %cst_118 {dimension_numbers = #tpu.dot_dimension_numbers<[1], [0], [0], [1], [0, 0, 1, 1], [], []>} : vector<1x8xf32>, vector<8x112xf32>, vector<1x112xf32> -> vector<1x112xf32>
    %c0_119 = arith.constant 0 : index
    %c0_120 = arith.constant 0 : index
    %126 = vector.load %arg6[%c0_119, %c0_120] : memref<8x112xf32, #tpu.memory_space<vmem>>, vector<8x112xf32>
    %cst_121 = arith.constant dense<0.000000e+00> : vector<1x112xf32>
    %127 = tpu.matmul %123, %126, %cst_121 {dimension_numbers = #tpu.dot_dimension_numbers<[1], [0], [0], [1], [0, 0, 1, 1], [], []>} : vector<1x8xf32>, vector<8x112xf32>, vector<1x112xf32> -> vector<1x112xf32>
    %128 = vector.broadcast %125 : vector<1x112xf32> to vector<14x112xf32>
    %129 = arith.mulf %46, %128 : vector<14x112xf32>
    %130 = vector.broadcast %127 : vector<1x112xf32> to vector<14x112xf32>
    %131 = arith.addf %129, %130 : vector<14x112xf32>
    %cst_122 = arith.constant 0.000000e+00 : f32
    %132 = vector.broadcast %cst_122 : f32 to vector<14x112xf32>
    %133 = arith.cmpf ogt, %131, %132 : vector<14x112xf32>
    %cst_123 = arith.constant 0.00999999977 : f32
    %134 = vector.broadcast %cst_123 : f32 to vector<14x112xf32>
    %135 = arith.mulf %134, %131 : vector<14x112xf32>
    %136 = arith.select %133, %131, %135 : vector<14x112xi1>, vector<14x112xf32>
    %c0_124 = arith.constant 0 : index
    %c0_125 = arith.constant 0 : index
    %c0_126 = arith.constant 0 : index
    %137 = vector.load %arg7[%c0_124, %c0_125, %c0_126] : memref<2x7x14xf32, #tpu.memory_space<vmem>>, vector<1x7x14xf32>
    %138 = vector.shape_cast %137 : vector<1x7x14xf32> to vector<7x14xf32>
    %cst_127 = arith.constant dense<0.000000e+00> : vector<7x112xf32>
    %139 = tpu.matmul %138, %136, %cst_127 {dimension_numbers = #tpu.dot_dimension_numbers<[1], [0], [0], [1], [0, 0, 1, 1], [], []>} : vector<7x14xf32>, vector<14x112xf32>, vector<7x112xf32> -> vector<7x112xf32>
    %c1_128 = arith.constant 1 : index
    %c0_129 = arith.constant 0 : index
    %c0_130 = arith.constant 0 : index
    %140 = vector.load %arg7[%c1_128, %c0_129, %c0_130] : memref<2x7x14xf32, #tpu.memory_space<vmem>>, vector<1x7x14xf32>
    %141 = vector.shape_cast %140 : vector<1x7x14xf32> to vector<7x14xf32>
    %cst_131 = arith.constant dense<0.000000e+00> : vector<7x112xf32>
    %142 = tpu.matmul %141, %136, %cst_131 {dimension_numbers = #tpu.dot_dimension_numbers<[1], [0], [0], [1], [0, 0, 1, 1], [], []>} : vector<7x14xf32>, vector<14x112xf32>, vector<7x112xf32> -> vector<7x112xf32>
    %143 = arith.maximumf %139, %142 : vector<7x112xf32>
    %c0_132 = arith.constant 0 : index
    %c0_133 = arith.constant 0 : index
    %c0_134 = arith.constant 0 : index
    %144 = vector.load %arg8[%c0_132, %c0_133, %c0_134] : memref<2x112x56xf32, #tpu.memory_space<vmem>>, vector<1x112x56xf32>
    %145 = vector.shape_cast %144 : vector<1x112x56xf32> to vector<112x56xf32>
    %cst_135 = arith.constant dense<0.000000e+00> : vector<7x56xf32>
    %146 = tpu.matmul %143, %145, %cst_135 {dimension_numbers = #tpu.dot_dimension_numbers<[1], [0], [0], [1], [0, 0, 1, 1], [], []>} : vector<7x112xf32>, vector<112x56xf32>, vector<7x56xf32> -> vector<7x56xf32>
    %c1_136 = arith.constant 1 : index
    %c0_137 = arith.constant 0 : index
    %c0_138 = arith.constant 0 : index
    %147 = vector.load %arg8[%c1_136, %c0_137, %c0_138] : memref<2x112x56xf32, #tpu.memory_space<vmem>>, vector<1x112x56xf32>
    %148 = vector.shape_cast %147 : vector<1x112x56xf32> to vector<112x56xf32>
    %cst_139 = arith.constant dense<0.000000e+00> : vector<7x56xf32>
    %149 = tpu.matmul %143, %148, %cst_139 {dimension_numbers = #tpu.dot_dimension_numbers<[1], [0], [0], [1], [0, 0, 1, 1], [], []>} : vector<7x112xf32>, vector<112x56xf32>, vector<7x56xf32> -> vector<7x56xf32>
    %150 = arith.maximumf %146, %149 : vector<7x56xf32>
    %c0_140 = arith.constant 0 : index
    %c0_141 = arith.constant 0 : index
    %151 = vector.load %arg22[%c0_140, %c0_141] : memref<14x56xf32, #tpu.memory_space<vmem>>, vector<7x56xf32>
    tpu.vector_store %arg22[%c0_140, %c0_141], %150 {strides = array<i32>} : memref<14x56xf32, #tpu.memory_space<vmem>>, vector<7x56xf32>,
    %152 = vector.broadcast %125 : vector<1x112xf32> to vector<14x112xf32>
    %153 = arith.mulf %93, %152 : vector<14x112xf32>
    %154 = vector.broadcast %127 : vector<1x112xf32> to vector<14x112xf32>
    %155 = arith.addf %153, %154 : vector<14x112xf32>
    %cst_142 = arith.constant 0.000000e+00 : f32
    %156 = vector.broadcast %cst_142 : f32 to vector<14x112xf32>
    %157 = arith.cmpf ogt, %155, %156 : vector<14x112xf32>
    %cst_143 = arith.constant 0.00999999977 : f32
    %158 = vector.broadcast %cst_143 : f32 to vector<14x112xf32>
    %159 = arith.mulf %158, %155 : vector<14x112xf32>
    %160 = arith.select %157, %155, %159 : vector<14x112xi1>, vector<14x112xf32>
    %c0_144 = arith.constant 0 : index
    %c0_145 = arith.constant 0 : index
    %c0_146 = arith.constant 0 : index
    %161 = vector.load %arg7[%c0_144, %c0_145, %c0_146] : memref<2x7x14xf32, #tpu.memory_space<vmem>>, vector<1x7x14xf32>
    %162 = vector.shape_cast %161 : vector<1x7x14xf32> to vector<7x14xf32>
    %cst_147 = arith.constant dense<0.000000e+00> : vector<7x112xf32>
    %163 = tpu.matmul %162, %160, %cst_147 {dimension_numbers = #tpu.dot_dimension_numbers<[1], [0], [0], [1], [0, 0, 1, 1], [], []>} : vector<7x14xf32>, vector<14x112xf32>, vector<7x112xf32> -> vector<7x112xf32>
    %c1_148 = arith.constant 1 : index
    %c0_149 = arith.constant 0 : index
    %c0_150 = arith.constant 0 : index
    %164 = vector.load %arg7[%c1_148, %c0_149, %c0_150] : memref<2x7x14xf32, #tpu.memory_space<vmem>>, vector<1x7x14xf32>
    %165 = vector.shape_cast %164 : vector<1x7x14xf32> to vector<7x14xf32>
    %cst_151 = arith.constant dense<0.000000e+00> : vector<7x112xf32>
    %166 = tpu.matmul %165, %160, %cst_151 {dimension_numbers = #tpu.dot_dimension_numbers<[1], [0], [0], [1], [0, 0, 1, 1], [], []>} : vector<7x14xf32>, vector<14x112xf32>, vector<7x112xf32> -> vector<7x112xf32>
    %167 = arith.maximumf %163, %166 : vector<7x112xf32>
    %c0_152 = arith.constant 0 : index
    %c0_153 = arith.constant 0 : index
    %c0_154 = arith.constant 0 : index
    %168 = vector.load %arg8[%c0_152, %c0_153, %c0_154] : memref<2x112x56xf32, #tpu.memory_space<vmem>>, vector<1x112x56xf32>
    %169 = vector.shape_cast %168 : vector<1x112x56xf32> to vector<112x56xf32>
    %cst_155 = arith.constant dense<0.000000e+00> : vector<7x56xf32>
    %170 = tpu.matmul %167, %169, %cst_155 {dimension_numbers = #tpu.dot_dimension_numbers<[1], [0], [0], [1], [0, 0, 1, 1], [], []>} : vector<7x112xf32>, vector<112x56xf32>, vector<7x56xf32> -> vector<7x56xf32>
    %c1_156 = arith.constant 1 : index
    %c0_157 = arith.constant 0 : index
    %c0_158 = arith.constant 0 : index
    %171 = vector.load %arg8[%c1_156, %c0_157, %c0_158] : memref<2x112x56xf32, #tpu.memory_space<vmem>>, vector<1x112x56xf32>
    %172 = vector.shape_cast %171 : vector<1x112x56xf32> to vector<112x56xf32>
    %cst_159 = arith.constant dense<0.000000e+00> : vector<7x56xf32>
    %173 = tpu.matmul %167, %172, %cst_159 {dimension_numbers = #tpu.dot_dimension_numbers<[1], [0], [0], [1], [0, 0, 1, 1], [], []>} : vector<7x112xf32>, vector<112x56xf32>, vector<7x56xf32> -> vector<7x56xf32>
    %174 = arith.maximumf %170, %173 : vector<7x56xf32>
    %c7_160 = arith.constant 7 : index
    %c0_161 = arith.constant 0 : index
    %175 = vector.load %arg22[%c7_160, %c0_161] : memref<14x56xf32, #tpu.memory_space<vmem>>, vector<7x56xf32>
    tpu.vector_store %arg22[%c7_160, %c0_161], %174 {strides = array<i32>} : memref<14x56xf32, #tpu.memory_space<vmem>>, vector<7x56xf32>,
    %c0_162 = arith.constant 0 : index
    %c0_163 = arith.constant 0 : index
    %176 = vector.load %arg22[%c0_162, %c0_163] : memref<14x56xf32, #tpu.memory_space<vmem>>, vector<5x40xf32>
    %c0_164 = arith.constant 0 : index
    %c0_165 = arith.constant 0 : index
    %c0_166 = arith.constant 0 : index
    %177 = vector.load %arg9[%c0_164, %c0_165, %c0_166] : memref<9x40x80xf32, #tpu.memory_space<vmem>>, vector<1x40x80xf32>
    %178 = vector.shape_cast %177 : vector<1x40x80xf32> to vector<40x80xf32>
    %cst_167 = arith.constant dense<0.000000e+00> : vector<5x80xf32>
    %179 = tpu.matmul %176, %178, %cst_167 {dimension_numbers = #tpu.dot_dimension_numbers<[1], [0], [0], [1], [0, 0, 1, 1], [], []>} : vector<5x40xf32>, vector<40x80xf32>, vector<5x80xf32> -> vector<5x80xf32>
    %c0_168 = arith.constant 0 : index
    %c8_169 = arith.constant 8 : index
    %180 = vector.load %arg22[%c0_168, %c8_169] : memref<14x56xf32, #tpu.memory_space<vmem>>, vector<5x40xf32>
    %c1_170 = arith.constant 1 : index
    %c0_171 = arith.constant 0 : index
    %c0_172 = arith.constant 0 : index
    %181 = vector.load %arg9[%c1_170, %c0_171, %c0_172] : memref<9x40x80xf32, #tpu.memory_space<vmem>>, vector<1x40x80xf32>
    %182 = vector.shape_cast %181 : vector<1x40x80xf32> to vector<40x80xf32>
    %cst_173 = arith.constant dense<0.000000e+00> : vector<5x80xf32>
    %183 = tpu.matmul %180, %182, %cst_173 {dimension_numbers = #tpu.dot_dimension_numbers<[1], [0], [0], [1], [0, 0, 1, 1], [], []>} : vector<5x40xf32>, vector<40x80xf32>, vector<5x80xf32> -> vector<5x80xf32>
    %184 = arith.addf %179, %183 : vector<5x80xf32>
    %c0_174 = arith.constant 0 : index
    %c16_175 = arith.constant 16 : index
    %185 = vector.load %arg22[%c0_174, %c16_175] : memref<14x56xf32, #tpu.memory_space<vmem>>, vector<5x40xf32>
    %c2_176 = arith.constant 2 : index
    %c0_177 = arith.constant 0 : index
    %c0_178 = arith.constant 0 : index
    %186 = vector.load %arg9[%c2_176, %c0_177, %c0_178] : memref<9x40x80xf32, #tpu.memory_space<vmem>>, vector<1x40x80xf32>
    %187 = vector.shape_cast %186 : vector<1x40x80xf32> to vector<40x80xf32>
    %cst_179 = arith.constant dense<0.000000e+00> : vector<5x80xf32>
    %188 = tpu.matmul %185, %187, %cst_179 {dimension_numbers = #tpu.dot_dimension_numbers<[1], [0], [0], [1], [0, 0, 1, 1], [], []>} : vector<5x40xf32>, vector<40x80xf32>, vector<5x80xf32> -> vector<5x80xf32>
    %189 = arith.addf %184, %188 : vector<5x80xf32>
    %c1_180 = arith.constant 1 : index
    %c0_181 = arith.constant 0 : index
    %190 = vector.load %arg22[%c1_180, %c0_181] : memref<14x56xf32, #tpu.memory_space<vmem>>, vector<5x40xf32>
    %c3_182 = arith.constant 3 : index
    %c0_183 = arith.constant 0 : index
    %c0_184 = arith.constant 0 : index
    %191 = vector.load %arg9[%c3_182, %c0_183, %c0_184] : memref<9x40x80xf32, #tpu.memory_space<vmem>>, vector<1x40x80xf32>
    %192 = vector.shape_cast %191 : vector<1x40x80xf32> to vector<40x80xf32>
    %cst_185 = arith.constant dense<0.000000e+00> : vector<5x80xf32>
    %193 = tpu.matmul %190, %192, %cst_185 {dimension_numbers = #tpu.dot_dimension_numbers<[1], [0], [0], [1], [0, 0, 1, 1], [], []>} : vector<5x40xf32>, vector<40x80xf32>, vector<5x80xf32> -> vector<5x80xf32>
    %194 = arith.addf %189, %193 : vector<5x80xf32>
    %c1_186 = arith.constant 1 : index
    %c8_187 = arith.constant 8 : index
    %195 = vector.load %arg22[%c1_186, %c8_187] : memref<14x56xf32, #tpu.memory_space<vmem>>, vector<5x40xf32>
    %c4_188 = arith.constant 4 : index
    %c0_189 = arith.constant 0 : index
    %c0_190 = arith.constant 0 : index
    %196 = vector.load %arg9[%c4_188, %c0_189, %c0_190] : memref<9x40x80xf32, #tpu.memory_space<vmem>>, vector<1x40x80xf32>
    %197 = vector.shape_cast %196 : vector<1x40x80xf32> to vector<40x80xf32>
    %cst_191 = arith.constant dense<0.000000e+00> : vector<5x80xf32>
    %198 = tpu.matmul %195, %197, %cst_191 {dimension_numbers = #tpu.dot_dimension_numbers<[1], [0], [0], [1], [0, 0, 1, 1], [], []>} : vector<5x40xf32>, vector<40x80xf32>, vector<5x80xf32> -> vector<5x80xf32>
    %199 = arith.addf %194, %198 : vector<5x80xf32>
    %c1_192 = arith.constant 1 : index
    %c16_193 = arith.constant 16 : index
    %200 = vector.load %arg22[%c1_192, %c16_193] : memref<14x56xf32, #tpu.memory_space<vmem>>, vector<5x40xf32>
    %c5_194 = arith.constant 5 : index
    %c0_195 = arith.constant 0 : index
    %c0_196 = arith.constant 0 : index
    %201 = vector.load %arg9[%c5_194, %c0_195, %c0_196] : memref<9x40x80xf32, #tpu.memory_space<vmem>>, vector<1x40x80xf32>
    %202 = vector.shape_cast %201 : vector<1x40x80xf32> to vector<40x80xf32>
    %cst_197 = arith.constant dense<0.000000e+00> : vector<5x80xf32>
    %203 = tpu.matmul %200, %202, %cst_197 {dimension_numbers = #tpu.dot_dimension_numbers<[1], [0], [0], [1], [0, 0, 1, 1], [], []>} : vector<5x40xf32>, vector<40x80xf32>, vector<5x80xf32> -> vector<5x80xf32>
    %204 = arith.addf %199, %203 : vector<5x80xf32>
    %c2_198 = arith.constant 2 : index
    %c0_199 = arith.constant 0 : index
    %205 = vector.load %arg22[%c2_198, %c0_199] : memref<14x56xf32, #tpu.memory_space<vmem>>, vector<5x40xf32>
    %c6_200 = arith.constant 6 : index
    %c0_201 = arith.constant 0 : index
    %c0_202 = arith.constant 0 : index
    %206 = vector.load %arg9[%c6_200, %c0_201, %c0_202] : memref<9x40x80xf32, #tpu.memory_space<vmem>>, vector<1x40x80xf32>
    %207 = vector.shape_cast %206 : vector<1x40x80xf32> to vector<40x80xf32>
    %cst_203 = arith.constant dense<0.000000e+00> : vector<5x80xf32>
    %208 = tpu.matmul %205, %207, %cst_203 {dimension_numbers = #tpu.dot_dimension_numbers<[1], [0], [0], [1], [0, 0, 1, 1], [], []>} : vector<5x40xf32>, vector<40x80xf32>, vector<5x80xf32> -> vector<5x80xf32>
    %209 = arith.addf %204, %208 : vector<5x80xf32>
    %c2_204 = arith.constant 2 : index
    %c8_205 = arith.constant 8 : index
    %210 = vector.load %arg22[%c2_204, %c8_205] : memref<14x56xf32, #tpu.memory_space<vmem>>, vector<5x40xf32>
    %c7_206 = arith.constant 7 : index
    %c0_207 = arith.constant 0 : index
    %c0_208 = arith.constant 0 : index
    %211 = vector.load %arg9[%c7_206, %c0_207, %c0_208] : memref<9x40x80xf32, #tpu.memory_space<vmem>>, vector<1x40x80xf32>
    %212 = vector.shape_cast %211 : vector<1x40x80xf32> to vector<40x80xf32>
    %cst_209 = arith.constant dense<0.000000e+00> : vector<5x80xf32>
    %213 = tpu.matmul %210, %212, %cst_209 {dimension_numbers = #tpu.dot_dimension_numbers<[1], [0], [0], [1], [0, 0, 1, 1], [], []>} : vector<5x40xf32>, vector<40x80xf32>, vector<5x80xf32> -> vector<5x80xf32>
    %214 = arith.addf %209, %213 : vector<5x80xf32>
    %c2_210 = arith.constant 2 : index
    %c16_211 = arith.constant 16 : index
    %215 = vector.load %arg22[%c2_210, %c16_211] : memref<14x56xf32, #tpu.memory_space<vmem>>, vector<5x40xf32>
    %c8_212 = arith.constant 8 : index
    %c0_213 = arith.constant 0 : index
    %c0_214 = arith.constant 0 : index
    %216 = vector.load %arg9[%c8_212, %c0_213, %c0_214] : memref<9x40x80xf32, #tpu.memory_space<vmem>>, vector<1x40x80xf32>
    %217 = vector.shape_cast %216 : vector<1x40x80xf32> to vector<40x80xf32>
    %cst_215 = arith.constant dense<0.000000e+00> : vector<5x80xf32>
    %218 = tpu.matmul %215, %217, %cst_215 {dimension_numbers = #tpu.dot_dimension_numbers<[1], [0], [0], [1], [0, 0, 1, 1], [], []>} : vector<5x40xf32>, vector<40x80xf32>, vector<5x80xf32> -> vector<5x80xf32>
    %219 = arith.addf %214, %218 : vector<5x80xf32>
    %c0_216 = arith.constant 0 : index
    %c0_217 = arith.constant 0 : index
    %220 = vector.load %arg10[%c0_216, %c0_217] : memref<1x80xf32, #tpu.memory_space<vmem>>, vector<1x80xf32>
    %221 = vector.broadcast %220 : vector<1x80xf32> to vector<5x80xf32>
    %222 = arith.addf %219, %221 : vector<5x80xf32>
    %c7_218 = arith.constant 7 : index
    %c0_219 = arith.constant 0 : index
    %223 = vector.load %arg22[%c7_218, %c0_219] : memref<14x56xf32, #tpu.memory_space<vmem>>, vector<5x40xf32>
    %c0_220 = arith.constant 0 : index
    %c0_221 = arith.constant 0 : index
    %c0_222 = arith.constant 0 : index
    %224 = vector.load %arg9[%c0_220, %c0_221, %c0_222] : memref<9x40x80xf32, #tpu.memory_space<vmem>>, vector<1x40x80xf32>
    %225 = vector.shape_cast %224 : vector<1x40x80xf32> to vector<40x80xf32>
    %cst_223 = arith.constant dense<0.000000e+00> : vector<5x80xf32>
    %226 = tpu.matmul %223, %225, %cst_223 {dimension_numbers = #tpu.dot_dimension_numbers<[1], [0], [0], [1], [0, 0, 1, 1], [], []>} : vector<5x40xf32>, vector<40x80xf32>, vector<5x80xf32> -> vector<5x80xf32>
    %c7_224 = arith.constant 7 : index
    %c8_225 = arith.constant 8 : index
    %227 = vector.load %arg22[%c7_224, %c8_225] : memref<14x56xf32, #tpu.memory_space<vmem>>, vector<5x40xf32>
    %c1_226 = arith.constant 1 : index
    %c0_227 = arith.constant 0 : index
    %c0_228 = arith.constant 0 : index
    %228 = vector.load %arg9[%c1_226, %c0_227, %c0_228] : memref<9x40x80xf32, #tpu.memory_space<vmem>>, vector<1x40x80xf32>
    %229 = vector.shape_cast %228 : vector<1x40x80xf32> to vector<40x80xf32>
    %cst_229 = arith.constant dense<0.000000e+00> : vector<5x80xf32>
    %230 = tpu.matmul %227, %229, %cst_229 {dimension_numbers = #tpu.dot_dimension_numbers<[1], [0], [0], [1], [0, 0, 1, 1], [], []>} : vector<5x40xf32>, vector<40x80xf32>, vector<5x80xf32> -> vector<5x80xf32>
    %231 = arith.addf %226, %230 : vector<5x80xf32>
    %c7_230 = arith.constant 7 : index
    %c16_231 = arith.constant 16 : index
    %232 = vector.load %arg22[%c7_230, %c16_231] : memref<14x56xf32, #tpu.memory_space<vmem>>, vector<5x40xf32>
    %c2_232 = arith.constant 2 : index
    %c0_233 = arith.constant 0 : index
    %c0_234 = arith.constant 0 : index
    %233 = vector.load %arg9[%c2_232, %c0_233, %c0_234] : memref<9x40x80xf32, #tpu.memory_space<vmem>>, vector<1x40x80xf32>
    %234 = vector.shape_cast %233 : vector<1x40x80xf32> to vector<40x80xf32>
    %cst_235 = arith.constant dense<0.000000e+00> : vector<5x80xf32>
    %235 = tpu.matmul %232, %234, %cst_235 {dimension_numbers = #tpu.dot_dimension_numbers<[1], [0], [0], [1], [0, 0, 1, 1], [], []>} : vector<5x40xf32>, vector<40x80xf32>, vector<5x80xf32> -> vector<5x80xf32>
    %236 = arith.addf %231, %235 : vector<5x80xf32>
    %c8_236 = arith.constant 8 : index
    %c0_237 = arith.constant 0 : index
    %237 = vector.load %arg22[%c8_236, %c0_237] : memref<14x56xf32, #tpu.memory_space<vmem>>, vector<5x40xf32>
    %c3_238 = arith.constant 3 : index
    %c0_239 = arith.constant 0 : index
    %c0_240 = arith.constant 0 : index
    %238 = vector.load %arg9[%c3_238, %c0_239, %c0_240] : memref<9x40x80xf32, #tpu.memory_space<vmem>>, vector<1x40x80xf32>
    %239 = vector.shape_cast %238 : vector<1x40x80xf32> to vector<40x80xf32>
    %cst_241 = arith.constant dense<0.000000e+00> : vector<5x80xf32>
    %240 = tpu.matmul %237, %239, %cst_241 {dimension_numbers = #tpu.dot_dimension_numbers<[1], [0], [0], [1], [0, 0, 1, 1], [], []>} : vector<5x40xf32>, vector<40x80xf32>, vector<5x80xf32> -> vector<5x80xf32>
    %241 = arith.addf %236, %240 : vector<5x80xf32>
    %c8_242 = arith.constant 8 : index
    %c8_243 = arith.constant 8 : index
    %242 = vector.load %arg22[%c8_242, %c8_243] : memref<14x56xf32, #tpu.memory_space<vmem>>, vector<5x40xf32>
    %c4_244 = arith.constant 4 : index
    %c0_245 = arith.constant 0 : index
    %c0_246 = arith.constant 0 : index
    %243 = vector.load %arg9[%c4_244, %c0_245, %c0_246] : memref<9x40x80xf32, #tpu.memory_space<vmem>>, vector<1x40x80xf32>
    %244 = vector.shape_cast %243 : vector<1x40x80xf32> to vector<40x80xf32>
    %cst_247 = arith.constant dense<0.000000e+00> : vector<5x80xf32>
    %245 = tpu.matmul %242, %244, %cst_247 {dimension_numbers = #tpu.dot_dimension_numbers<[1], [0], [0], [1], [0, 0, 1, 1], [], []>} : vector<5x40xf32>, vector<40x80xf32>, vector<5x80xf32> -> vector<5x80xf32>
    %246 = arith.addf %241, %245 : vector<5x80xf32>
    %c8_248 = arith.constant 8 : index
    %c16_249 = arith.constant 16 : index
    %247 = vector.load %arg22[%c8_248, %c16_249] : memref<14x56xf32, #tpu.memory_space<vmem>>, vector<5x40xf32>
    %c5_250 = arith.constant 5 : index
    %c0_251 = arith.constant 0 : index
    %c0_252 = arith.constant 0 : index
    %248 = vector.load %arg9[%c5_250, %c0_251, %c0_252] : memref<9x40x80xf32, #tpu.memory_space<vmem>>, vector<1x40x80xf32>
    %249 = vector.shape_cast %248 : vector<1x40x80xf32> to vector<40x80xf32>
    %cst_253 = arith.constant dense<0.000000e+00> : vector<5x80xf32>
    %250 = tpu.matmul %247, %249, %cst_253 {dimension_numbers = #tpu.dot_dimension_numbers<[1], [0], [0], [1], [0, 0, 1, 1], [], []>} : vector<5x40xf32>, vector<40x80xf32>, vector<5x80xf32> -> vector<5x80xf32>
    %251 = arith.addf %246, %250 : vector<5x80xf32>
    %c9 = arith.constant 9 : index
    %c0_254 = arith.constant 0 : index
    %252 = vector.load %arg22[%c9, %c0_254] : memref<14x56xf32, #tpu.memory_space<vmem>>, vector<5x40xf32>
    %c6_255 = arith.constant 6 : index
    %c0_256 = arith.constant 0 : index
    %c0_257 = arith.constant 0 : index
    %253 = vector.load %arg9[%c6_255, %c0_256, %c0_257] : memref<9x40x80xf32, #tpu.memory_space<vmem>>, vector<1x40x80xf32>
    %254 = vector.shape_cast %253 : vector<1x40x80xf32> to vector<40x80xf32>
    %cst_258 = arith.constant dense<0.000000e+00> : vector<5x80xf32>
    %255 = tpu.matmul %252, %254, %cst_258 {dimension_numbers = #tpu.dot_dimension_numbers<[1], [0], [0], [1], [0, 0, 1, 1], [], []>} : vector<5x40xf32>, vector<40x80xf32>, vector<5x80xf32> -> vector<5x80xf32>
    %256 = arith.addf %251, %255 : vector<5x80xf32>
    %c9_259 = arith.constant 9 : index
    %c8_260 = arith.constant 8 : index
    %257 = vector.load %arg22[%c9_259, %c8_260] : memref<14x56xf32, #tpu.memory_space<vmem>>, vector<5x40xf32>
    %c7_261 = arith.constant 7 : index
    %c0_262 = arith.constant 0 : index
    %c0_263 = arith.constant 0 : index
    %258 = vector.load %arg9[%c7_261, %c0_262, %c0_263] : memref<9x40x80xf32, #tpu.memory_space<vmem>>, vector<1x40x80xf32>
    %259 = vector.shape_cast %258 : vector<1x40x80xf32> to vector<40x80xf32>
    %cst_264 = arith.constant dense<0.000000e+00> : vector<5x80xf32>
    %260 = tpu.matmul %257, %259, %cst_264 {dimension_numbers = #tpu.dot_dimension_numbers<[1], [0], [0], [1], [0, 0, 1, 1], [], []>} : vector<5x40xf32>, vector<40x80xf32>, vector<5x80xf32> -> vector<5x80xf32>
    %261 = arith.addf %256, %260 : vector<5x80xf32>
    %c9_265 = arith.constant 9 : index
    %c16_266 = arith.constant 16 : index
    %262 = vector.load %arg22[%c9_265, %c16_266] : memref<14x56xf32, #tpu.memory_space<vmem>>, vector<5x40xf32>
    %c8_267 = arith.constant 8 : index
    %c0_268 = arith.constant 0 : index
    %c0_269 = arith.constant 0 : index
    %263 = vector.load %arg9[%c8_267, %c0_268, %c0_269] : memref<9x40x80xf32, #tpu.memory_space<vmem>>, vector<1x40x80xf32>
    %264 = vector.shape_cast %263 : vector<1x40x80xf32> to vector<40x80xf32>
    %cst_270 = arith.constant dense<0.000000e+00> : vector<5x80xf32>
    %265 = tpu.matmul %262, %264, %cst_270 {dimension_numbers = #tpu.dot_dimension_numbers<[1], [0], [0], [1], [0, 0, 1, 1], [], []>} : vector<5x40xf32>, vector<40x80xf32>, vector<5x80xf32> -> vector<5x80xf32>
    %266 = arith.addf %261, %265 : vector<5x80xf32>
    %c0_271 = arith.constant 0 : index
    %c0_272 = arith.constant 0 : index
    %267 = vector.load %arg10[%c0_271, %c0_272] : memref<1x80xf32, #tpu.memory_space<vmem>>, vector<1x80xf32>
    %268 = vector.broadcast %267 : vector<1x80xf32> to vector<5x80xf32>
    %269 = arith.addf %266, %268 : vector<5x80xf32>
    %cst_273 = arith.constant dense<0.000000e+00> : vector<80xf32>
    %270 = vector.multi_reduction <add>, %222, %cst_273 [0] : vector<5x80xf32> to vector<80xf32>
    %271 = vector.shape_cast %270 : vector<80xf32> to vector<1x80xf32>
    %272 = arith.mulf %222, %222 : vector<5x80xf32>
    %cst_274 = arith.constant dense<0.000000e+00> : vector<80xf32>
    %273 = vector.multi_reduction <add>, %272, %cst_274 [0] : vector<5x80xf32> to vector<80xf32>
    %274 = vector.shape_cast %273 : vector<80xf32> to vector<1x80xf32>
    %cst_275 = arith.constant dense<0.000000e+00> : vector<80xf32>
    %275 = vector.multi_reduction <add>, %269, %cst_275 [0] : vector<5x80xf32> to vector<80xf32>
    %276 = vector.shape_cast %275 : vector<80xf32> to vector<1x80xf32>
    %277 = arith.mulf %269, %269 : vector<5x80xf32>
    %cst_276 = arith.constant dense<0.000000e+00> : vector<80xf32>
    %278 = vector.multi_reduction <add>, %277, %cst_276 [0] : vector<5x80xf32> to vector<80xf32>
    %279 = vector.shape_cast %278 : vector<80xf32> to vector<1x80xf32>
    %280 = arith.addf %271, %276 : vector<1x80xf32>
    %281 = arith.addf %274, %279 : vector<1x80xf32>
    %c0_277 = arith.constant 0 : index
    %c0_278 = arith.constant 0 : index
    %282 = vector.load %arg13[%c0_277, %c0_278] : memref<80x16xf32, #tpu.memory_space<vmem>>, vector<80x16xf32>
    %cst_279 = arith.constant dense<0.000000e+00> : vector<1x16xf32>
    %283 = tpu.matmul %280, %282, %cst_279 {dimension_numbers = #tpu.dot_dimension_numbers<[1], [0], [0], [1], [0, 0, 1, 1], [], []>} : vector<1x80xf32>, vector<80x16xf32>, vector<1x16xf32> -> vector<1x16xf32>
    %cst_280 = arith.constant 2.000000e-02 : f32
    %284 = vector.broadcast %cst_280 : f32 to vector<1x16xf32>
    %285 = arith.mulf %283, %284 : vector<1x16xf32>
    %c0_281 = arith.constant 0 : index
    %c0_282 = arith.constant 0 : index
    %286 = vector.load %arg13[%c0_281, %c0_282] : memref<80x16xf32, #tpu.memory_space<vmem>>, vector<80x16xf32>
    %cst_283 = arith.constant dense<0.000000e+00> : vector<1x16xf32>
    %287 = tpu.matmul %281, %286, %cst_283 {dimension_numbers = #tpu.dot_dimension_numbers<[1], [0], [0], [1], [0, 0, 1, 1], [], []>} : vector<1x80xf32>, vector<80x16xf32>, vector<1x16xf32> -> vector<1x16xf32>
    %cst_284 = arith.constant 2.000000e-02 : f32
    %288 = vector.broadcast %cst_284 : f32 to vector<1x16xf32>
    %289 = arith.mulf %287, %288 : vector<1x16xf32>
    %290 = arith.mulf %285, %285 : vector<1x16xf32>
    %291 = arith.subf %289, %290 : vector<1x16xf32>
    %c0_285 = arith.constant 0 : index
    %c0_286 = arith.constant 0 : index
    %292 = vector.load %arg11[%c0_285, %c0_286] : memref<1x16xf32, #tpu.memory_space<vmem>>, vector<1x16xf32>
    %cst_287 = arith.constant 9.99999974E-6 : f32
    %293 = vector.broadcast %cst_287 : f32 to vector<1x16xf32>
    %294 = arith.addf %291, %293 : vector<1x16xf32>
    %295 = math.rsqrt %294 : vector<1x16xf32>
    %296 = arith.mulf %292, %295 : vector<1x16xf32>
    %c0_288 = arith.constant 0 : index
    %c0_289 = arith.constant 0 : index
    %297 = vector.load %arg12[%c0_288, %c0_289] : memref<1x16xf32, #tpu.memory_space<vmem>>, vector<1x16xf32>
    %298 = arith.mulf %285, %296 : vector<1x16xf32>
    %299 = arith.subf %297, %298 : vector<1x16xf32>
    %c0_290 = arith.constant 0 : index
    %c0_291 = arith.constant 0 : index
    %300 = vector.load %arg14[%c0_290, %c0_291] : memref<16x80xf32, #tpu.memory_space<vmem>>, vector<16x80xf32>
    %cst_292 = arith.constant dense<0.000000e+00> : vector<1x80xf32>
    %301 = tpu.matmul %296, %300, %cst_292 {dimension_numbers = #tpu.dot_dimension_numbers<[1], [0], [0], [1], [0, 0, 1, 1], [], []>} : vector<1x16xf32>, vector<16x80xf32>, vector<1x80xf32> -> vector<1x80xf32>
    %c0_293 = arith.constant 0 : index
    %c0_294 = arith.constant 0 : index
    %302 = vector.load %arg14[%c0_293, %c0_294] : memref<16x80xf32, #tpu.memory_space<vmem>>, vector<16x80xf32>
    %cst_295 = arith.constant dense<0.000000e+00> : vector<1x80xf32>
    %303 = tpu.matmul %299, %302, %cst_295 {dimension_numbers = #tpu.dot_dimension_numbers<[1], [0], [0], [1], [0, 0, 1, 1], [], []>} : vector<1x16xf32>, vector<16x80xf32>, vector<1x80xf32> -> vector<1x80xf32>
    %304 = vector.broadcast %301 : vector<1x80xf32> to vector<5x80xf32>
    %305 = arith.mulf %222, %304 : vector<5x80xf32>
    %306 = vector.broadcast %303 : vector<1x80xf32> to vector<5x80xf32>
    %307 = arith.addf %305, %306 : vector<5x80xf32>
    %cst_296 = arith.constant 0.000000e+00 : f32
    %308 = vector.broadcast %cst_296 : f32 to vector<5x80xf32>
    %309 = arith.cmpf ogt, %307, %308 : vector<5x80xf32>
    %cst_297 = arith.constant 0.00999999977 : f32
    %310 = vector.broadcast %cst_297 : f32 to vector<5x80xf32>
    %311 = arith.mulf %310, %307 : vector<5x80xf32>
    %312 = arith.select %309, %307, %311 : vector<5x80xi1>, vector<5x80xf32>
    %c0_298 = arith.constant 0 : index
    %c0_299 = arith.constant 0 : index
    %c0_300 = arith.constant 0 : index
    %313 = vector.load %arg15[%c0_298, %c0_299, %c0_300] : memref<2x2x5xf32, #tpu.memory_space<vmem>>, vector<1x2x5xf32>
    %314 = vector.shape_cast %313 : vector<1x2x5xf32> to vector<2x5xf32>
    %cst_301 = arith.constant dense<0.000000e+00> : vector<2x80xf32>
    %315 = tpu.matmul %314, %312, %cst_301 {dimension_numbers = #tpu.dot_dimension_numbers<[1], [0], [0], [1], [0, 0, 1, 1], [], []>} : vector<2x5xf32>, vector<5x80xf32>, vector<2x80xf32> -> vector<2x80xf32>
    %c1_302 = arith.constant 1 : index
    %c0_303 = arith.constant 0 : index
    %c0_304 = arith.constant 0 : index
    %316 = vector.load %arg15[%c1_302, %c0_303, %c0_304] : memref<2x2x5xf32, #tpu.memory_space<vmem>>, vector<1x2x5xf32>
    %317 = vector.shape_cast %316 : vector<1x2x5xf32> to vector<2x5xf32>
    %cst_305 = arith.constant dense<0.000000e+00> : vector<2x80xf32>
    %318 = tpu.matmul %317, %312, %cst_305 {dimension_numbers = #tpu.dot_dimension_numbers<[1], [0], [0], [1], [0, 0, 1, 1], [], []>} : vector<2x5xf32>, vector<5x80xf32>, vector<2x80xf32> -> vector<2x80xf32>
    %319 = arith.maximumf %315, %318 : vector<2x80xf32>
    %c0_306 = arith.constant 0 : index
    %c0_307 = arith.constant 0 : index
    %c0_308 = arith.constant 0 : index
    %320 = vector.load %arg16[%c0_306, %c0_307, %c0_308] : memref<2x80x32xf32, #tpu.memory_space<vmem>>, vector<1x80x32xf32>
    %321 = vector.shape_cast %320 : vector<1x80x32xf32> to vector<80x32xf32>
    %cst_309 = arith.constant dense<0.000000e+00> : vector<2x32xf32>
    %322 = tpu.matmul %319, %321, %cst_309 {dimension_numbers = #tpu.dot_dimension_numbers<[1], [0], [0], [1], [0, 0, 1, 1], [], []>} : vector<2x80xf32>, vector<80x32xf32>, vector<2x32xf32> -> vector<2x32xf32>
    %c1_310 = arith.constant 1 : index
    %c0_311 = arith.constant 0 : index
    %c0_312 = arith.constant 0 : index
    %323 = vector.load %arg16[%c1_310, %c0_311, %c0_312] : memref<2x80x32xf32, #tpu.memory_space<vmem>>, vector<1x80x32xf32>
    %324 = vector.shape_cast %323 : vector<1x80x32xf32> to vector<80x32xf32>
    %cst_313 = arith.constant dense<0.000000e+00> : vector<2x32xf32>
    %325 = tpu.matmul %319, %324, %cst_313 {dimension_numbers = #tpu.dot_dimension_numbers<[1], [0], [0], [1], [0, 0, 1, 1], [], []>} : vector<2x80xf32>, vector<80x32xf32>, vector<2x32xf32> -> vector<2x32xf32>
    %326 = arith.maximumf %322, %325 : vector<2x32xf32>
    %c0_314 = arith.constant 0 : index
    %c0_315 = arith.constant 0 : index
    %327 = vector.load %arg23[%c0_314, %c0_315] : memref<4x32xf32, #tpu.memory_space<vmem>>, vector<2x32xf32>
    tpu.vector_store %arg23[%c0_314, %c0_315], %326 {strides = array<i32>} : memref<4x32xf32, #tpu.memory_space<vmem>>, vector<2x32xf32>,
    %328 = vector.broadcast %301 : vector<1x80xf32> to vector<5x80xf32>
    %329 = arith.mulf %269, %328 : vector<5x80xf32>
    %330 = vector.broadcast %303 : vector<1x80xf32> to vector<5x80xf32>
    %331 = arith.addf %329, %330 : vector<5x80xf32>
    %cst_316 = arith.constant 0.000000e+00 : f32
    %332 = vector.broadcast %cst_316 : f32 to vector<5x80xf32>
    %333 = arith.cmpf ogt, %331, %332 : vector<5x80xf32>
    %cst_317 = arith.constant 0.00999999977 : f32
    %334 = vector.broadcast %cst_317 : f32 to vector<5x80xf32>
    %335 = arith.mulf %334, %331 : vector<5x80xf32>
    %336 = arith.select %333, %331, %335 : vector<5x80xi1>, vector<5x80xf32>
    %c0_318 = arith.constant 0 : index
    %c0_319 = arith.constant 0 : index
    %c0_320 = arith.constant 0 : index
    %337 = vector.load %arg15[%c0_318, %c0_319, %c0_320] : memref<2x2x5xf32, #tpu.memory_space<vmem>>, vector<1x2x5xf32>
    %338 = vector.shape_cast %337 : vector<1x2x5xf32> to vector<2x5xf32>
    %cst_321 = arith.constant dense<0.000000e+00> : vector<2x80xf32>
    %339 = tpu.matmul %338, %336, %cst_321 {dimension_numbers = #tpu.dot_dimension_numbers<[1], [0], [0], [1], [0, 0, 1, 1], [], []>} : vector<2x5xf32>, vector<5x80xf32>, vector<2x80xf32> -> vector<2x80xf32>
    %c1_322 = arith.constant 1 : index
    %c0_323 = arith.constant 0 : index
    %c0_324 = arith.constant 0 : index
    %340 = vector.load %arg15[%c1_322, %c0_323, %c0_324] : memref<2x2x5xf32, #tpu.memory_space<vmem>>, vector<1x2x5xf32>
    %341 = vector.shape_cast %340 : vector<1x2x5xf32> to vector<2x5xf32>
    %cst_325 = arith.constant dense<0.000000e+00> : vector<2x80xf32>
    %342 = tpu.matmul %341, %336, %cst_325 {dimension_numbers = #tpu.dot_dimension_numbers<[1], [0], [0], [1], [0, 0, 1, 1], [], []>} : vector<2x5xf32>, vector<5x80xf32>, vector<2x80xf32> -> vector<2x80xf32>
    %343 = arith.maximumf %339, %342 : vector<2x80xf32>
    %c0_326 = arith.constant 0 : index
    %c0_327 = arith.constant 0 : index
    %c0_328 = arith.constant 0 : index
    %344 = vector.load %arg16[%c0_326, %c0_327, %c0_328] : memref<2x80x32xf32, #tpu.memory_space<vmem>>, vector<1x80x32xf32>
    %345 = vector.shape_cast %344 : vector<1x80x32xf32> to vector<80x32xf32>
    %cst_329 = arith.constant dense<0.000000e+00> : vector<2x32xf32>
    %346 = tpu.matmul %343, %345, %cst_329 {dimension_numbers = #tpu.dot_dimension_numbers<[1], [0], [0], [1], [0, 0, 1, 1], [], []>} : vector<2x80xf32>, vector<80x32xf32>, vector<2x32xf32> -> vector<2x32xf32>
    %c1_330 = arith.constant 1 : index
    %c0_331 = arith.constant 0 : index
    %c0_332 = arith.constant 0 : index
    %347 = vector.load %arg16[%c1_330, %c0_331, %c0_332] : memref<2x80x32xf32, #tpu.memory_space<vmem>>, vector<1x80x32xf32>
    %348 = vector.shape_cast %347 : vector<1x80x32xf32> to vector<80x32xf32>
    %cst_333 = arith.constant dense<0.000000e+00> : vector<2x32xf32>
    %349 = tpu.matmul %343, %348, %cst_333 {dimension_numbers = #tpu.dot_dimension_numbers<[1], [0], [0], [1], [0, 0, 1, 1], [], []>} : vector<2x80xf32>, vector<80x32xf32>, vector<2x32xf32> -> vector<2x32xf32>
    %350 = arith.maximumf %346, %349 : vector<2x32xf32>
    %c2_334 = arith.constant 2 : index
    %c0_335 = arith.constant 0 : index
    %351 = vector.load %arg23[%c2_334, %c0_335] : memref<4x32xf32, #tpu.memory_space<vmem>>, vector<2x32xf32>
    tpu.vector_store %arg23[%c2_334, %c0_335], %350 {strides = array<i32>} : memref<4x32xf32, #tpu.memory_space<vmem>>, vector<2x32xf32>,
    %c0_336 = arith.constant 0 : index
    %c0_337 = arith.constant 0 : index
    %352 = vector.load %arg23[%c0_336, %c0_337] : memref<4x32xf32, #tpu.memory_space<vmem>>, vector<1x32xf32>
    %c0_338 = arith.constant 0 : index
    %c0_339 = arith.constant 0 : index
    %c0_340 = arith.constant 0 : index
    %353 = vector.load %arg17[%c0_338, %c0_339, %c0_340] : memref<2x32x32xf32, #tpu.memory_space<vmem>>, vector<1x32x32xf32>
    %354 = vector.shape_cast %353 : vector<1x32x32xf32> to vector<32x32xf32>
    %cst_341 = arith.constant dense<0.000000e+00> : vector<1x32xf32>
    %355 = tpu.matmul %352, %354, %cst_341 {dimension_numbers = #tpu.dot_dimension_numbers<[1], [0], [0], [1], [0, 0, 1, 1], [], []>} : vector<1x32xf32>, vector<32x32xf32>, vector<1x32xf32> -> vector<1x32xf32>
    %c1_342 = arith.constant 1 : index
    %c0_343 = arith.constant 0 : index
    %356 = vector.load %arg23[%c1_342, %c0_343] : memref<4x32xf32, #tpu.memory_space<vmem>>, vector<1x32xf32>
    %c1_344 = arith.constant 1 : index
    %c0_345 = arith.constant 0 : index
    %c0_346 = arith.constant 0 : index
    %357 = vector.load %arg17[%c1_344, %c0_345, %c0_346] : memref<2x32x32xf32, #tpu.memory_space<vmem>>, vector<1x32x32xf32>
    %358 = vector.shape_cast %357 : vector<1x32x32xf32> to vector<32x32xf32>
    %cst_347 = arith.constant dense<0.000000e+00> : vector<1x32xf32>
    %359 = tpu.matmul %356, %358, %cst_347 {dimension_numbers = #tpu.dot_dimension_numbers<[1], [0], [0], [1], [0, 0, 1, 1], [], []>} : vector<1x32xf32>, vector<32x32xf32>, vector<1x32xf32> -> vector<1x32xf32>
    %360 = arith.addf %355, %359 : vector<1x32xf32>
    %c0_348 = arith.constant 0 : index
    %c0_349 = arith.constant 0 : index
    %361 = vector.load %arg18[%c0_348, %c0_349] : memref<1x32xf32, #tpu.memory_space<vmem>>, vector<1x32xf32>
    %362 = arith.addf %360, %361 : vector<1x32xf32>
    %cst_350 = arith.constant 0.000000e+00 : f32
    %363 = vector.broadcast %cst_350 : f32 to vector<1x32xf32>
    %364 = arith.cmpf ogt, %362, %363 : vector<1x32xf32>
    %cst_351 = arith.constant 0.00999999977 : f32
    %365 = vector.broadcast %cst_351 : f32 to vector<1x32xf32>
    %366 = arith.mulf %365, %362 : vector<1x32xf32>
    %367 = arith.select %364, %362, %366 : vector<1x32xi1>, vector<1x32xf32>
    %c0_352 = arith.constant 0 : index
    %c0_353 = arith.constant 0 : index
    %368 = vector.load %arg19[%c0_352, %c0_353] : memref<32x8xf32, #tpu.memory_space<vmem>>, vector<32x8xf32>
    %cst_354 = arith.constant dense<0.000000e+00> : vector<1x8xf32>
    %369 = tpu.matmul %367, %368, %cst_354 {dimension_numbers = #tpu.dot_dimension_numbers<[1], [0], [0], [1], [0, 0, 1, 1], [], []>} : vector<1x32xf32>, vector<32x8xf32>, vector<1x8xf32> -> vector<1x8xf32>
    %c0_355 = arith.constant 0 : index
    %c0_356 = arith.constant 0 : index
    %370 = vector.load %arg20[%c0_355, %c0_356] : memref<1x8xf32, #tpu.memory_space<vmem>>, vector<1x8xf32>
    %371 = arith.addf %369, %370 : vector<1x8xf32>
    %cst_357 = arith.constant 0.000000e+00 : f32
    %372 = vector.broadcast %cst_357 : f32 to vector<1x8xf32>
    %373 = arith.cmpf ogt, %371, %372 : vector<1x8xf32>
    %cst_358 = arith.constant 0.00999999977 : f32
    %374 = vector.broadcast %cst_358 : f32 to vector<1x8xf32>
    %375 = arith.mulf %374, %371 : vector<1x8xf32>
    %376 = arith.select %373, %371, %375 : vector<1x8xi1>, vector<1x8xf32>
    %c0_359 = arith.constant 0 : index
    %c0_360 = arith.constant 0 : index
    %377 = vector.load %arg21[%c0_359, %c0_360] : memref<2x8xf32, #tpu.memory_space<vmem>>, vector<1x8xf32>
    tpu.vector_store %arg21[%c0_359, %c0_360], %376 {strides = array<i32>} : memref<2x8xf32, #tpu.memory_space<vmem>>, vector<1x8xf32>,
    %c2_361 = arith.constant 2 : index
    %c0_362 = arith.constant 0 : index
    %378 = vector.load %arg23[%c2_361, %c0_362] : memref<4x32xf32, #tpu.memory_space<vmem>>, vector<1x32xf32>
    %c0_363 = arith.constant 0 : index
    %c0_364 = arith.constant 0 : index
    %c0_365 = arith.constant 0 : index
    %379 = vector.load %arg17[%c0_363, %c0_364, %c0_365] : memref<2x32x32xf32, #tpu.memory_space<vmem>>, vector<1x32x32xf32>
    %380 = vector.shape_cast %379 : vector<1x32x32xf32> to vector<32x32xf32>
    %cst_366 = arith.constant dense<0.000000e+00> : vector<1x32xf32>
    %381 = tpu.matmul %378, %380, %cst_366 {dimension_numbers = #tpu.dot_dimension_numbers<[1], [0], [0], [1], [0, 0, 1, 1], [], []>} : vector<1x32xf32>, vector<32x32xf32>, vector<1x32xf32> -> vector<1x32xf32>
    %c3_367 = arith.constant 3 : index
    %c0_368 = arith.constant 0 : index
    %382 = vector.load %arg23[%c3_367, %c0_368] : memref<4x32xf32, #tpu.memory_space<vmem>>, vector<1x32xf32>
    %c1_369 = arith.constant 1 : index
    %c0_370 = arith.constant 0 : index
    %c0_371 = arith.constant 0 : index
    %383 = vector.load %arg17[%c1_369, %c0_370, %c0_371] : memref<2x32x32xf32, #tpu.memory_space<vmem>>, vector<1x32x32xf32>
    %384 = vector.shape_cast %383 : vector<1x32x32xf32> to vector<32x32xf32>
    %cst_372 = arith.constant dense<0.000000e+00> : vector<1x32xf32>
    %385 = tpu.matmul %382, %384, %cst_372 {dimension_numbers = #tpu.dot_dimension_numbers<[1], [0], [0], [1], [0, 0, 1, 1], [], []>} : vector<1x32xf32>, vector<32x32xf32>, vector<1x32xf32> -> vector<1x32xf32>
    %386 = arith.addf %381, %385 : vector<1x32xf32>
    %c0_373 = arith.constant 0 : index
    %c0_374 = arith.constant 0 : index
    %387 = vector.load %arg18[%c0_373, %c0_374] : memref<1x32xf32, #tpu.memory_space<vmem>>, vector<1x32xf32>
    %388 = arith.addf %386, %387 : vector<1x32xf32>
    %cst_375 = arith.constant 0.000000e+00 : f32
    %389 = vector.broadcast %cst_375 : f32 to vector<1x32xf32>
    %390 = arith.cmpf ogt, %388, %389 : vector<1x32xf32>
    %cst_376 = arith.constant 0.00999999977 : f32
    %391 = vector.broadcast %cst_376 : f32 to vector<1x32xf32>
    %392 = arith.mulf %391, %388 : vector<1x32xf32>
    %393 = arith.select %390, %388, %392 : vector<1x32xi1>, vector<1x32xf32>
    %c0_377 = arith.constant 0 : index
    %c0_378 = arith.constant 0 : index
    %394 = vector.load %arg19[%c0_377, %c0_378] : memref<32x8xf32, #tpu.memory_space<vmem>>, vector<32x8xf32>
    %cst_379 = arith.constant dense<0.000000e+00> : vector<1x8xf32>
    %395 = tpu.matmul %393, %394, %cst_379 {dimension_numbers = #tpu.dot_dimension_numbers<[1], [0], [0], [1], [0, 0, 1, 1], [], []>} : vector<1x32xf32>, vector<32x8xf32>, vector<1x8xf32> -> vector<1x8xf32>
    %c0_380 = arith.constant 0 : index
    %c0_381 = arith.constant 0 : index
    %396 = vector.load %arg20[%c0_380, %c0_381] : memref<1x8xf32, #tpu.memory_space<vmem>>, vector<1x8xf32>
    %397 = arith.addf %395, %396 : vector<1x8xf32>
    %cst_382 = arith.constant 0.000000e+00 : f32
    %398 = vector.broadcast %cst_382 : f32 to vector<1x8xf32>
    %399 = arith.cmpf ogt, %397, %398 : vector<1x8xf32>
    %cst_383 = arith.constant 0.00999999977 : f32
    %400 = vector.broadcast %cst_383 : f32 to vector<1x8xf32>
    %401 = arith.mulf %400, %397 : vector<1x8xf32>
    %402 = arith.select %399, %397, %401 : vector<1x8xi1>, vector<1x8xf32>
    %c1_384 = arith.constant 1 : index
    %c0_385 = arith.constant 0 : index
    %403 = vector.load %arg21[%c1_384, %c0_385] : memref<2x8xf32, #tpu.memory_space<vmem>>, vector<1x8xf32>
    tpu.vector_store %arg21[%c1_384, %c0_385], %402 {strides = array<i32>} : memref<2x8xf32, #tpu.memory_space<vmem>>, vector<1x8xf32>,
    return
  }
}

</mosaic_0001>

<bundles_post_ra>
// kernel: tpu_custom_call.1
= control target key start
LH: loop header
LB: loop body
LE: loop exit
PB: predicated region body
PF: predicated region fallthrough
CT: control target
= control target key end

     0   :  { %s3833_s0 = inlined_call_operand.vmem [shape: f32[32,64], index: 0, kind: input, shape index: {}]   ;;  %s3834_s1 = inlined_call_operand.hbm [shape: f32[9,56,112], index: 1, kind: input, shape index: {}]   ;;  %s3835_s2 = inlined_call_operand.vmem [shape: f32[1,112], index: 2, kind: input, shape index: {}]   ;;  %s3836_s3 = inlined_call_operand.vmem [shape: f32[1,8], index: 3, kind: input, shape index: {}]   ;;  %s3837_s4 = inlined_call_operand.vmem [shape: f32[1,8], index: 4, kind: input, shape index: {}]   ;;  %s3838_s5 = inlined_call_operand.vmem [shape: f32[112,8], index: 5, kind: input, shape index: {}]   ;;  %s3839_s6 = inlined_call_operand.vmem [shape: f32[8,112], index: 6, kind: input, shape index: {}]   ;;  %s3840_s7 = inlined_call_operand.vmem [shape: f32[2,7,14], index: 7, kind: input, shape index: {}]   ;;  %s3841_s8 = inlined_call_operand.vmem [shape: f32[2,112,56], index: 8, kind: input, shape index: {}]   ;;  %s3842_s9 = inlined_call_operand.vmem [shape: f32[9,40,80], index: 9, kind: input, shape index: {}]   ;;  %s3843_s10 = inlined_call_operand.vmem [shape: f32[1,80], index: 10, kind: input, shape index: {}]   ;;  %s3844_s11 = inlined_call_operand.vmem [shape: f32[1,16], index: 11, kind: input, shape index: {}]   ;;  %s3845_s12 = inlined_call_operand.vmem [shape: f32[1,16], index: 12, kind: input, shape index: {}]   ;;  %s3846_s13 = inlined_call_operand.vmem [shape: f32[80,16], index: 13, kind: input, shape index: {}]   ;;  %s3847_s14 = inlined_call_operand.vmem [shape: f32[16,80], index: 14, kind: input, shape index: {}]   ;;  %s3848_s15 = inlined_call_operand.vmem [shape: f32[2,2,5], index: 15, kind: input, shape index: {}]   ;;  %s3849_s16 = inlined_call_operand.vmem [shape: f32[2,80,32], index: 16, kind: input, shape index: {}]   ;;  %s3850_s17 = inlined_call_operand.vmem [shape: f32[2,32,32], index: 17, kind: input, shape index: {}]   ;;  %s3851_s18 = inlined_call_operand.vmem [shape: f32[1,32], index: 18, kind: input, shape index: {}]   ;;  %s3852_s19 = inlined_call_operand.vmem [shape: f32[32,8], index: 19, kind: input, shape index: {}]   ;;  %s3853_s20 = inlined_call_operand.vmem [shape: f32[1,8], index: 20, kind: input, shape index: {}]   ;;  %s3854_s21 = inlined_call_operand.hbm [shape: f32[2,8], index: 21, kind: output, shape index: {}]  }
   0x1   :  { %3861 = sst [smem:[#allocation14_spill]] %s3833_s0 }
   0x2   :  { %3862 = sst [smem:[#allocation15_spill]] %s3834_s1 }
   0x3   :  { %3863 = sst [smem:[#allocation16_spill]] %s3835_s2 }
   0x4   :  { %3864 = sst [smem:[#allocation17_spill]] %s3836_s3 }
   0x5   :  { %3865 = sst [smem:[#allocation18_spill]] %s3837_s4 }
   0x6   :  { %3866 = sst [smem:[#allocation19_spill]] %s3838_s5 }
   0x7   :  { %26 = vsyncpa [#allocation5], 0 }
   0x8   :  { %27 = vsyncpa [#allocation6], 0  ;;  %s3867_s26 = sld [smem:[#allocation15_spill]]  ;;  %s2579_s3 = smov [#allocation4]  }
   0x9   :  { %s36_s28 = sshll.u32 %s2579_s3, 4  ;;  %s2580_s29 = smov 128   ;;  %s37_s28 = int_to_ptr.vmem [resolvable:$true] %s36_s28 }
   0xa   :  { %s2581_s0 = smov 8  }
   0xe   :  { %s34_s27 = sshll.u32 %s3867_s26, 4  ;;  %s35_s27 = int_to_ptr.hbm [resolvable:$true] %s34_s27 }
   0xf   :  { %42 = dma.hbm_to_vmem [thread:$0]  %s35_s27, 8064, %s37_s28, [#allocation5], %s2580_s29, %s2580_s29, %s2581_s0  }
  0x10   :  { %2575 = dma.done.wait [#allocation5], 8064  }
  0x11   :  { %2576 = vsyncadd [#allocation5], 4294959232  ;;  %s3868_s5 = sld [smem:[#allocation14_spill]]  ;;  %s2582_s1 = smov 124   ;;  %v2758_v7 = vld [vmem:[#allocation4 + $0x68] sm:$0xff]  ;;  %v2760_v8 = vld [vmem:[#allocation4 + $0x30] sm:$0xff] }
  0x12   :  { %s2583_s25 = smov 120   ;;  %v2762_v9 = vld [vmem:[#allocation4 + $0x60] sm:$0xff]  ;;  %122 = vmatpush.msra.mxu0 %v2758_v7  ;;  %149 = vmatpush.msra.mxu1 %v2760_v8  ;;  %v2766_v10 = vld [vmem:[#allocation4 + $0x28] sm:$0xff]  ;;  %v2768_v11 = vld [vmem:[#allocation4 + $0x58] sm:$0xff]  ;;  %vm108_vm0 = vcmask 457728   ;;  %s3877_s4 = sld [smem:[#allocation19_spill]] }
  0x13   :  { %v2770_v12 = vld [vmem:[#allocation4 + $0x20] sm:$0xff]  ;;  %v2776_v14 = vld [vmem:[#allocation4 + $0x50] sm:$0xff]  ;;  %v2778_v15 = vld [vmem:[#allocation4 + $0x18] sm:$0xff]  ;;  %s3878_s29 = sld [smem:[#allocation16_spill]]  ;;  %vm753_vm1 = vcmask 914432   ;;  %vm751_vm2 = vcmask 916480  }
  0x14   :  { %123 = vmatpush.msra.mxu0 %v2762_v9  ;;  %150 = vmatpush.msra.mxu1 %v2766_v10  ;;  %v2774_v13 = vld [vmem:[#allocation4 + $0xa0] sm:$0xff]  ;;  %v2783_v16 = vld [vmem:[#allocation4 + $0x98] sm:$0xff]  ;;  %v2789_v17 = vld [vmem:[#allocation4 + $0x48] sm:$0xff]  ;;  %s3879_s27 = sld [smem:[#allocation17_spill]]  ;;  %vm876_vm6 = vcmask 64512   ;;  %vm940_vm7 = vcmask 1045504  }
  0x15   :  { %188 = vmatpush.msra.mxu2 %v2774_v13  ;;  %v2791_v18 = vld [vmem:[#allocation4 + $0x10] sm:$0xff]  ;;  %v2800_v20 = vld [vmem:[#allocation4 + $0xd8] sm:$0xff]  ;;  %v2806_v22 = vld [vmem:[#allocation4 + $0x40] sm:$0xff]  ;;  %s3880_s28 = sld [smem:[#allocation18_spill]]  ;;  %vm936_vm10 = vcmask 113664   ;;  %vm1063_vm13 = vcmask 456704  }
  0x16   :  { %124 = vmatpush.msra.mxu0 %v2768_v11  ;;  %151 = vmatpush.msra.mxu1 %v2770_v12  ;;  %v2802_v21 = vld [vmem:[#allocation4 + $0x90] sm:$0xff]  ;;  %v2808_v23 = vld [vmem:[#allocation4 + $0x8] sm:$0xff]  ;;  %v2816_v25 = vld [vmem:[#allocation4 + $0x38] sm:$0xff]  ;;  %vm1215_vm14 = vcmask 326656   ;;  %s2584_s22 = smov 112   ;;  %vm1706_vm15 = vcmask 651264  }
  0x17   :  { %v2702_v0 = vld [vmem:[%s3868_s5] sm:$0xff]  ;;  %v2707_v1 = vld [vmem:[%s3868_s5 + $0x8] sm:$0x3f]  ;;  %v2754_v6 = vld [vmem:[%s3868_s5 + $0x10] sm:$0xff]  ;;  %189 = vmatpush.msra.mxu2 %v2783_v16  ;;  %229 = vmatpush.msra.mxu3 %v2800_v20 }
  0x18   :  { %104 = vrot.lane.b32.xlu0 %v2702_v0, %s2582_s1  ;;  %106 = vrot.lane.b32.xlu1 %v2707_v1, %s2582_s1  ;;  %v2716_v2 = vld [vmem:[%s3868_s5 + $0x1] sm:$0xff]  ;;  %v2734_v4 = vld [vmem:[%s3868_s5 + $0x9] sm:$0x3f]  ;;  %v2818_v26 = vld [vmem:[#allocation4] sm:$0xff] }
  0x19   :  { %253 = vrot.lane.b32.xlu2 %v2716_v2, %s2582_s1  ;;  %v2729_v3 = vld [vmem:[%s3868_s5 + $0x2] sm:$0xff]  ;;  %v2745_v5 = vld [vmem:[%s3868_s5 + $0xa] sm:$0x3f]  ;;  %v2796_v19 = vld [vmem:[%s3868_s5 + $0x18] sm:$0x3f]  ;;  %125 = vmatpush.msra.mxu0 %v2776_v14 }
  0x1a   :  { %152 = vmatpush.msra.mxu1 %v2778_v15  ;;  %v2813_v24 = vld [vmem:[#allocation4 + $0xd0] sm:$0xff]  ;;  %190 = vmatpush.msra.mxu2 %v2802_v21  ;;  %v2824_v27 = vld [vmem:[%s3868_s5 + $0x11] sm:$0xff]  ;;  %v2840_v28 = vld [vmem:[%s3868_s5 + $0x19] sm:$0x3f] }
  0x1b   :  { %126 = vmatpush.msra.mxu0 %v2789_v17  ;;  %3869 = vst [vmem:[#allocation10_spill] sm:$0xff] %v2824_v27  ;;  %230 = vmatpush.msra.mxu3 %v2813_v24  ;;  %v2849_v29 = vld [vmem:[%s3868_s5 + $0x12] sm:$0xff]  ;;  %v2856_v30 = vld [vmem:[%s3868_s5 + $0x1a] sm:$0x3f]  ;;  %v2876_v35 = vld [vmem:[#allocation4 + $0x110] sm:$0xff] }
  0x1c   :  { %153 = vmatpush.msra.mxu1 %v2791_v18  ;;  %3870 = vst [vmem:[#allocation11_spill] sm:$0xff] %v2840_v28  ;;  %v2866_v31 = vld [vmem:[#allocation4 + $0x88] sm:$0xff]  ;;  %v2870_v33 = vld [vmem:[#allocation4 + $0x80] sm:$0xff]  ;;  %v2879_v36 = vld [vmem:[#allocation4 + $0x78] sm:$0xff] }
  0x1d   :  { %127 = vmatpush.msra.mxu0 %v2806_v22  ;;  %3871 = vst [vmem:[#allocation12_spill] sm:$0xff] %v2849_v29  ;;  %v2868_v32 = vld [vmem:[#allocation4 + $0xc8] sm:$0xff]  ;;  %191 = vmatpush.msra.mxu2 %v2866_v31  ;;  %v2874_v34 = vld [vmem:[#allocation4 + $0xc0] sm:$0xff]  ;;  %v2881_v37 = vld [vmem:[#allocation4 + $0xb8] sm:$0xff] }
  0x1e   :  { %154 = vmatpush.msra.mxu1 %v2808_v23  ;;  %3872 = vst [vmem:[#allocation13_spill] sm:$0xff] %v2856_v30  ;;  %231 = vmatpush.msra.mxu3 %v2868_v32  ;;  %v2883_v38 = vld [vmem:[#allocation4 + $0x108] sm:$0xff]  ;;  %v2887_v39 = vld [vmem:[#allocation4 + $0x100] sm:$0xff]  ;;  %v2892_v41 = vld [vmem:[#allocation4 + $0x70] sm:$0xff] }
  0x1f   :  { %128 = vmatpush.msra.mxu0 %v2816_v25  ;;  %192 = vmatpush.msra.mxu2 %v2870_v33  ;;  %v2889_v40 = vld [vmem:[#allocation4 + $0x148] sm:$0xff]  ;;  %v2894_v42 = vld [vmem:[#allocation4 + $0xb0] sm:$0xff]  ;;  %v2906_v44 = vld [vmem:[#allocation4 + $0xf8] sm:$0xff] }
  0x20   :  { %171 = vrot.lane.b32.xlu0 %v2702_v0, %s2583_s25  ;;  %173 = vrot.lane.b32.xlu1 %v2707_v1, %s2583_s25  ;;  %v2904_v43 = vld [vmem:[#allocation4 + $0xa8] sm:$0xff]  ;;  %v2908_v45 = vld [vmem:[#allocation4 + $0x140] sm:$0xff]  ;;  %v2914_v47 = vld [vmem:[#allocation4 + $0xf0] sm:$0xff] }
  0x21   :  { %294 = vrot.lane.b32.xlu2 %v2716_v2, %s2583_s25  ;;  %155 = vmatpush.msra.mxu1 %v2818_v26  ;;  %v2916_v48 = vld [vmem:[#allocation4 + $0x138] sm:$0xff]  ;;  %v2918_v49 = vld [vmem:[#allocation4 + $0x180] sm:$0xff]  ;;  %v2923_v50 = vld [vmem:[#allocation4 + $0xe8] sm:$0xff] }
  0x22   :  { %2324 = vmatmul.msk.f32.vlgmr.msra.gmra.mxu1 %vm108_vm0, %v2702_v0  ;;  %270 = vmatpush.msrb.mxu0 %v2876_v35  ;;  %v2925_v51 = vld [vmem:[#allocation4 + $0x178] sm:$0xff]  ;;  %v2929_v52 = vld [vmem:[#allocation4 + $0x130] sm:$0xff]  ;;  %v2935_v54 = vld [vmem:[#allocation4 + $0xe0] sm:$0xff] }
  0x23   :  { %232 = vmatpush.msra.mxu3 %v2874_v34  ;;  %311 = vmatpush.msrb.mxu1 %v2889_v40  ;;  %v2931_v53 = vld [vmem:[#allocation4 + $0x1b8] sm:$0xff]  ;;  %v2937_v55 = vld [vmem:[#allocation4 + $0x170] sm:$0xff]  ;;  %v2943_v57 = vld [vmem:[#allocation4 + $0x128] sm:$0xff] }
  0x24   :  { %271 = vmatpush.msrb.mxu0 %v2883_v38  ;;  %193 = vmatpush.msra.mxu2 %v2879_v36  ;;  %v2939_v56 = vld [vmem:[#allocation4 + $0x1b0] sm:$0xff]  ;;  %v2950_v58 = vld [vmem:[#allocation4 + $0x120] sm:$0xff]  ;;  %v2952_v59 = vld [vmem:[#allocation4 + $0x168] sm:$0xff] }
  0x25   :  { %233 = vmatpush.msra.mxu3 %v2881_v37  ;;  %312 = vmatpush.msrb.mxu1 %v2908_v45  ;;  %v2954_v60 = vld [vmem:[#allocation4 + $0x1a8] sm:$0xff]  ;;  %v2958_v61 = vld [vmem:[#allocation4 + $0x1a0] sm:$0xff]  ;;  %v2960_v63 = vld [vmem:[#allocation4 + $0x118] sm:$0xff] }
  0x26   :  { %272 = vmatpush.msrb.mxu0 %v2887_v39  ;;  %194 = vmatpush.msra.mxu2 %v2892_v41  ;;  %v2962_v0 = vld [vmem:[#allocation4 + $0x160] sm:$0xff] }
  0x27   :  { %234 = vmatpush.msra.mxu3 %v2894_v42  ;;  %313 = vmatpush.msrb.mxu1 %v2916_v48 }
  0x28   :  { %376 = vrot.lane.b32.xlu1 %v2729_v3, %s2582_s1  ;;  %255 = vrot.lane.b32.xlu0 %v2734_v4, %s2582_s1 }
  0x29   :  { %296 = vrot.lane.b32.xlu2 %v2734_v4, %s2583_s25  ;;  %235 = vmatpush.msra.mxu3 %v2904_v43 }
  0x2a   :  { %2325 = vmatmul.msk.f32.gmra.mxu1 %vm108_vm0, %v2707_v1  ;;  %273 = vmatpush.msrb.mxu0 %v2906_v44  ;;  %v2967_v1 = vld [vmem:[#allocation4 + $0x158] sm:$0xff] }
  0x2b   :  { %2328 = vmatmul.msk.f32.vlgmr.msra.gmra.mxu3 %vm108_vm0, %v2716_v2  ;;  %352 = vmatpush.msrb.mxu2 %v2918_v49  ;;  %v2971_v2 = vld [vmem:[#allocation4 + $0x198] sm:$0xff] }
  0x2c   :  { %274 = vmatpush.msrb.mxu0 %v2914_v47  ;;  %393 = vmatpush.msrb.mxu3 %v2931_v53 }
  0x2d   :  { %353 = vmatpush.msrb.mxu2 %v2925_v51  ;;  %314 = vmatpush.msrb.mxu1 %v2929_v52 }
  0x2e   :  { %275 = vmatpush.msrb.mxu0 %v2923_v50  ;;  %394 = vmatpush.msrb.mxu3 %v2939_v56 }
  0x2f   :  { %354 = vmatpush.msrb.mxu2 %v2937_v55  ;;  %315 = vmatpush.msrb.mxu1 %v2943_v57 }
  0x30   :  { %417 = vrot.lane.b32.xlu1 %v2729_v3, %s2583_s25  ;;  %378 = vrot.lane.b32.xlu0 %v2745_v5, %s2582_s1 }
  0x31   :  { %460 = vrot.lane.b32.xlu2 %v2754_v6, %s2582_s1  ;;  %276 = vmatpush.msrb.mxu0 %v2935_v54 }
  0x32   :  { %355 = vmatpush.msrb.mxu2 %v2952_v59  ;;  %395 = vmatpush.msrb.mxu3 %v2954_v60 }
  0x33   :  { %316 = vmatpush.msrb.mxu1 %v2950_v58  ;;  %2329 = vmatmul.msk.f32.gmra.mxu3 %vm108_vm0, %v2734_v4  ;;  %v2984_v4 = vld [vmem:[#allocation4 + $0x188] sm:$0xff] }
  0x34   :  { %396 = vmatpush.msrb.mxu3 %v2958_v61  ;;  %356 = vmatpush.msrb.mxu2 %v2962_v0 }
  0x35   :  { %317 = vmatpush.msrb.mxu1 %v2960_v63 }
  0x36   :  { %357 = vmatpush.msrb.mxu2 %v2967_v1  ;;  %397 = vmatpush.msrb.mxu3 %v2971_v2 }
  0x37   :  { %477 = vmatpush.msra.mxu1 %v2758_v7  ;;  %v416_v7 = vld [vmem:[#allocation4 + $0x1f0] sm:$0xff] }
  0x38   :  { %518 = vrot.lane.b32.xlu1 %v2754_v6, %s2583_s25  ;;  %419 = vrot.lane.b32.xlu0 %v2745_v5, %s2583_s25 }
  0x39   :  { %462 = vrot.lane.b32.xlu2 %v2796_v19, %s2582_s1  ;;  %478 = vmatpush.msra.mxu1 %v2762_v9  ;;  %v415_v9 = vld [vmem:[#allocation4 + $0x1e8] sm:$0xff] }
  0x3b   :  { %479 = vmatpush.msra.mxu1 %v2768_v11 }
  0x3d   :  { %480 = vmatpush.msra.mxu1 %v2776_v14  ;;  %v413_v14 = vld [vmem:[#allocation4 + $0x1d8] sm:$0xff] }
  0x3f   :  { %481 = vmatpush.msra.mxu1 %v2789_v17 }
  0x40   :  { %520 = vrot.lane.b32.xlu0 %v2796_v19, %s2583_s25  ;;  %584 = vrot.lane.b32.xlu1 %v2824_v27, %s2582_s1 }
  0x41   :  { %617 = vrot.lane.b32.xlu2 %v2824_v27, %s2583_s25  ;;  %482 = vmatpush.msra.mxu1 %v2806_v22  ;;  %v411_v22 = vld [vmem:[#allocation4 + $0x1c8] sm:$0xff] }
  0x43   :  { %483 = vmatpush.msra.mxu1 %v2816_v25  ;;  %v3010_v25 = vld [vmem:[#allocation4 + $0x1c0] sm:$0xff] }
  0x48   :  { %586 = vrot.lane.b32.xlu0 %v2840_v28, %s2582_s1  ;;  %619 = vrot.lane.b32.xlu1 %v2840_v28, %s2583_s25  ;;  %v2978_v28 = vld [vmem:[#allocation4 + $0x190] sm:$0xff] }
  0x49   :  { %683 = vrot.lane.b32.xlu2 %v2849_v29, %s2582_s1  ;;  %398 = vmatpush.msrb.mxu3 %v2978_v28 }
  0x4b   :  { %399 = vmatpush.msrb.mxu3 %v2984_v4 }
  0x4d   :  { %535 = vmatpush.msra.mxu3 %v2774_v13  ;;  %v414_v13 = vld [vmem:[#allocation4 + $0x1e0] sm:$0xff] }
  0x4f   :  { %536 = vmatpush.msra.mxu3 %v2783_v16  ;;  %v3002_v16 = vld [vmem:[#allocation4 + $0x1d0] sm:$0xff] }
  0x50   :  { %716 = vrot.lane.b32.xlu0 %v2849_v29, %s2583_s25  ;;  %685 = vrot.lane.b32.xlu1 %v2856_v30, %s2582_s1 }
  0x51   :  { %718 = vrot.lane.b32.xlu2 %v2856_v30, %s2583_s25  ;;  %v2974_v30 = vld [vmem:[#allocation4 + $0x150] sm:$0xff]  ;;  %537 = vmatpush.msra.mxu3 %v2802_v21 }
  0x52   :  { %358 = vmatpush.msrb.mxu2 %v2974_v30 }
  0x53   :  { %538 = vmatpush.msra.mxu3 %v2866_v31  ;;  %v3875_v31 = vld [vmem:[#allocation11_spill] sm:$0xff] }
  0x55   :  { %539 = vmatpush.msra.mxu3 %v2870_v33 }
  0x57   :  { %540 = vmatpush.msra.mxu3 %v2879_v36 }
  0x59   :  { %541 = vmatpush.msra.mxu3 %v2892_v41 }
  0x73   :  { %v2912_v46 = vpop.permute.xlu2 %253 }
  0x7b   :  { %v295_v62 = vpop.permute.xlu2 %294 }
  0x7c   :  { %2332 = vmatmul.msk.f32.vlgmr.msrb.gmra.mxu1 %vm108_vm0, %v295_v62 }
  0x7d   :  { %601 = vmatpush.msrb.mxu1 %v2876_v35 }
  0x7f   :  { %602 = vmatpush.msrb.mxu1 %v2883_v38 }
  0x81   :  { %603 = vmatpush.msrb.mxu1 %v2887_v39 }
  0x83   :  { %v297_v29 = vpop.permute.xlu2 %296  ;;  %604 = vmatpush.msrb.mxu1 %v2906_v44 }
  0x84   :  { %2333 = vmatmul.msk.f32.gmra.mxu1 %vm108_vm0, %v297_v29 }
  0x85   :  { %605 = vmatpush.msrb.mxu1 %v2914_v47 }
  0x87   :  { %606 = vmatpush.msrb.mxu1 %v2923_v50 }
  0x89   :  { %607 = vmatpush.msrb.mxu1 %v2935_v54 }
  0x8a   :  { %v105_v62 = vpop.permute.xlu0 %104  ;;  %v107_v27 = vpop.permute.xlu1 %106 }
  0x8b   :  { %2322 = vmatmul.msk.f32.vlgmr.msra.gmra.mxu0 %vm108_vm0, %v105_v62  ;;  %v461_v11 = vpop.permute.xlu2 %460 }
  0x8c   :  { %434 = vmatpush.msra.mxu0 %v416_v7  ;;  %2340 = vmatmul.msk.f32.vlgmr.msra.gmra.mxu1 %vm108_vm0, %v461_v11 }
  0x8d   :  { %733 = vmatpush.msra.mxu1 %v416_v7 }
  0x8e   :  { %435 = vmatpush.msra.mxu0 %v415_v9 }
  0x8f   :  { %734 = vmatpush.msra.mxu1 %v415_v9  ;;  %v804_v9 = vld [vmem:[%s3877_s4 + $0x48] sm:$0xff] }
  0x90   :  { %436 = vmatpush.msra.mxu0 %v414_v13 }
  0x91   :  { %735 = vmatpush.msra.mxu1 %v414_v13 }
  0x92   :  { %v172_v17 = vpop.permute.xlu0 %171  ;;  %v174_v21 = vpop.permute.xlu1 %173  ;;  %437 = vmatpush.msra.mxu0 %v413_v14 }
  0x93   :  { %2323 = vmatmul.msk.f32.gmra.mxu0 %vm108_vm0, %v107_v27  ;;  %2326 = vmatmul.msk.f32.vlgmr.msra.gmra.mxu2 %vm108_vm0, %v172_v17  ;;  %v463_v29 = vpop.permute.xlu2 %462 }
  0x94   :  { %504 = vmatpush.msra.mxu2 %v2760_v8  ;;  %438 = vmatpush.msra.mxu0 %v3002_v16 }
  0x95   :  { %2341 = vmatmul.msk.f32.gmra.mxu1 %vm108_vm0, %v463_v29 }
  0x96   :  { %505 = vmatpush.msra.mxu2 %v2766_v10  ;;  %439 = vmatpush.msra.mxu0 %v411_v22 }
  0x97   :  { %736 = vmatpush.msra.mxu1 %v413_v14  ;;  %v803_v14 = vld [vmem:[%s3877_s4 + $0x40] sm:$0xff] }
  0x98   :  { %506 = vmatpush.msra.mxu2 %v2770_v12  ;;  %440 = vmatpush.msra.mxu0 %v3010_v25 }
  0x99   :  { %737 = vmatpush.msra.mxu1 %v3002_v16 }
  0x9a   :  { %v377_v8 = vpop.permute.xlu1 %376  ;;  %v256_v27 = vpop.permute.xlu0 %255  ;;  %507 = vmatpush.msra.mxu2 %v2778_v15 }
  0x9b   :  { %2327 = vmatmul.msk.f32.gmra.mxu2 %vm108_vm0, %v174_v21  ;;  %2330 = vmatmul.msk.f32.vlgmr.msrb.gmra.mxu0 %vm108_vm0, %v2912_v46 }
  0x9c   :  { %2336 = vmatmul.msk.f32.vlgmr.msrb.gmra.mxu3 %vm108_vm0, %v377_v8  ;;  %508 = vmatpush.msra.mxu2 %v2791_v18  ;;  %v801_v8 = vld [vmem:[%s3877_s4 + $0x30] sm:$0xff] }
  0x9d   :  { %568 = vmatpush.msrb.mxu0 %v2800_v20  ;;  %667 = vmatpush.msrb.mxu3 %v2918_v49  ;;  %v618_v20 = vpop.permute.xlu2 %617 }
  0x9e   :  { %509 = vmatpush.msra.mxu2 %v2808_v23  ;;  %738 = vmatpush.msra.mxu1 %v411_v22 }
  0x9f   :  { %569 = vmatpush.msrb.mxu0 %v2813_v24  ;;  %668 = vmatpush.msrb.mxu3 %v2925_v51  ;;  %v3873_v24 = vld [vmem:[#allocation10_spill] sm:$0xff] }
  0xa0   :  { %510 = vmatpush.msra.mxu2 %v2818_v26  ;;  %739 = vmatpush.msra.mxu1 %v3010_v25  ;;  %v802_v25 = vld [vmem:[%s3877_s4 + $0x38] sm:$0xff] }
  0xa1   :  { %570 = vmatpush.msrb.mxu0 %v2868_v32  ;;  %669 = vmatpush.msrb.mxu3 %v2937_v55 }
  0xa2   :  { %v418_v10 = vpop.permute.xlu1 %417  ;;  %v379_v12 = vpop.permute.xlu0 %378 }
  0xa3   :  { %2334 = vmatmul.msk.f32.vlgmr.msrb.gmra.mxu2 %vm108_vm0, %v2729_v3  ;;  %2331 = vmatmul.msk.f32.gmra.mxu0 %vm108_vm0, %v256_v27 }
  0xa4   :  { %2337 = vmatmul.msk.f32.gmra.mxu3 %vm108_vm0, %v379_v12  ;;  %571 = vmatpush.msrb.mxu0 %v2874_v34  ;;  %v157_v34 = vpop.f32.mrf.mxu1 }
  0xa5   :  { %634 = vmatpush.msrb.mxu2 %v2889_v40  ;;  %670 = vmatpush.msrb.mxu3 %v2952_v59  ;;  %v684_v26 = vpop.permute.xlu2 %683 }
  0xa6   :  { %572 = vmatpush.msrb.mxu0 %v2881_v37 }
  0xa7   :  { %635 = vmatpush.msrb.mxu2 %v2908_v45  ;;  %671 = vmatpush.msrb.mxu3 %v2962_v0  ;;  %v806_v0 = vld [vmem:[%s3877_s4 + $0x58] sm:$0xff] }
  0xa8   :  { %573 = vmatpush.msrb.mxu0 %v2894_v42 }
  0xa9   :  { %636 = vmatpush.msrb.mxu2 %v2916_v48  ;;  %672 = vmatpush.msrb.mxu3 %v2967_v1 }
  0xaa   :  { %v519_v3 = vpop.permute.xlu1 %518  ;;  %v420_v15 = vpop.permute.xlu0 %419  ;;  %574 = vmatpush.msrb.mxu0 %v2904_v43 }
  0xab   :  { %2335 = vmatmul.msk.f32.gmra.mxu2 %vm108_vm0, %v2745_v5  ;;  %2338 = vmatmul.msk.f32.vlgmr.msra.gmra.mxu0 %vm108_vm0, %v418_v10 }
  0xac   :  { %2344 = vmatmul.msk.f32.vlgmr.msra.gmra.mxu3 %vm108_vm0, %v519_v3  ;;  %637 = vmatpush.msrb.mxu2 %v2929_v52  ;;  %v160_v35 = vpop.f32.mrf.mxu1 }
  0xad   :  { %700 = vmatpush.msra.mxu0 %v2931_v53  ;;  %673 = vmatpush.msrb.mxu3 %v2974_v30  ;;  %v719_v32 = vpop.permute.xlu2 %718 }
  0xae   :  { %638 = vmatpush.msrb.mxu2 %v2943_v57  ;;  %v237_v37 = vpop.f32.mrf.mxu3  ;;  %v808_v57 = vld [vmem:[%s3877_s4 + $0x68] sm:$0xff] }
  0xaf   :  { %701 = vmatpush.msra.mxu0 %v2939_v56  ;;  %838 = vmatpush.msra.mxu3 %v808_v57 }
  0xb0   :  { %639 = vmatpush.msrb.mxu2 %v2950_v58 }
  0xb1   :  { %702 = vmatpush.msra.mxu0 %v2954_v60 }
  0xb2   :  { %v521_v5 = vpop.permute.xlu0 %520  ;;  %v585_v18 = vpop.permute.xlu1 %584  ;;  %640 = vmatpush.msrb.mxu2 %v2960_v63 }
  0xb3   :  { %2342 = vmatmul.msk.f32.vlgmr.msra.gmra.mxu2 %vm108_vm0, %v2754_v6  ;;  %2339 = vmatmul.msk.f32.gmra.mxu0 %vm108_vm0, %v420_v15  ;;  %v3874_v6 = vld [vmem:[#allocation12_spill] sm:$0xff]  ;;  %v800_v15 = vld [vmem:[%s3877_s4 + $0x28] sm:$0xff] }
  0xb4   :  { %2345 = vmatmul.msk.f32.gmra.mxu3 %vm108_vm0, %v521_v5  ;;  %2348 = vmatmul.msk.f32.vlgmr.msrb.gmra.mxu1 %vm108_vm0, %v585_v18 }
  0xb5   :  { %703 = vmatpush.msra.mxu0 %v2958_v61  ;;  %814 = vmatpush.msra.mxu2 %v808_v57  ;;  %v807_v61 = vld [vmem:[%s3877_s4 + $0x60] sm:$0xff] }
  0xb6   :  { %v240_v40 = vpop.f32.mrf.mxu3  ;;  %839 = vmatpush.msra.mxu3 %v807_v61 }
  0xb7   :  { %704 = vmatpush.msra.mxu0 %v2971_v2  ;;  %815 = vmatpush.msra.mxu2 %v807_v61 }
  0xb8   :  { %840 = vmatpush.msra.mxu3 %v806_v0 }
  0xb9   :  { %705 = vmatpush.msra.mxu0 %v2978_v28  ;;  %v3876_v28 = vld [vmem:[#allocation13_spill] sm:$0xff]  ;;  %816 = vmatpush.msra.mxu2 %v806_v0 }
  0xba   :  { %v587_v23 = vpop.permute.xlu0 %586 }
  0xbb   :  { %2343 = vmatmul.msk.f32.gmra.mxu2 %vm108_vm0, %v2796_v19  ;;  %2346 = vmatmul.msk.f32.vlgmr.msrb.gmra.mxu0 %vm108_vm0, %v3873_v24  ;;  %v620_v19 = vpop.permute.xlu1 %619 }
  0xbc   :  { %2352 = vmatmul.msk.f32.vlgmr.msrb.gmra.mxu3 %vm108_vm0, %v3874_v6  ;;  %2349 = vmatmul.msk.f32.gmra.mxu1 %vm108_vm0, %v587_v23 }
  0xbd   :  { %706 = vmatpush.msra.mxu0 %v2984_v4  ;;  %v805_v4 = vld [vmem:[%s3877_s4 + $0x50] sm:$0xff] }
  0xbe   :  { %817 = vmatpush.msra.mxu2 %v805_v4  ;;  %841 = vmatpush.msra.mxu3 %v805_v4 }
  0xc0   :  { %818 = vmatpush.msra.mxu2 %v804_v9  ;;  %842 = vmatpush.msra.mxu3 %v804_v9 }
  0xc2   :  { %v717_v30 = vpop.permute.xlu0 %716  ;;  %819 = vmatpush.msra.mxu2 %v803_v14  ;;  %843 = vmatpush.msra.mxu3 %v803_v14 }
  0xc3   :  { %2350 = vmatmul.msk.f32.vlgmr.msrb.gmra.mxu2 %vm108_vm0, %v618_v20  ;;  %2347 = vmatmul.msk.f32.gmra.mxu0 %vm108_vm0, %v3875_v31  ;;  %v686_v33 = vpop.permute.xlu1 %685  ;;  %v799_v20 = vld [vmem:[%s3877_s4 + $0x20] sm:$0xff] }
  0xc4   :  { %2353 = vmatmul.msk.f32.gmra.mxu3 %vm108_vm0, %v3876_v28  ;;  %2356 = vmatmul.msk.f32.vlgmr.msra.gmra.mxu1 %vm108_vm0, %v717_v30  ;;  %v2521_v31 = vld [vmem:[%s3878_s29] ss:$0 sm:$0xff] }
  0xc5   :  { %820 = vmatpush.msra.mxu2 %v802_v25  ;;  %844 = vmatpush.msra.mxu3 %v802_v25 }
  0xc7   :  { %821 = vmatpush.msra.mxu2 %v801_v8  ;;  %845 = vmatpush.msra.mxu3 %v801_v8 }
  0xc9   :  { %822 = vmatpush.msra.mxu2 %v800_v15  ;;  %846 = vmatpush.msra.mxu3 %v800_v15 }
  0xcb   :  { %2351 = vmatmul.msk.f32.gmra.mxu2 %vm108_vm0, %v620_v19  ;;  %2354 = vmatmul.msk.f32.vlgmr.msra.gmra.mxu0 %vm108_vm0, %v684_v26  ;;  %v798_v26 = vld [vmem:[%s3877_s4 + $0x18] sm:$0xff]  ;;  %v797_v19 = vld [vmem:[%s3877_s4 + $0x10] sm:$0xff] }
  0xcc   :  { %2357 = vmatmul.msk.f32.gmra.mxu1 %vm108_vm0, %v719_v32  ;;  %823 = vmatpush.msra.mxu2 %v799_v20  ;;  %v796_v32 = vld [vmem:[%s3877_s4 + $0x8] sm:$0xff] }
  0xcd   :  { %847 = vmatpush.msra.mxu3 %v799_v20 }
  0xce   :  { %824 = vmatpush.msra.mxu2 %v798_v26 }
  0xcf   :  { %848 = vmatpush.msra.mxu3 %v798_v26 }
  0xd0   :  { %825 = vmatpush.msra.mxu2 %v797_v19 }
  0xd1   :  { %849 = vmatpush.msra.mxu3 %v797_v19 }
  0xd2   :  { %826 = vmatpush.msra.mxu2 %v796_v32 }
  0xd3   :  { %2355 = vmatmul.msk.f32.gmra.mxu0 %vm108_vm0, %v686_v33  ;;  %850 = vmatpush.msra.mxu3 %v796_v32  ;;  %vm1749_vm0 = vcmask 654336  }
  0xf9   :  { %v319_v38 = vpop.f32.mrf.mxu1 }
 0x101   :  { %v322_v42 = vpop.f32.mrf.mxu1 }
 0x108   :  { %v130_v36 = vpop.f32.mrf.mxu0 }
 0x109   :  { %v485_v47 = vpop.f32.mrf.mxu1  ;;  %v158_v53 = vadd.f32 %v157_v34, %v130_v36 }
 0x110   :  { %v133_v39 = vpop.f32.mrf.mxu0 }
 0x111   :  { %v161_v51 = vadd.f32 %v160_v35, %v133_v39 }
 0x112   :  { %v488_v52 = vpop.f32.mrf.mxu1 }
 0x116   :  { %v196_v41 = vpop.f32.mrf.mxu2 }
 0x117   :  { %v202_v55 = vadd.f32 %v196_v41, %v158_v53 }
 0x118   :  { %v278_v43 = vpop.f32.mrf.mxu0 }
 0x119   :  { %v243_v63 = vadd.f32 %v237_v37, %v202_v55  ;;  %v795_v37 = vld [vmem:[%s3877_s4] sm:$0xff] }
 0x11a   :  { %827 = vmatpush.msra.mxu2 %v795_v37  ;;  %851 = vmatpush.msra.mxu3 %v795_v37 }
 0x11b   :  { %v284_v7 = vadd.f32 %v278_v43, %v243_v63 }
 0x11d   :  { %v325_v16 = vadd.f32 %v319_v38, %v284_v7 }
 0x11e   :  { %v199_v44 = vpop.f32.mrf.mxu2 }
 0x11f   :  { %v401_v45 = vpop.f32.mrf.mxu3  ;;  %v203_v54 = vadd.f32 %v199_v44, %v161_v51 }
 0x120   :  { %v281_v46 = vpop.f32.mrf.mxu0 }
 0x121   :  { %v244_v58 = vadd.f32 %v240_v40, %v203_v54 }
 0x123   :  { %v285_v1 = vadd.f32 %v281_v46, %v244_v58 }
 0x125   :  { %v326_v11 = vadd.f32 %v322_v42, %v285_v1 }
 0x126   :  { %v360_v48 = vpop.f32.mrf.mxu2 }
 0x127   :  { %v404_v49 = vpop.f32.mrf.mxu3  ;;  %v366_v29 = vadd.f32 %v360_v48, %v325_v16 }
 0x128   :  { %v442_v50 = vpop.f32.mrf.mxu0 }
 0x129   :  { %v407_v5 = vadd.f32 %v401_v45, %v366_v29 }
 0x12b   :  { %v448_v30 = vadd.f32 %v442_v50, %v407_v5 }
 0x12d   :  { %v3137_v38 = vadd.f32 %v2521_v31, %v448_v30 }
 0x12e   :  { %v363_v56 = vpop.f32.mrf.mxu2 }
 0x12f   :  { %v543_v60 = vpop.f32.mrf.mxu3  ;;  %v367_v17 = vadd.f32 %v363_v56, %v326_v11  ;;  %v762_v45 = vmul.f32 %v3137_v38, %v3137_v38  ;;  %v752_v48 = vsel %vm751_vm2, %v3137_v38, 0.0 }
 0x130   :  { %v445_v59 = vpop.f32.mrf.mxu0 }
 0x131   :  { %v609_v2 = vpop.f32.mrf.mxu1  ;;  %v408_v27 = vadd.f32 %v404_v49, %v367_v17  ;;  %v764_v54 = vsel %vm751_vm2, %v762_v45, 0.0 }
 0x133   :  { %v449_v23 = vadd.f32 %v445_v59, %v408_v27 }
 0x135   :  { %v3132_v33 = vadd.f32 %v2521_v31, %v449_v23 }
 0x136   :  { %v512_v62 = vpop.f32.mrf.mxu2 }
 0x137   :  { %v513_v21 = vadd.f32 %v512_v62, %v485_v47  ;;  %v546_v22 = vpop.f32.mrf.mxu3  ;;  %v763_v42 = vmul.f32 %v3132_v33, %v3132_v33  ;;  %v754_v46 = vsel %vm753_vm1, %v3132_v33, 0.0 }
 0x138   :  { %v576_v13 = vpop.f32.mrf.mxu0  ;;  %v755_v51 = vadd.f32 %v754_v46, %v752_v48 }
 0x139   :  { %v549_v10 = vadd.f32 %v543_v60, %v513_v21  ;;  %v612_v3 = vpop.f32.mrf.mxu1  ;;  %v765_v49 = vsel %vm753_vm1, %v763_v42, 0.0 }
 0x13a   :  { %v766_v57 = vadd.f32 %v765_v49, %v764_v54  ;;  %v756_v60 = vrot.slane %v755_v51, 4  ;;  %v872_v54 = vld [vmem:[%s3880_s28] sm:$0x1] }
 0x13b   :  { %v582_v24 = vadd.f32 %v576_v13, %v549_v10 }
 0x13c   :  { %v767_v1 = vrot.slane %v766_v57, 4  ;;  %v757_v4 = vadd.f32 %v756_v60, %v755_v51  ;;  %v3194_v60 = vld [vmem:[%s3841_s8 + $0xd0] sm:$0xff] }
 0x13d   :  { %v615_v34 = vadd.f32 %v609_v2, %v582_v24 }
 0x13e   :  { %v515_v12 = vpop.f32.mrf.mxu2  ;;  %v768_v9 = vadd.f32 %v767_v1, %v766_v57  ;;  %v758_v16 = vrot.slane %v757_v4, 2  ;;  %v3177_v57 = vld [vmem:[%s3841_s8 + $0x68] sm:$0xff]  ;;  %v3211_v1 = vld [vmem:[%s3841_s8 + $0x50] sm:$0xff] }
 0x13f   :  { %v516_v6 = vadd.f32 %v515_v12, %v488_v52  ;;  %v675_v28 = vpop.f32.mrf.mxu3 }
 0x140   :  { %v579_v18 = vpop.f32.mrf.mxu0  ;;  %v769_v25 = vrot.slane %v768_v9, 2  ;;  %v759_v27 = vadd.f32 %v758_v16, %v757_v4  ;;  %v3223_v4 = vld [vmem:[%s3841_s8 + $0x48] sm:$0xff]  ;;  %v3247_v16 = vld [vmem:[%s3841_s8 + $0x38] sm:$0xff] }
 0x141   :  { %v550_v35 = vadd.f32 %v546_v22, %v516_v6  ;;  %v741_v41 = vpop.f32.mrf.mxu1 }
 0x143   :  { %v583_v43 = vadd.f32 %v579_v18, %v550_v35  ;;  %v760_v18 = vrot.slane %v759_v27, 1 }
 0x145   :  { %v616_v50 = vadd.f32 %v612_v3, %v583_v43  ;;  %v770_v3 = vadd.f32 %v769_v25, %v768_v9  ;;  %v761_v30 = vadd.f32 %v760_v18, %v759_v27  ;;  %v3235_v9 = vld [vmem:[%s3841_s8 + $0x40] sm:$0xff]  ;;  %v2372_v18 = vld [vmem:[%s3841_s8 + $0x90] sm:$0xff] }
 0x146   :  { %v642_v36 = vpop.f32.mrf.mxu2 }
 0x147   :  { %v648_v39 = vadd.f32 %v642_v36, %v615_v34  ;;  %v678_v53 = vpop.f32.mrf.mxu3  ;;  %v771_v26 = vrot.slane %v770_v3, 1  ;;  %v875_v36 = vld [vmem:[%s3839_s6] sm:$0xff] }
 0x148   :  { %v708_v40 = vpop.f32.mrf.mxu0  ;;  %895 = vmatpush.msrb.mxu0 %v875_v36  ;;  %918 = vmatpush.msrb.mxu1 %v875_v36 }
 0x149   :  { %v681_v44 = vadd.f32 %v675_v28, %v648_v39  ;;  %v744_v61 = vpop.f32.mrf.mxu1  ;;  %v772_v32 = vadd.f32 %v771_v26, %v770_v3  ;;  %v3279_v3 = vld [vmem:[%s3841_s8 + $0x98] sm:$0xff] }
 0x14a   :  { %1009 = vmatpush.msra.mxu0 %v3177_v57 }
 0x14b   :  { %v714_v47 = vadd.f32 %v708_v40, %v681_v44 }
 0x14d   :  { %v747_v55 = vadd.f32 %v741_v41, %v714_v47 }
 0x14e   :  { %v645_v52 = vpop.f32.mrf.mxu2 }
 0x14f   :  { %v649_v56 = vadd.f32 %v645_v52, %v616_v50  ;;  %v3149_v63 = vadd.f32 %v2521_v31, %v747_v55  ;;  %v859_v50 = vld [vmem:[%s3879_s27] sm:$0x1]  ;;  %s2312_s27 = sshll.u32 %s3854_s21, 4  ;;  %s2313_s27 = int_to_ptr.hbm [resolvable:$true] %s2312_s27 }
 0x150   :  { %v711_v58 = vpop.f32.mrf.mxu0 }
 0x151   :  { %v682_v59 = vadd.f32 %v678_v53, %v649_v56  ;;  %v782_v7 = vmul.f32 %v3149_v63, %v3149_v63  ;;  %v773_v11 = vsel %vm751_vm2, %v3149_v63, 0.0 }
 0x153   :  { %v715_v0 = vadd.f32 %v711_v58, %v682_v59  ;;  %v784_v21 = vsel %vm751_vm2, %v782_v7, 0.0  ;;  %v3182_v58 = vld [vmem:[%s3841_s8 + $0xd8] sm:$0xff]  ;;  %v3189_v59 = vld [vmem:[%s3841_s8 + $0x60] sm:$0xff] }
 0x154   :  { %1044 = vmatpush.msra.mxu1 %v3182_v58  ;;  %1010 = vmatpush.msra.mxu0 %v3189_v59  ;;  %v3228_v7 = vld [vmem:[%s3841_s8 + $0xb8] sm:$0xff] }
 0x155   :  { %v748_v2 = vadd.f32 %v744_v61, %v715_v0  ;;  %v3199_v61 = vld [vmem:[%s3841_s8 + $0x58] sm:$0xff]  ;;  %v3204_v0 = vld [vmem:[%s3841_s8 + $0xc8] sm:$0xff] }
 0x156   :  { %1045 = vmatpush.msra.mxu1 %v3194_v60  ;;  %1011 = vmatpush.msra.mxu0 %v3199_v61 }
 0x157   :  { %v3153_v62 = vadd.f32 %v2521_v31, %v748_v2  ;;  %v3216_v2 = vld [vmem:[%s3841_s8 + $0xc0] sm:$0xff] }
 0x158   :  { %1046 = vmatpush.msra.mxu1 %v3204_v0  ;;  %1012 = vmatpush.msra.mxu0 %v3211_v1 }
 0x159   :  { %v774_v13 = vsel %vm753_vm1, %v3153_v62, 0.0  ;;  %v783_v14 = vmul.f32 %v3153_v62, %v3153_v62 }
 0x15a   :  { %v775_v17 = vadd.f32 %v774_v13, %v773_v11  ;;  %1047 = vmatpush.msra.mxu1 %v3216_v2  ;;  %v3240_v11 = vld [vmem:[%s3841_s8 + $0xb0] sm:$0xff]  ;;  %1013 = vmatpush.msra.mxu0 %v3223_v4 }
 0x15b   :  { %v785_v22 = vsel %vm753_vm1, %v783_v14, 0.0 }
 0x15c   :  { %v776_v29 = vrot.slane %v775_v17, 4  ;;  %v786_v8 = vadd.f32 %v785_v22, %v784_v21  ;;  %1048 = vmatpush.msra.mxu1 %v3228_v7  ;;  %1014 = vmatpush.msra.mxu0 %v3235_v9  ;;  %v3259_v21 = vld [vmem:[%s3841_s8 + $0x30] sm:$0xff]  ;;  %v3264_v22 = vld [vmem:[%s3841_s8 + $0xa0] sm:$0xff] }
 0x15e   :  { %v777_v10 = vadd.f32 %v776_v29, %v775_v17  ;;  %v787_v12 = vrot.slane %v786_v8, 4  ;;  %v3252_v17 = vld [vmem:[%s3841_s8 + $0xa8] sm:$0xff]  ;;  %1049 = vmatpush.msra.mxu1 %v3240_v11  ;;  %1015 = vmatpush.msra.mxu0 %v3247_v16 }
 0x160   :  { %v778_v15 = vrot.slane %v777_v10, 2  ;;  %v788_v5 = vadd.f32 %v787_v12, %v786_v8  ;;  %1050 = vmatpush.msra.mxu1 %v3252_v17  ;;  %v3274_v12 = vld [vmem:[%s3841_s8 + $0x28] sm:$0xff]  ;;  %1016 = vmatpush.msra.mxu0 %v3259_v21 }
 0x162   :  { %v779_v20 = vadd.f32 %v778_v15, %v777_v10  ;;  %v789_v23 = vrot.slane %v788_v5, 2  ;;  %1051 = vmatpush.msra.mxu1 %v3264_v22  ;;  %1017 = vmatpush.msra.mxu0 %v3274_v12 }
 0x164   :  { %v780_v24 = vrot.slane %v779_v20, 1  ;;  %v790_v6 = vadd.f32 %v789_v23, %v788_v5  ;;  %1052 = vmatpush.msra.mxu1 %v3279_v3 }
 0x166   :  { %v781_v31 = vadd.f32 %v780_v24, %v779_v20  ;;  %v791_v28 = vrot.slane %v790_v6, 1  ;;  %1053 = vmatpush.msra.mxu1 %v2372_v18 }
 0x168   :  { %v793_v19 = vadd.f32 %v781_v31, %v761_v30  ;;  %v792_v34 = vadd.f32 %v791_v28, %v790_v6  ;;  %v2371_v6 = vld [vmem:[%s3841_s8 + $0x88] sm:$0xff]  ;;  %v935_v31 = vld [vmem:[%s3840_s7] sm:$0x7f] }
 0x169   :  { %v2364_v28 = vld [vmem:[%s3840_s7 + $0x8] sm:$0x7f]  ;;  %1054 = vmatpush.msra.mxu1 %v2371_v6 }
 0x16a   :  { %2358 = vmatmul.msk.f32.vlgmr.msra.gmra.mxu2 %vm751_vm2, %v793_v19  ;;  %v794_v35 = vadd.f32 %v792_v34, %v772_v32  ;;  %v992_v34 = vld [vmem:[%s3841_s8 + $0x10] sm:$0xff] }
 0x16c   :  { %2359 = vmatmul.msk.f32.vlgmr.msra.gmra.mxu3 %vm751_vm2, %v794_v35  ;;  %v2370_v35 = vld [vmem:[%s3841_s8 + $0x80] sm:$0xff] }
 0x16d   :  { %1055 = vmatpush.msra.mxu1 %v2370_v35 }
 0x1ed   :  { %v829_v37 = vpop.f32.mrf.mxu2 }
 0x1ee   :  { %v832_v39 = vmul.f32 0.0025510204, %v829_v37 }
 0x1ef   :  { %v853_v40 = vpop.f32.mrf.mxu3 }
 0x1f0   :  { %v857_v41 = vmul.f32 %v832_v39, %v832_v39  ;;  %v856_v42 = vmul.f32 0.0025510204, %v853_v40  ;;  %v2385_v40 = vld [vmem:[%s3840_s7 + $0x8] sm:$0x7f] }
 0x1f2   :  { %v858_v43 = vsub.f32 %v856_v42, %v857_v41  ;;  %v991_v41 = vld [vmem:[%s3841_s8 + $0x8] sm:$0xff]  ;;  %v2369_v42 = vld [vmem:[%s3841_s8 + $0x78] sm:$0xff] }
 0x1f3   :  { %1056 = vmatpush.msra.mxu1 %v2369_v42 }
 0x1f4   :  { %v860_v44 = vadd.f32 1e-05, %v858_v43  ;;  %v990_v43 = vld [vmem:[%s3841_s8] sm:$0xff] }
 0x1f6   :  { %2523 = vrsqrt.f32 %v860_v44  ;;  %vm867_vm4 = vweird.f32 %v860_v44 }
 0x1fc   :  { %v2524_v45 = vpop.eup %2523 }
 0x1fd   :  { %v862_v46 = vmul.f32 %v2524_v45, %v860_v44  ;;  %vm868_vm3 = vweird.f32 %v2524_v45  ;;  %v2368_v44 = vld [vmem:[%s3841_s8 + $0x70] sm:$0xff] }
 0x1fe   :  { %vm869_vm5 = vmor %vm867_vm4, %vm868_vm3  ;;  %1057 = vmatpush.msra.mxu1 %v2368_v44  ;;  %vm1818_vm4 = vcmask 130048  }
 0x1ff   :  { %v863_v47 = vmul.f32 %v2524_v45, %v862_v46 }
 0x201   :  { %v864_v48 = vmul.f32 0.5, %v863_v47 }
 0x203   :  { %v865_v49 = vsub.f32 1.5, %v864_v48 }
 0x205   :  { %v866_v51 = vmul.f32 %v2524_v45, %v865_v49 }
 0x207   :  { %v870_v52 = vsel %vm869_vm5, %v2524_v45, %v866_v51  ;;  %v3361_v51 = vld [vmem:[%s3842_s9 + $0x20] sm:$0xff]  ;;  %vm1877_vm5 = vcmask 1044480  }
 0x208   :  { %v871_v53 = vmul.f32 %v870_v52, %v859_v50  ;;  %v3367_v52 = vld [vmem:[%s3842_s9 + $0x18] sm:$0xff] }
 0x20a   :  { %v873_v55 = vmul.f32 %v871_v53, %v832_v39  ;;  %2360 = vmatmul.msk.f32.vlgmr.msrb.gmra.mxu0 %vm876_vm6, %v871_v53  ;;  %v1075_v39 = vld [vmem:[%s3840_s7] sm:$0x7f]  ;;  %v3372_v53 = vld [vmem:[%s3842_s9 + $0x10] sm:$0xff] }
 0x20c   :  { %v874_v56 = vsub.f32 %v872_v54, %v873_v55  ;;  %v3378_v54 = vld [vmem:[%s3842_s9 + $0x8] sm:$0xff]  ;;  %v3384_v55 = vld [vmem:[%s3842_s9] sm:$0xff] }
 0x20e   :  { %2361 = vmatmul.msk.f32.vlgmr.msrb.gmra.mxu1 %vm876_vm6, %v874_v56  ;;  %v3390_v56 = vld [vmem:[%s3842_s9 + $0x98] sm:$0xff] }
 0x20f   :  { %1251 = vmatpush.msrb.mxu1 %v3361_v51 }
 0x211   :  { %1252 = vmatpush.msrb.mxu1 %v3367_v52 }
 0x213   :  { %1253 = vmatpush.msrb.mxu1 %v3372_v53 }
 0x215   :  { %1254 = vmatpush.msrb.mxu1 %v3378_v54 }
 0x217   :  { %1255 = vmatpush.msrb.mxu1 %v3384_v55 }
 0x287   :  { %v897_v13 = vpop.f32.mrf.mxu0 }
 0x288   :  { %v923_v14 = vperm.slane %v897_v13, 0 }
 0x28a   :  { %v925_v29 = vmul.f32 %v923_v14, %v3132_v33  ;;  %v1066_v8 = vmul.f32 %v923_v14, %v3153_v62  ;;  %v924_v10 = vmul.f32 %v923_v14, %v3137_v38  ;;  %v1065_v5 = vmul.f32 %v923_v14, %v3149_v63  ;;  %v994_v38 = vld [vmem:[%s3841_s8 + $0x20] sm:$0xff]  ;;  %v993_v63 = vld [vmem:[%s3841_s8 + $0x18] sm:$0xff] }
 0x28b   :  { %v920_v25 = vpop.f32.mrf.mxu1  ;;  %1018 = vmatpush.msra.mxu0 %v994_v38 }
 0x28c   :  { %v926_v27 = vperm.slane %v920_v25, 0  ;;  %v2407_v25 = vld [vmem:[%s3842_s9 + $0x40] sm:$0xff] }
 0x28d   :  { %1019 = vmatpush.msra.mxu0 %v993_v63 }
 0x28e   :  { %v928_v33 = vadd.f32 %v926_v27, %v925_v29  ;;  %v1068_v15 = vadd.f32 %v1066_v8, %v926_v27  ;;  %v927_v62 = vadd.f32 %v926_v27, %v924_v10  ;;  %v1067_v24 = vadd.f32 %v1065_v5, %v926_v27  ;;  %v3457_v29 = vld [vmem:[%s3842_s9 + $0xb8] sm:$0xff]  ;;  %v3465_v27 = vld [vmem:[%s3842_s9 + $0xb0] sm:$0xff]  ;;  %v3498_v5 = vld [vmem:[%s3842_s9 + $0x160] sm:$0xff] }
 0x28f   :  { %1020 = vmatpush.msra.mxu0 %v992_v34  ;;  %v2406_v8 = vld [vmem:[%s3842_s9 + $0x38] sm:$0xff]  ;;  %v2405_v10 = vld [vmem:[%s3842_s9 + $0x30] sm:$0xff] }
 0x290   :  { %vm930_vm8 = vcmp.gt.f32.partialorder %v928_v33, 0.0  ;;  %v932_v20 = vmul.f32 0.01, %v928_v33  ;;  %v931_v23 = vmul.f32 0.01, %v927_v62  ;;  %vm929_vm9 = vcmp.gt.f32.partialorder %v927_v62, 0.0 }
 0x291   :  { %v1072_v30 = vmul.f32 0.01, %v1068_v15  ;;  %vm1070_vm11 = vcmp.gt.f32.partialorder %v1068_v15, 0.0  ;;  %v1071_v32 = vmul.f32 0.01, %v1067_v24  ;;  %vm1069_vm12 = vcmp.gt.f32.partialorder %v1067_v24, 0.0  ;;  %1021 = vmatpush.msra.mxu0 %v991_v41 }
 0x292   :  { %v934_v26 = vsel %vm930_vm8, %v928_v33, %v932_v20  ;;  %v933_v19 = vsel %vm929_vm9, %v927_v62, %v931_v23  ;;  %v3482_v33 = vld [vmem:[%s3842_s9 + $0xe8] sm:$0xff]  ;;  %v3491_v62 = vld [vmem:[%s3842_s9 + $0xa0] sm:$0xff]  ;;  %v3513_v20 = vld [vmem:[%s3842_s9 + $0x158] sm:$0xff]  ;;  %vm1873_vm8 = vcmask 39936   ;;  %vm1992_vm9 = vcmask 254976  }
 0x293   :  { %2362 = vmatpush.msk.msrb.mxu2 %vm940_vm7, %v934_v26  ;;  %2365 = vmatpush.msk.msrb.mxu3 %vm940_vm7, %v934_v26  ;;  %v1074_v36 = vsel %vm1070_vm11, %v1068_v15, %v1072_v30  ;;  %v1073_v37 = vsel %vm1069_vm12, %v1067_v24, %v1071_v32  ;;  %v2415_v15 = vld [vmem:[%s3842_s9 + $0x70] sm:$0xff]  ;;  %v2413_v23 = vld [vmem:[%s3842_s9 + $0x60] sm:$0xff]  ;;  %v3523_v24 = vld [vmem:[%s3842_s9 + $0xd8] sm:$0xff] }
 0x294   :  { %1022 = vmatpush.msra.mxu0 %v990_v43  ;;  %v3537_v26 = vld [vmem:[%s3842_s9 + $0xd0] sm:$0xff]  ;;  %v3543_v30 = vld [vmem:[%s3842_s9 + $0x148] sm:$0xff]  ;;  %v2445_v32 = vld [vmem:[%s3842_s9 + $0x138] sm:$0xff] }
 0x295   :  { %959 = vmatpush.msrb.mxu2 %v933_v19  ;;  %984 = vmatpush.msrb.mxu3 %v933_v19  ;;  %v3557_v19 = vld [vmem:[%s3842_s9 + $0x140] sm:$0xff] }
 0x296   :  { %2363 = vmatmul.msk.f32.vlgmr.msrb.gmra.mxu2 %vm936_vm10, %v935_v31  ;;  %2366 = vmatmul.msk.f32.vlgmr.msrb.gmra.mxu3 %vm936_vm10, %v2364_v28  ;;  %v2411_v31 = vld [vmem:[%s3842_s9 + $0x50] sm:$0xff]  ;;  %v3551_v28 = vld [vmem:[%s3842_s9 + $0xc8] sm:$0xff] }
 0x297   :  { %2383 = vmatpush.msk.msra.mxu2 %vm940_vm7, %v1074_v36  ;;  %2386 = vmatpush.msk.msra.mxu3 %vm940_vm7, %v1074_v36  ;;  %v2442_v36 = vld [vmem:[%s3842_s9 + $0x120] sm:$0xff] }
 0x299   :  { %1097 = vmatpush.msra.mxu2 %v1073_v37  ;;  %1121 = vmatpush.msra.mxu3 %v1073_v37  ;;  %v2441_v37 = vld [vmem:[%s3842_s9 + $0x118] sm:$0xff] }
 0x29b   :  { %1146 = vmatpush.msrb.mxu2 %v3177_v57  ;;  %1180 = vmatpush.msrb.mxu3 %v3182_v58  ;;  %v3397_v57 = vld [vmem:[%s3842_s9 + $0x90] sm:$0xff]  ;;  %v3403_v58 = vld [vmem:[%s3842_s9 + $0x88] sm:$0xff] }
 0x29d   :  { %1147 = vmatpush.msrb.mxu2 %v3189_v59  ;;  %1181 = vmatpush.msrb.mxu3 %v3194_v60  ;;  %v3409_v59 = vld [vmem:[%s3842_s9 + $0x80] sm:$0xff]  ;;  %v3415_v60 = vld [vmem:[%s3842_s9 + $0x78] sm:$0xff] }
 0x29e   :  { %2384 = vmatmul.msk.f32.vlgmr.msra.gmra.mxu2 %vm936_vm10, %v1075_v39  ;;  %2387 = vmatmul.msk.f32.vlgmr.msra.gmra.mxu3 %vm936_vm10, %v2385_v40  ;;  %v2439_v40 = vld [vmem:[%s3842_s9 + $0x110] sm:$0xff]  ;;  %vm2127_vm10 = vcmask 261120  }
 0x29f   :  { %1148 = vmatpush.msrb.mxu2 %v3199_v61  ;;  %1182 = vmatpush.msrb.mxu3 %v3204_v0 }
 0x2a1   :  { %1149 = vmatpush.msrb.mxu2 %v3211_v1  ;;  %1183 = vmatpush.msrb.mxu3 %v3216_v2 }
 0x2a3   :  { %1150 = vmatpush.msrb.mxu2 %v3223_v4  ;;  %1184 = vmatpush.msrb.mxu3 %v3228_v7 }
 0x2a5   :  { %1151 = vmatpush.msrb.mxu2 %v3235_v9  ;;  %1185 = vmatpush.msrb.mxu3 %v3240_v11 }
 0x2a7   :  { %1152 = vmatpush.msrb.mxu2 %v3247_v16  ;;  %1186 = vmatpush.msrb.mxu3 %v3252_v17 }
 0x2a9   :  { %1153 = vmatpush.msrb.mxu2 %v3259_v21  ;;  %1187 = vmatpush.msrb.mxu3 %v3264_v22  ;;  %v2408_v21 = vld [vmem:[%s3842_s9 + $0x48] sm:$0xff]  ;;  %v3448_v22 = vld [vmem:[%s3842_s9 + $0xc0] sm:$0xff] }
 0x2aa   :  { %1229 = vmatpush.msrb.mxu0 %v2408_v21 }
 0x2ab   :  { %1154 = vmatpush.msrb.mxu2 %v3274_v12  ;;  %1188 = vmatpush.msrb.mxu3 %v3279_v3  ;;  %v3474_v12 = vld [vmem:[%s3842_s9 + $0xa8] sm:$0xff] }
 0x2ac   :  { %1230 = vmatpush.msrb.mxu0 %v2407_v25  ;;  %v2404_v3 = vld [vmem:[%s3842_s9 + $0x28] sm:$0xff] }
 0x2ad   :  { %1155 = vmatpush.msrb.mxu2 %v994_v38  ;;  %1189 = vmatpush.msrb.mxu3 %v2372_v18  ;;  %v2414_v38 = vld [vmem:[%s3842_s9 + $0x68] sm:$0xff]  ;;  %v3508_v18 = vld [vmem:[%s3842_s9 + $0xe0] sm:$0xff] }
 0x2ae   :  { %1231 = vmatpush.msrb.mxu0 %v2406_v8 }
 0x2af   :  { %1156 = vmatpush.msrb.mxu2 %v993_v63  ;;  %1190 = vmatpush.msrb.mxu3 %v2371_v6  ;;  %v3529_v63 = vld [vmem:[%s3842_s9 + $0x150] sm:$0xff]  ;;  %v2412_v6 = vld [vmem:[%s3842_s9 + $0x58] sm:$0xff] }
 0x2b0   :  { %1232 = vmatpush.msrb.mxu0 %v2405_v10 }
 0x2b1   :  { %1157 = vmatpush.msrb.mxu2 %v992_v34  ;;  %1191 = vmatpush.msrb.mxu3 %v2370_v35  ;;  %v2444_v34 = vld [vmem:[%s3842_s9 + $0x130] sm:$0xff]  ;;  %v2443_v35 = vld [vmem:[%s3842_s9 + $0x128] sm:$0xff] }
 0x2b2   :  { %1233 = vmatpush.msrb.mxu0 %v2404_v3 }
 0x2b3   :  { %1158 = vmatpush.msrb.mxu2 %v991_v41  ;;  %1192 = vmatpush.msrb.mxu3 %v2369_v42  ;;  %v2438_v42 = vld [vmem:[%s3842_s9 + $0x108] sm:$0xff] }
 0x2b5   :  { %1159 = vmatpush.msrb.mxu2 %v990_v43  ;;  %1193 = vmatpush.msrb.mxu3 %v2368_v44  ;;  %v2437_v43 = vld [vmem:[%s3842_s9 + $0x100] sm:$0xff] }
 0x2b7   :  { %1343 = vmatpush.msra.mxu2 %v3448_v22  ;;  %1374 = vmatpush.msra.mxu3 %v3482_v33 }
 0x2b9   :  { %1344 = vmatpush.msra.mxu2 %v3457_v29  ;;  %1375 = vmatpush.msra.mxu3 %v3508_v18 }
 0x2bb   :  { %1345 = vmatpush.msra.mxu2 %v3465_v27  ;;  %1376 = vmatpush.msra.mxu3 %v3523_v24 }
 0x2bd   :  { %1346 = vmatpush.msra.mxu2 %v3474_v12  ;;  %1377 = vmatpush.msra.mxu3 %v3537_v26 }
 0x2bf   :  { %1347 = vmatpush.msra.mxu2 %v3491_v62  ;;  %1378 = vmatpush.msra.mxu3 %v3551_v28 }
 0x319   :  { %v961_v45 = vpop.f32.mrf.mxu2  ;;  %v986_v46 = vpop.f32.mrf.mxu3 }
 0x31a   :  { %v989_v47 = vmax.f32 %v961_v45, %v986_v46  ;;  %v2436_v45 = vld [vmem:[%s3842_s9 + $0xf8] sm:$0xff] }
 0x31c   :  { %2367 = vmatmul.msk.f32.vlgmr.msra.gmra.mxu0 %vm751_vm2, %v989_v47  ;;  %2382 = vmatmul.msk.f32.vlgmr.msra.gmra.mxu1 %vm751_vm2, %v989_v47  ;;  %v2435_v47 = vld [vmem:[%s3842_s9 + $0xf0] sm:$0xff] }
 0x31d   :  { %1312 = vmatpush.msra.mxu1 %v3390_v56  ;;  %1281 = vmatpush.msra.mxu0 %v2415_v15 }
 0x31f   :  { %1313 = vmatpush.msra.mxu1 %v3397_v57  ;;  %1282 = vmatpush.msra.mxu0 %v2414_v38 }
 0x321   :  { %v1099_v48 = vpop.f32.mrf.mxu2  ;;  %v1123_v49 = vpop.f32.mrf.mxu3  ;;  %1314 = vmatpush.msra.mxu1 %v3403_v58  ;;  %1283 = vmatpush.msra.mxu0 %v2413_v23 }
 0x322   :  { %v1126_v50 = vmax.f32 %v1099_v48, %v1123_v49 }
 0x323   :  { %1315 = vmatpush.msra.mxu1 %v3409_v59  ;;  %1284 = vmatpush.msra.mxu0 %v2412_v6 }
 0x324   :  { %2388 = vmatmul.msk.f32.vlgmr.msrb.gmra.mxu2 %vm751_vm2, %v1126_v50  ;;  %2403 = vmatmul.msk.f32.vlgmr.msrb.gmra.mxu3 %vm751_vm2, %v1126_v50 }
 0x325   :  { %1316 = vmatpush.msra.mxu1 %v3415_v60  ;;  %1467 = vmatpush.msrb.mxu2 %v3498_v5 }
 0x326   :  { %1285 = vmatpush.msra.mxu0 %v2411_v31  ;;  %1499 = vmatpush.msrb.mxu3 %v2408_v21 }
 0x327   :  { %1468 = vmatpush.msrb.mxu2 %v3513_v20 }
 0x328   :  { %1500 = vmatpush.msrb.mxu3 %v2407_v25 }
 0x329   :  { %1469 = vmatpush.msrb.mxu2 %v3529_v63 }
 0x32a   :  { %1501 = vmatpush.msrb.mxu3 %v2406_v8 }
 0x32b   :  { %1470 = vmatpush.msrb.mxu2 %v3543_v30 }
 0x32c   :  { %1502 = vmatpush.msrb.mxu3 %v2405_v10  ;;  %v1741_v10 = vld [vmem:[%s3846_s13 + $0x10] sm:$0xff] }
 0x32d   :  { %1471 = vmatpush.msrb.mxu2 %v3557_v19 }
 0x32e   :  { %1503 = vmatpush.msrb.mxu3 %v2404_v3  ;;  %v2522_v3 = vld [vmem:[%s3843_s10] ss:$0 sm:$0xff] }
 0x399   :  { %v1024_v61 = vpop.f32.mrf.mxu0  ;;  %v1059_v0 = vpop.f32.mrf.mxu1 }
 0x39a   :  { %v1062_v1 = vmax.f32 %v1024_v61, %v1059_v0 }
 0x39c   :  { %1064 = vst.msk [vmem:[#allocation2] sm:$0x7f] %vm1063_vm13, %v1062_v1 }
 0x3a3   :  { %v1291_v2 = vld [vmem:[#allocation2 + $0x1] sm:$0x1f] }
 0x3a4   :  { %v1200_v4 = vld [vmem:[#allocation2] sm:$0x1f]  ;;  %1328 = vrot.lane.b32.xlu1 %v1291_v2, %s2583_s25 }
 0x3a5   :  { %1266 = vrot.lane.b32.xlu2 %v1200_v4, %s2584_s22  ;;  %1213 = vrot.lane.b32.xlu0 %v1200_v4, %s2583_s25  ;;  %v3421_v13 = vld [vmem:[#allocation2 + $0x2] sm:$0x1f] }
 0x3a6   :  { %2410 = vmatmul.msk.f32.vlgmr.msrb.gmra.mxu1 %vm1215_vm14, %v1200_v4 }
 0x3a7   :  { %v1161_v7 = vpop.f32.mrf.mxu2  ;;  %v1195_v9 = vpop.f32.mrf.mxu3  ;;  %1436 = vmatpush.msrb.mxu1 %v2445_v32 }
 0x3a8   :  { %v1198_v11 = vmax.f32 %v1161_v7, %v1195_v9  ;;  %v1746_v7 = vld [vmem:[%s3846_s13 + $0x38] sm:$0xff] }
 0x3a9   :  { %1437 = vmatpush.msrb.mxu1 %v2444_v34 }
 0x3aa   :  { %1199 = vst.msk [vmem:[#allocation2 + $0x7] sm:$0x7f] %vm1063_vm13, %v1198_v11  ;;  %v1745_v11 = vld [vmem:[%s3846_s13 + $0x30] sm:$0xff] }
 0x3ab   :  { %1438 = vmatpush.msrb.mxu1 %v2443_v35 }
 0x3ac   :  { %1452 = vrot.lane.b32.xlu1 %v3421_v13, %s2584_s22 }
 0x3ad   :  { %1359 = vrot.lane.b32.xlu0 %v1291_v2, %s2584_s22  ;;  %1439 = vmatpush.msrb.mxu1 %v2442_v36 }
 0x3ae   :  { %2422 = vmatmul.msk.f32.vlgmr.msra.gmra.mxu1 %vm1215_vm14, %v1291_v2  ;;  %v1747_v2 = vld [vmem:[%s3846_s13 + $0x40] sm:$0xff] }
 0x3af   :  { %1440 = vmatpush.msrb.mxu1 %v2441_v37 }
 0x3b1   :  { %v3425_v14 = vld [vmem:[#allocation2 + $0x7] sm:$0x1f]  ;;  %1545 = vmatpush.msra.mxu1 %v2415_v15 }
 0x3b2   :  { %v3427_v16 = vld [vmem:[#allocation2 + $0x8] sm:$0x1f]  ;;  %1484 = vrot.lane.b32.xlu2 %v3425_v14, %s2583_s25 }
 0x3b3   :  { %v3436_v17 = vld [vmem:[#allocation2 + $0x9] sm:$0x1f]  ;;  %1546 = vmatpush.msra.mxu1 %v2414_v38 }
 0x3b4   :  { %1580 = vrot.lane.b32.xlu1 %v3427_v16, %s2583_s25  ;;  %v1740_v15 = vld [vmem:[%s3846_s13 + $0x8] sm:$0xff] }
 0x3b5   :  { %1421 = vrot.lane.b32.xlu0 %v3421_v13, %s2583_s25  ;;  %1547 = vmatpush.msra.mxu1 %v2413_v23 }
 0x3b7   :  { %1548 = vmatpush.msra.mxu1 %v2412_v6 }
 0x3b9   :  { %1549 = vmatpush.msra.mxu1 %v2411_v31 }
 0x3ba   :  { %1530 = vrot.lane.b32.xlu2 %v3425_v14, %s2584_s22 }
 0x3bc   :  { %1605 = vrot.lane.b32.xlu1 %v3427_v16, %s2584_s22 }
 0x3bd   :  { %1655 = vrot.lane.b32.xlu0 %v3436_v17, %s2583_s25 }
 0x3c2   :  { %1680 = vrot.lane.b32.xlu2 %v3436_v17, %s2584_s22 }
 0x3ff   :  { %v1267_v44 = vpop.permute.xlu2 %1266 }
 0x40c   :  { %v1485_v49 = vpop.permute.xlu2 %1484 }
 0x416   :  { %v1329_v39 = vpop.permute.xlu1 %1328 }
 0x417   :  { %v1214_v41 = vpop.permute.xlu0 %1213  ;;  %2428 = vmatmul.msk.f32.vlgmr.msra.gmra.mxu2 %vm1215_vm14, %v1329_v39 }
 0x418   :  { %2409 = vmatmul.msk.f32.vlgmr.msrb.gmra.mxu0 %vm1215_vm14, %v1214_v41  ;;  %1570 = vmatpush.msra.mxu2 %v3390_v56 }
 0x419   :  { %1405 = vmatpush.msrb.mxu0 %v2439_v40 }
 0x41a   :  { %1571 = vmatpush.msra.mxu2 %v3397_v57 }
 0x41b   :  { %1406 = vmatpush.msrb.mxu0 %v2438_v42 }
 0x41c   :  { %1572 = vmatpush.msra.mxu2 %v3403_v58 }
 0x41d   :  { %1407 = vmatpush.msrb.mxu0 %v2437_v43 }
 0x41e   :  { %v1453_v46 = vpop.permute.xlu1 %1452  ;;  %1573 = vmatpush.msra.mxu2 %v3409_v59 }
 0x41f   :  { %v1360_v48 = vpop.permute.xlu0 %1359  ;;  %2452 = vmatmul.msk.f32.vlgmr.msrb.gmra.mxu2 %vm1215_vm14, %v1453_v46  ;;  %1408 = vmatpush.msrb.mxu0 %v2436_v45 }
 0x420   :  { %2416 = vmatmul.msk.f32.vlgmr.msra.gmra.mxu0 %vm1215_vm14, %v1267_v44  ;;  %2434 = vmatmul.msk.f32.vlgmr.msra.gmra.mxu3 %vm1215_vm14, %v1360_v48 }
 0x421   :  { %1409 = vmatpush.msrb.mxu0 %v2435_v47  ;;  %1574 = vmatpush.msra.mxu2 %v3415_v60  ;;  %v1748_v60 = vld [vmem:[%s3846_s13 + $0x48] sm:$0xff] }
 0x422   :  { %1595 = vmatpush.msra.mxu3 %v3448_v22 }
 0x423   :  { %1521 = vmatpush.msra.mxu0 %v3361_v51  ;;  %1670 = vmatpush.msrb.mxu2 %v2445_v32  ;;  %v1257_v56 = vpop.f32.mrf.mxu1 }
 0x424   :  { %1596 = vmatpush.msra.mxu3 %v3457_v29  ;;  %v1743_v29 = vld [vmem:[%s3846_s13 + $0x20] sm:$0xff] }
 0x425   :  { %1522 = vmatpush.msra.mxu0 %v3367_v52  ;;  %1671 = vmatpush.msrb.mxu2 %v2444_v34  ;;  %v1531_v52 = vpop.permute.xlu2 %1530 }
 0x426   :  { %1597 = vmatpush.msra.mxu3 %v3465_v27  ;;  %v1581_v51 = vpop.permute.xlu1 %1580  ;;  %v1742_v27 = vld [vmem:[%s3846_s13 + $0x18] sm:$0xff] }
 0x427   :  { %1523 = vmatpush.msra.mxu0 %v3372_v53  ;;  %v1422_v50 = vpop.permute.xlu0 %1421  ;;  %2456 = vmatmul.msk.f32.vlgmr.msra.gmra.mxu2 %vm1215_vm14, %v3427_v16  ;;  %v1744_v16 = vld [vmem:[%s3846_s13 + $0x28] sm:$0xff] }
 0x428   :  { %2440 = vmatmul.msk.f32.vlgmr.msrb.gmra.mxu0 %vm1215_vm14, %v3421_v13  ;;  %2446 = vmatmul.msk.f32.vlgmr.msrb.gmra.mxu1 %vm1215_vm14, %v1422_v50 }
 0x429   :  { %2453 = vmatmul.msk.f32.vlgmr.msrb.gmra.mxu3 %vm1215_vm14, %v1485_v49  ;;  %1672 = vmatpush.msrb.mxu2 %v2443_v35 }
 0x42a   :  { %1524 = vmatpush.msra.mxu0 %v3378_v54  ;;  %1598 = vmatpush.msra.mxu3 %v3474_v12 }
 0x42b   :  { %1673 = vmatpush.msrb.mxu2 %v2442_v36  ;;  %1645 = vmatpush.msrb.mxu1 %v2439_v40  ;;  %v1318_v61 = vpop.f32.mrf.mxu1 }
 0x42c   :  { %1525 = vmatpush.msra.mxu0 %v3384_v55  ;;  %1599 = vmatpush.msra.mxu3 %v3491_v62  ;;  %v1739_v62 = vld [vmem:[%s3846_s13] sm:$0xff] }
 0x42d   :  { %1674 = vmatpush.msrb.mxu2 %v2441_v37  ;;  %1646 = vmatpush.msrb.mxu1 %v2438_v42  ;;  %v1681_v55 = vpop.permute.xlu2 %1680 }
 0x42e   :  { %1620 = vmatpush.msrb.mxu0 %v3482_v33  ;;  %1695 = vmatpush.msrb.mxu3 %v3498_v5  ;;  %v1606_v54 = vpop.permute.xlu1 %1605 }
 0x42f   :  { %v1656_v53 = vpop.permute.xlu0 %1655  ;;  %1647 = vmatpush.msrb.mxu1 %v2437_v43 }
 0x430   :  { %1621 = vmatpush.msrb.mxu0 %v3508_v18  ;;  %2455 = vmatmul.msk.f32.vlgmr.msra.gmra.mxu1 %vm1215_vm14, %v1531_v52 }
 0x431   :  { %2454 = vmatmul.msk.f32.vlgmr.msra.gmra.mxu0 %vm1215_vm14, %v3425_v14  ;;  %2457 = vmatmul.msk.f32.vlgmr.msra.gmra.mxu3 %vm1215_vm14, %v1581_v51 }
 0x432   :  { %2460 = vmatmul.msk.f32.vlgmr.msrb.gmra.mxu2 %vm1215_vm14, %v1656_v53  ;;  %1696 = vmatpush.msrb.mxu3 %v3513_v20 }
 0x433   :  { %1622 = vmatpush.msrb.mxu0 %v3523_v24  ;;  %1648 = vmatpush.msrb.mxu1 %v2436_v45 }
 0x434   :  { %1697 = vmatpush.msrb.mxu3 %v3529_v63 }
 0x435   :  { %1623 = vmatpush.msrb.mxu0 %v3537_v26  ;;  %1649 = vmatpush.msrb.mxu1 %v2435_v47 }
 0x436   :  { %1698 = vmatpush.msrb.mxu3 %v3543_v30 }
 0x437   :  { %1624 = vmatpush.msrb.mxu0 %v3551_v28  ;;  %1783 = vmatpush.msra.mxu1 %v1748_v60 }
 0x438   :  { %1699 = vmatpush.msrb.mxu3 %v3557_v19  ;;  %2459 = vmatmul.msk.f32.vlgmr.msrb.gmra.mxu1 %vm1215_vm14, %v3436_v17 }
 0x439   :  { %2458 = vmatmul.msk.f32.vlgmr.msrb.gmra.mxu0 %vm1215_vm14, %v1606_v54  ;;  %2461 = vmatmul.msk.f32.vlgmr.msrb.gmra.mxu3 %vm1215_vm14, %v1681_v55  ;;  %vm2210_vm14 = vcmask 57344  }
 0x43a   :  { %1759 = vmatpush.msra.mxu0 %v1748_v60  ;;  %1784 = vmatpush.msra.mxu1 %v1747_v2 }
 0x43c   :  { %1760 = vmatpush.msra.mxu0 %v1747_v2  ;;  %1785 = vmatpush.msra.mxu1 %v1746_v7 }
 0x43e   :  { %1761 = vmatpush.msra.mxu0 %v1746_v7  ;;  %1786 = vmatpush.msra.mxu1 %v1745_v11 }
 0x440   :  { %1762 = vmatpush.msra.mxu0 %v1745_v11  ;;  %1787 = vmatpush.msra.mxu1 %v1744_v16 }
 0x442   :  { %1763 = vmatpush.msra.mxu0 %v1744_v16  ;;  %1788 = vmatpush.msra.mxu1 %v1743_v29  ;;  %v1817_v16 = vld [vmem:[%s3847_s14 + $0x8] sm:$0xff] }
 0x443   :  { %1836 = vmatpush.msra.mxu2 %v1817_v16  ;;  %1859 = vmatpush.msra.mxu3 %v1817_v16  ;;  %v2119_v16 = vld [vmem:[%s3850_s17 + $0x10] sm:$0xff] }
 0x444   :  { %1764 = vmatpush.msra.mxu0 %v1743_v29  ;;  %1789 = vmatpush.msra.mxu1 %v1742_v27 }
 0x446   :  { %1765 = vmatpush.msra.mxu0 %v1742_v27  ;;  %1790 = vmatpush.msra.mxu1 %v1741_v10 }
 0x448   :  { %1766 = vmatpush.msra.mxu0 %v1741_v10  ;;  %1791 = vmatpush.msra.mxu1 %v1740_v15 }
 0x44a   :  { %1767 = vmatpush.msra.mxu0 %v1740_v15  ;;  %1792 = vmatpush.msra.mxu1 %v1739_v62 }
 0x44c   :  { %1768 = vmatpush.msra.mxu0 %v1739_v62 }
 0x495   :  { %v1235_v57 = vpop.f32.mrf.mxu0 }
 0x496   :  { %v1258_v58 = vadd.f32 %v1257_v56, %v1235_v57 }
 0x49a   :  { %v1349_v59 = vpop.f32.mrf.mxu2 }
 0x49d   :  { %v1287_v0 = vpop.f32.mrf.mxu0 }
 0x49e   :  { %v1290_v1 = vadd.f32 %v1287_v0, %v1258_v58 }
 0x4a0   :  { %v1321_v4 = vadd.f32 %v1318_v61, %v1290_v1 }
 0x4a2   :  { %v1352_v9 = vadd.f32 %v1349_v59, %v1321_v4  ;;  %v1473_v22 = vpop.f32.mrf.mxu2 }
 0x4a3   :  { %v1380_v13 = vpop.f32.mrf.mxu3 }
 0x4a4   :  { %v1383_v14 = vadd.f32 %v1380_v13, %v1352_v9 }
 0x4a5   :  { %v1411_v17 = vpop.f32.mrf.mxu0  ;;  %v1442_v21 = vpop.f32.mrf.mxu1 }
 0x4a6   :  { %v1414_v25 = vadd.f32 %v1411_v17, %v1383_v14  ;;  %v1816_v17 = vld [vmem:[%s3847_s14] sm:$0xff] }
 0x4a7   :  { %1837 = vmatpush.msra.mxu2 %v1816_v17  ;;  %1860 = vmatpush.msra.mxu3 %v1816_v17  ;;  %v2503_v17 = vld [vmem:[%s3850_s17 + $0x38] sm:$0xff] }
 0x4a8   :  { %v1445_v8 = vadd.f32 %v1442_v21, %v1414_v25 }
 0x4aa   :  { %v1476_v12 = vadd.f32 %v1473_v22, %v1445_v8  ;;  %v1576_v23 = vpop.f32.mrf.mxu2 }
 0x4ac   :  { %v1505_v33 = vpop.f32.mrf.mxu3  ;;  %v3670_v20 = vadd.f32 %v2522_v3, %v1476_v12 }
 0x4ad   :  { %v1551_v18 = vpop.f32.mrf.mxu1 }
 0x4ae   :  { %v1527_v5 = vpop.f32.mrf.mxu0  ;;  %v1714_v6 = vmul.f32 %v3670_v20, %v3670_v20  ;;  %v1707_v30 = vsel %vm1706_vm15, %v3670_v20, 0.0 }
 0x4af   :  { %v1528_v38 = vadd.f32 %v1527_v5, %v1505_v33  ;;  %v1708_v34 = vrot.slane %v1707_v30, 4  ;;  %v1800_v5 = vld [vmem:[%s3844_s11] sm:$0x1] }
 0x4b0   :  { %v1715_v19 = vsel %vm1706_vm15, %v1714_v6, 0.0 }
 0x4b1   :  { %v1554_v24 = vadd.f32 %v1551_v18, %v1528_v38  ;;  %v1716_v37 = vrot.slane %v1715_v19, 4  ;;  %v1709_v41 = vadd.f32 %v1708_v34, %v1707_v30 }
 0x4b3   :  { %v1579_v63 = vadd.f32 %v1576_v23, %v1554_v24  ;;  %v1717_v44 = vadd.f32 %v1716_v37, %v1715_v19  ;;  %v1710_v46 = vrot.slane %v1709_v41, 2  ;;  %v1813_v24 = vld [vmem:[%s3845_s12] sm:$0x1] }
 0x4b4   :  { %v1601_v26 = vpop.f32.mrf.mxu3 }
 0x4b5   :  { %v1604_v31 = vadd.f32 %v1601_v26, %v1579_v63  ;;  %v1651_v35 = vpop.f32.mrf.mxu1  ;;  %v1676_v39 = vpop.f32.mrf.mxu2  ;;  %v1718_v49 = vrot.slane %v1717_v44, 2  ;;  %v1711_v52 = vadd.f32 %v1710_v46, %v1709_v41  ;;  %v1872_v41 = vld [vmem:[%s3848_s15] sm:$0x3] }
 0x4b6   :  { %v1626_v28 = vpop.f32.mrf.mxu0  ;;  %v1935_v46 = vld [vmem:[%s3849_s16 + $0x40] sm:$0xff] }
 0x4b7   :  { %v1629_v32 = vadd.f32 %v1626_v28, %v1604_v31  ;;  %v1719_v55 = vadd.f32 %v1718_v49, %v1717_v44  ;;  %v1712_v58 = vrot.slane %v1711_v52, 1  ;;  %v1936_v44 = vld [vmem:[%s3849_s16 + $0x48] sm:$0xff] }
 0x4b8   :  { %v2479_v49 = vld [vmem:[%s3849_s16 + $0x88] sm:$0xff] }
 0x4b9   :  { %v1654_v36 = vadd.f32 %v1651_v35, %v1629_v32  ;;  %v1720_v1 = vrot.slane %v1719_v55, 1  ;;  %v1713_v7 = vadd.f32 %v1712_v58, %v1711_v52  ;;  %v1932_v52 = vld [vmem:[%s3849_s16 + $0x28] sm:$0xff]  ;;  %v1929_v58 = vld [vmem:[%s3849_s16 + $0x10] sm:$0xff] }
 0x4bb   :  { %v1679_v40 = vadd.f32 %v1676_v39, %v1654_v36  ;;  %v1721_v11 = vadd.f32 %v1720_v1, %v1719_v55  ;;  %v2476_v55 = vld [vmem:[%s3849_s16 + $0x70] sm:$0xff] }
 0x4bc   :  { %v1701_v42 = vpop.f32.mrf.mxu3  ;;  %v2472_v1 = vld [vmem:[%s3849_s16 + $0x50] sm:$0xff] }
 0x4bd   :  { %v1704_v43 = vadd.f32 %v1701_v42, %v1679_v40  ;;  %v1999_v42 = vld [vmem:[%s3848_s15] sm:$0x3] }
 0x4bf   :  { %v3677_v45 = vadd.f32 %v2522_v3, %v1704_v43  ;;  %v2485_v43 = vld [vmem:[%s3848_s15 + $0x2] sm:$0x3] }
 0x4c1   :  { %v1722_v47 = vsel %vm1706_vm15, %v3677_v45, 0.0  ;;  %v1729_v48 = vmul.f32 %v3677_v45, %v3677_v45 }
 0x4c2   :  { %v1723_v50 = vrot.slane %v1722_v47, 4 }
 0x4c3   :  { %v1730_v51 = vsel %vm1706_vm15, %v1729_v48, 0.0  ;;  %v1934_v48 = vld [vmem:[%s3849_s16 + $0x38] sm:$0xff] }
 0x4c4   :  { %v1724_v53 = vadd.f32 %v1723_v50, %v1722_v47  ;;  %v1731_v54 = vrot.slane %v1730_v51, 4  ;;  %v2480_v47 = vld [vmem:[%s3849_s16 + $0x90] sm:$0xff] }
 0x4c5   :  { %v1933_v50 = vld [vmem:[%s3849_s16 + $0x30] sm:$0xff] }
 0x4c6   :  { %v1725_v56 = vrot.slane %v1724_v53, 2  ;;  %v1732_v57 = vadd.f32 %v1731_v54, %v1730_v51  ;;  %v2478_v51 = vld [vmem:[%s3849_s16 + $0x80] sm:$0xff] }
 0x4c7   :  { %v1931_v54 = vld [vmem:[%s3849_s16 + $0x20] sm:$0xff] }
 0x4c8   :  { %v1726_v59 = vadd.f32 %v1725_v56, %v1724_v53  ;;  %v1733_v60 = vrot.slane %v1732_v57, 2  ;;  %v2477_v53 = vld [vmem:[%s3849_s16 + $0x78] sm:$0xff] }
 0x4c9   :  { %v1930_v56 = vld [vmem:[%s3849_s16 + $0x18] sm:$0xff] }
 0x4ca   :  { %v1727_v61 = vrot.slane %v1726_v59, 1  ;;  %v1734_v0 = vadd.f32 %v1733_v60, %v1732_v57  ;;  %v2475_v57 = vld [vmem:[%s3849_s16 + $0x68] sm:$0xff] }
 0x4cb   :  { %v1928_v60 = vld [vmem:[%s3849_s16 + $0x8] sm:$0xff] }
 0x4cc   :  { %v1728_v2 = vadd.f32 %v1727_v61, %v1726_v59  ;;  %v1735_v4 = vrot.slane %v1734_v0, 1  ;;  %v2474_v59 = vld [vmem:[%s3849_s16 + $0x60] sm:$0xff]  ;;  %v2473_v61 = vld [vmem:[%s3849_s16 + $0x58] sm:$0xff] }
 0x4ce   :  { %v1737_v9 = vadd.f32 %v1728_v2, %v1713_v7  ;;  %v1736_v13 = vadd.f32 %v1735_v4, %v1734_v0  ;;  %v1927_v0 = vld [vmem:[%s3849_s16] sm:$0xff] }
 0x4d0   :  { %2462 = vmatmul.msk.f32.vlgmr.msra.gmra.mxu0 %vm1749_vm0, %v1737_v9  ;;  %v1738_v14 = vadd.f32 %v1736_v13, %v1721_v11 }
 0x4d2   :  { %2463 = vmatmul.msk.f32.vlgmr.msra.gmra.mxu1 %vm1749_vm0, %v1738_v14  ;;  %v2120_v14 = vld [vmem:[%s3850_s17 + $0x18] sm:$0xff] }
 0x54d   :  { %v1770_v21 = vpop.f32.mrf.mxu0 }
 0x54e   :  { %v1773_v22 = vmul.f32 0.02, %v1770_v21  ;;  %v2502_v21 = vld [vmem:[%s3850_s17 + $0x30] sm:$0xff] }
 0x54f   :  { %v1794_v25 = vpop.f32.mrf.mxu1 }
 0x550   :  { %v1798_v29 = vmul.f32 %v1773_v22, %v1773_v22  ;;  %v1797_v8 = vmul.f32 0.02, %v1794_v25  ;;  %v2501_v25 = vld [vmem:[%s3850_s17 + $0x28] sm:$0xff] }
 0x552   :  { %v1799_v27 = vsub.f32 %v1797_v8, %v1798_v29  ;;  %v2117_v29 = vld [vmem:[%s3850_s17] sm:$0xff] }
 0x553   :  { %v2500_v8 = vld [vmem:[%s3850_s17 + $0x20] sm:$0xff] }
 0x554   :  { %v1801_v10 = vadd.f32 1e-05, %v1799_v27 }
 0x556   :  { %2525 = vrsqrt.f32 %v1801_v10  ;;  %vm1808_vm2 = vweird.f32 %v1801_v10 }
 0x55c   :  { %v2526_v12 = vpop.eup %2525 }
 0x55d   :  { %v1803_v3 = vmul.f32 %v2526_v12, %v1801_v10  ;;  %vm1809_vm1 = vweird.f32 %v2526_v12 }
 0x55e   :  { %vm1810_vm3 = vmor %vm1808_vm2, %vm1809_vm1 }
 0x55f   :  { %v1804_v33 = vmul.f32 %v2526_v12, %v1803_v3 }
 0x561   :  { %v1805_v15 = vmul.f32 0.5, %v1804_v33 }
 0x563   :  { %v1806_v62 = vsub.f32 1.5, %v1805_v15 }
 0x565   :  { %v1807_v38 = vmul.f32 %v2526_v12, %v1806_v62 }
 0x567   :  { %v1811_v18 = vsel %vm1810_vm3, %v2526_v12, %v1807_v38 }
 0x568   :  { %v1812_v23 = vmul.f32 %v1811_v18, %v1800_v5 }
 0x56a   :  { %v1814_v63 = vmul.f32 %v1812_v23, %v1773_v22  ;;  %2464 = vmatmul.msk.f32.vlgmr.msra.gmra.mxu2 %vm1818_vm4, %v1812_v23  ;;  %v2118_v22 = vld [vmem:[%s3850_s17 + $0x8] sm:$0xff]  ;;  %v2182_v23 = vld [vmem:[%s3852_s19 + $0x18] sm:$0xff] }
 0x56c   :  { %v1815_v6 = vsub.f32 %v1813_v24, %v1814_v63  ;;  %v2181_v24 = vld [vmem:[%s3852_s19 + $0x10] sm:$0xff]  ;;  %v2180_v63 = vld [vmem:[%s3852_s19 + $0x8] sm:$0xff] }
 0x56e   :  { %2465 = vmatmul.msk.f32.vlgmr.msra.gmra.mxu3 %vm1818_vm4, %v1815_v6  ;;  %v2179_v6 = vld [vmem:[%s3852_s19] sm:$0xff] }
 0x5ed   :  { %v1839_v26 = vpop.f32.mrf.mxu2 }
 0x5ee   :  { %v1865_v30 = vperm.slane %v1839_v26, 0 }
 0x5f0   :  { %v1866_v28 = vmul.f32 %v1865_v30, %v3670_v20  ;;  %v1994_v19 = vmul.f32 %v1865_v30, %v3677_v45  ;;  %v2468_v20 = vld [vmem:[%s3848_s15 + $0x2] sm:$0x3]  ;;  %v2481_v45 = vld [vmem:[%s3849_s16 + $0x98] sm:$0xff] }
 0x5f1   :  { %v1862_v31 = vpop.f32.mrf.mxu3 }
 0x5f2   :  { %v1867_v32 = vperm.slane %v1862_v31, 0  ;;  %v2174_v31 = vld [vmem:[%s3851_s18] sm:$0x1] }
 0x5f4   :  { %v1868_v34 = vadd.f32 %v1867_v32, %v1866_v28  ;;  %v1995_v35 = vadd.f32 %v1994_v19, %v1867_v32 }
 0x5f6   :  { %vm1869_vm6 = vcmp.gt.f32.partialorder %v1868_v34, 0.0  ;;  %v1870_v36 = vmul.f32 0.01, %v1868_v34  ;;  %vm1996_vm7 = vcmp.gt.f32.partialorder %v1995_v35, 0.0  ;;  %v1997_v37 = vmul.f32 0.01, %v1995_v35 }
 0x5f8   :  { %v1871_v39 = vsel %vm1869_vm6, %v1868_v34, %v1870_v36  ;;  %v1998_v40 = vsel %vm1996_vm7, %v1995_v35, %v1997_v37  ;;  %v2268_v37 = vld [vmem:[%s3851_s18] sm:$0x1]  ;;  %s2585_s18 = smov [#allocation7]  }
 0x5f9   :  { %2466 = vmatpush.msk.msrb.mxu2 %vm1877_vm5, %v1871_v39  ;;  %2469 = vmatpush.msk.msrb.mxu3 %vm1877_vm5, %v1871_v39  ;;  %s2310_s12 = sshll.u32 %s2585_s18, 4  ;;  %s2311_s12 = int_to_ptr.vmem [resolvable:$true] %s2310_s12 }
 0x5fa   :  { %2483 = vmatpush.msk.msrb.mxu0 %vm1877_vm5, %v1998_v40  ;;  %2486 = vmatpush.msk.msrb.mxu1 %vm1877_vm5, %v1998_v40 }
 0x5fb   :  { %2467 = vmatmul.msk.f32.vlgmr.msrb.gmra.mxu2 %vm1873_vm8, %v1872_v41  ;;  %2470 = vmatmul.msk.f32.vlgmr.msrb.gmra.mxu3 %vm1873_vm8, %v2468_v20 }
 0x5fc   :  { %2484 = vmatmul.msk.f32.vlgmr.msrb.gmra.mxu0 %vm1873_vm8, %v1999_v42  ;;  %2487 = vmatmul.msk.f32.vlgmr.msrb.gmra.mxu1 %vm1873_vm8, %v2485_v43  ;;  %v2183_v42 = vld [vmem:[%s3853_s20] sm:$0x1] }
 0x5fd   :  { %1946 = vmatpush.msra.mxu2 %v1936_v44  ;;  %1977 = vmatpush.msra.mxu3 %v2481_v45  ;;  %v2277_v43 = vld [vmem:[%s3853_s20] sm:$0x1] }
 0x5fe   :  { %2070 = vmatpush.msra.mxu0 %v1936_v44  ;;  %2100 = vmatpush.msra.mxu1 %v2481_v45 }
 0x5ff   :  { %1947 = vmatpush.msra.mxu2 %v1935_v46  ;;  %1978 = vmatpush.msra.mxu3 %v2480_v47 }
 0x600   :  { %2071 = vmatpush.msra.mxu0 %v1935_v46  ;;  %2101 = vmatpush.msra.mxu1 %v2480_v47 }
 0x601   :  { %1948 = vmatpush.msra.mxu2 %v1934_v48  ;;  %1979 = vmatpush.msra.mxu3 %v2479_v49 }
 0x602   :  { %2072 = vmatpush.msra.mxu0 %v1934_v48  ;;  %2102 = vmatpush.msra.mxu1 %v2479_v49 }
 0x603   :  { %1949 = vmatpush.msra.mxu2 %v1933_v50  ;;  %1980 = vmatpush.msra.mxu3 %v2478_v51 }
 0x604   :  { %2073 = vmatpush.msra.mxu0 %v1933_v50  ;;  %2103 = vmatpush.msra.mxu1 %v2478_v51 }
 0x605   :  { %1950 = vmatpush.msra.mxu2 %v1932_v52  ;;  %1981 = vmatpush.msra.mxu3 %v2477_v53 }
 0x606   :  { %2074 = vmatpush.msra.mxu0 %v1932_v52  ;;  %2104 = vmatpush.msra.mxu1 %v2477_v53 }
 0x607   :  { %1951 = vmatpush.msra.mxu2 %v1931_v54  ;;  %1982 = vmatpush.msra.mxu3 %v2476_v55 }
 0x608   :  { %2075 = vmatpush.msra.mxu0 %v1931_v54  ;;  %2105 = vmatpush.msra.mxu1 %v2476_v55 }
 0x609   :  { %1952 = vmatpush.msra.mxu2 %v1930_v56  ;;  %1983 = vmatpush.msra.mxu3 %v2475_v57 }
 0x60a   :  { %2076 = vmatpush.msra.mxu0 %v1930_v56  ;;  %2106 = vmatpush.msra.mxu1 %v2475_v57 }
 0x60b   :  { %1953 = vmatpush.msra.mxu2 %v1929_v58  ;;  %1984 = vmatpush.msra.mxu3 %v2474_v59 }
 0x60c   :  { %2077 = vmatpush.msra.mxu0 %v1929_v58  ;;  %2107 = vmatpush.msra.mxu1 %v2474_v59 }
 0x60d   :  { %1954 = vmatpush.msra.mxu2 %v1928_v60  ;;  %1985 = vmatpush.msra.mxu3 %v2473_v61 }
 0x60e   :  { %2078 = vmatpush.msra.mxu0 %v1928_v60  ;;  %2108 = vmatpush.msra.mxu1 %v2473_v61 }
 0x60f   :  { %1955 = vmatpush.msra.mxu2 %v1927_v0  ;;  %1986 = vmatpush.msra.mxu3 %v2472_v1 }
 0x610   :  { %2079 = vmatpush.msra.mxu0 %v1927_v0  ;;  %2109 = vmatpush.msra.mxu1 %v2472_v1 }
 0x611   :  { %2166 = vmatpush.msrb.mxu3 %v2120_v14  ;;  %2143 = vmatpush.msrb.mxu2 %v2503_v17 }
 0x612   :  { %2260 = vmatpush.msrb.mxu0 %v2120_v14  ;;  %2293 = vmatpush.msrb.mxu1 %v2182_v23 }
 0x613   :  { %2167 = vmatpush.msrb.mxu3 %v2119_v16  ;;  %2144 = vmatpush.msrb.mxu2 %v2502_v21 }
 0x614   :  { %2261 = vmatpush.msrb.mxu0 %v2119_v16  ;;  %2294 = vmatpush.msrb.mxu1 %v2181_v24 }
 0x615   :  { %2168 = vmatpush.msrb.mxu3 %v2118_v22  ;;  %2145 = vmatpush.msrb.mxu2 %v2501_v25 }
 0x616   :  { %2262 = vmatpush.msrb.mxu0 %v2118_v22  ;;  %2295 = vmatpush.msrb.mxu1 %v2180_v63 }
 0x617   :  { %2169 = vmatpush.msrb.mxu3 %v2117_v29  ;;  %2146 = vmatpush.msrb.mxu2 %v2500_v8 }
 0x618   :  { %2263 = vmatpush.msrb.mxu0 %v2117_v29  ;;  %2296 = vmatpush.msrb.mxu1 %v2179_v6 }
 0x679   :  { %v2023_v2 = vpop.f32.mrf.mxu0  ;;  %v2047_v4 = vpop.f32.mrf.mxu1 }
 0x67a   :  { %v2050_v7 = vmax.f32 %v2023_v2, %v2047_v4 }
 0x67c   :  { %2488 = vmatmul.msk.f32.vlgmr.msra.gmra.mxu0 %vm1749_vm0, %v2050_v7  ;;  %2499 = vmatmul.msk.f32.vlgmr.msra.gmra.mxu1 %vm1749_vm0, %v2050_v7 }
 0x67e   :  { %v1898_v9 = vpop.f32.mrf.mxu2  ;;  %v1923_v11 = vpop.f32.mrf.mxu3 }
 0x67f   :  { %v1926_v13 = vmax.f32 %v1898_v9, %v1923_v11 }
 0x681   :  { %2471 = vmatmul.msk.f32.vlgmr.msra.gmra.mxu2 %vm1749_vm0, %v1926_v13  ;;  %2482 = vmatmul.msk.f32.vlgmr.msra.gmra.mxu3 %vm1749_vm0, %v1926_v13 }
 0x682   :  { %2237 = vmatpush.msra.mxu3 %v2503_v17  ;;  %2199 = vmatpush.msra.mxu2 %v2182_v23 }
 0x684   :  { %2238 = vmatpush.msra.mxu3 %v2502_v21  ;;  %2200 = vmatpush.msra.mxu2 %v2181_v24 }
 0x686   :  { %2239 = vmatpush.msra.mxu3 %v2501_v25  ;;  %2201 = vmatpush.msra.mxu2 %v2180_v63 }
 0x688   :  { %2240 = vmatpush.msra.mxu3 %v2500_v8  ;;  %2202 = vmatpush.msra.mxu2 %v2179_v6 }
 0x6f9   :  { %v2081_v27 = vpop.f32.mrf.mxu0  ;;  %v2111_v10 = vpop.f32.mrf.mxu1 }
 0x6fa   :  { %v2114_v12 = vmax.f32 %v2081_v27, %v2111_v10 }
 0x6fc   :  { %2115 = vst.msk [vmem:[#allocation3 + $0x2] sm:$0x3] %vm1992_vm9, %v2114_v12 }
 0x703   :  { %v2212_v3 = vld [vmem:[#allocation3 + $0x2] sm:$0x1]  ;;  %v2217_v18 = vld [vmem:[#allocation3 + $0x3] sm:$0x1] }
 0x704   :  { %v1957_v33 = vpop.f32.mrf.mxu2  ;;  %v1988_v15 = vpop.f32.mrf.mxu3  ;;  %2512 = vmatmul.msk.f32.vlgmr.msrb.gmra.mxu0 %vm2127_vm10, %v2212_v3 }
 0x705   :  { %v1991_v62 = vmax.f32 %v1957_v33, %v1988_v15 }
 0x707   :  { %1993 = vst.msk [vmem:[#allocation3] sm:$0x3] %vm1992_vm9, %v1991_v62 }
 0x70e   :  { %v2116_v5 = vld [vmem:[#allocation3] sm:$0x1]  ;;  %v2121_v38 = vld [vmem:[#allocation3 + $0x1] sm:$0x1] }
 0x70f   :  { %2505 = vmatmul.msk.f32.vlgmr.msrb.gmra.mxu3 %vm2127_vm10, %v2116_v5  ;;  %2504 = vmatmul.msk.f32.vlgmr.msrb.gmra.mxu2 %vm2127_vm10, %v2121_v38 }
 0x717   :  { %2511 = vmatmul.msk.f32.vlgmr.msra.gmra.mxu3 %vm2127_vm10, %v2217_v18 }
 0x781   :  { %v2265_v36 = vpop.f32.mrf.mxu0 }
 0x792   :  { %v2171_v26 = vpop.f32.mrf.mxu3  ;;  %v2148_v30 = vpop.f32.mrf.mxu2 }
 0x793   :  { %v2172_v28 = vadd.f32 %v2171_v26, %v2148_v30 }
 0x795   :  { %v2175_v19 = vadd.f32 %v2174_v31, %v2172_v28 }
 0x797   :  { %vm2176_vm11 = vcmp.gt.f32.partialorder %v2175_v19, 0.0  ;;  %v2177_v32 = vmul.f32 0.01, %v2175_v19 }
 0x799   :  { %v2178_v34 = vsel %vm2176_vm11, %v2175_v19, %v2177_v32 }
 0x79a   :  { %v2242_v35 = vpop.f32.mrf.mxu3  ;;  %2506 = vmatmul.msk.f32.vlgmr.msra.gmra.mxu2 %vm2127_vm10, %v2178_v34 }
 0x79b   :  { %v2266_v39 = vadd.f32 %v2265_v36, %v2242_v35 }
 0x79d   :  { %v2269_v40 = vadd.f32 %v2268_v37, %v2266_v39 }
 0x79f   :  { %vm2270_vm12 = vcmp.gt.f32.partialorder %v2269_v40, 0.0  ;;  %v2271_v41 = vmul.f32 0.01, %v2269_v40 }
 0x7a1   :  { %v2272_v20 = vsel %vm2270_vm12, %v2269_v40, %v2271_v41 }
 0x7a2   :  { %2513 = vmatmul.msk.f32.vlgmr.msrb.gmra.mxu1 %vm2127_vm10, %v2272_v20 }
 0x81d   :  { %v2204_v44 = vpop.f32.mrf.mxu2 }
 0x81e   :  { %v2205_v45 = vadd.f32 %v2204_v44, %v2183_v42 }
 0x81f   :  { %v2298_v46 = vpop.f32.mrf.mxu1 }
 0x820   :  { %v2299_v47 = vadd.f32 %v2298_v46, %v2277_v43  ;;  %vm2207_vm13 = vcmp.gt.f32.partialorder %v2205_v45, 0.0  ;;  %v2208_v48 = vmul.f32 0.01, %v2205_v45 }
 0x822   :  { %vm2301_vm15 = vcmp.gt.f32.partialorder %v2299_v47, 0.0  ;;  %v2302_v49 = vmul.f32 0.01, %v2299_v47  ;;  %v2209_v50 = vsel %vm2207_vm13, %v2205_v45, %v2208_v48 }
 0x823   :  { %2211 = vst.msk [vmem:[#allocation7] sm:$0x1] %vm2210_vm14, %v2209_v50 }
 0x824   :  { %v2303_v51 = vsel %vm2301_vm15, %v2299_v47, %v2302_v49 }
 0x825   :  { %2304 = vst.msk [vmem:[#allocation7 + $0x1] sm:$0x1] %vm2210_vm14, %v2303_v51 }
 0x826   :  { %2315 = dma.vmem_to_hbm [thread:$0]  %s2311_s12, 32, %s2313_s27, [#allocation6]  }
 0x827   :  { %2577 = dma.done.wait [#allocation6], 32  }
 0x828   :  { %2578 = vsyncadd [#allocation6], 4294967264 }
 0x829   :  { %2320 = vsyncpa [#allocation5], 1 }
 0x82a   :  { %2321 = vsyncpa [#allocation6], 1 }

</bundles_post_ra>
